<compile_context>
chip_gen: v7x
topology: tpu7x:2x2x1
jax: 0.10.0
libtpu: 0.0.40
codegen_flags: <defaults>
</compile_context>

<pallas_src>
import functools
import math

import jax
import jax.numpy as jnp
from jax.experimental import pallas as pl
from jax.experimental.pallas import tpu as pltpu


# ---------------------------------------------------------------------------
# One-time parameter preparation (hoisted out of the forward pass)
# ---------------------------------------------------------------------------
def _band_weights(w_oihw, w_in):
    """Banded per-kernel-row conv matrices for the (H, W*C) activation layout.

    Returns (kh, w_in*Cin, Wo*Cout) with
        G[di][q*Cin + c, j*Cout + co] = w[co, c, di, q - j]   (0 <= q-j < kw)
    so that conv output rows are:  out[i, :] = sum_di  A[i+di, :] @ G[di].
    """
    o, i, kh, kw = w_oihw.shape
    wo = w_in - kw + 1
    mats = []
    for di in range(kh):
        g = jnp.zeros((w_in * i, wo * o), jnp.float32)
        for dj in range(kw):
            band = jnp.eye(w_in, wo, k=-dj, dtype=jnp.float32)   # ones at [j+dj, j]
            g = g + jnp.kron(band, w_oihw[:, :, di, dj].T.astype(jnp.float32))
        mats.append(g)
    return jnp.stack(mats, axis=0)


def _pool_mats(h, w, c):
    """2x2 / stride-2 average pooling expressed as left/right matmul matrices."""
    ho, wo = h // 2, w // 2
    left = 0.25 * (jnp.arange(h)[None, :] // 2 == jnp.arange(ho)[:, None]).astype(jnp.float32)
    cols = (jnp.arange(w)[:, None] // 2 == jnp.arange(wo)[None, :]).astype(jnp.float32)
    right = jnp.kron(cols, jnp.eye(c, dtype=jnp.float32))        # (w*c, wo*c)
    return left, right                                            # (ho, h), (w*c, wo*c)


def prepare_params(params, *, h_in=32, w_in=32):
    c1_out = params["conv1_w"].shape[0]          # 6
    c2_out = params["conv2_w"].shape[0]          # 16
    k = params["conv1_w"].shape[2]               # 5
    h1, w1 = h_in - k + 1, w_in - k + 1          # 28, 28
    h1p, w1p = h1 // 2, w1 // 2                  # 14, 14
    h2, w2 = h1p - k + 1, w1p - k + 1            # 10, 10

    p1l, p1r = _pool_mats(h1, w1, c1_out)
    p2l, p2r = _pool_mats(h2, w2, c2_out)
    return dict(
        c1m=_band_weights(params["conv1_w"], w_in),                         # (5, 32*Cin, 28*6)
        c1b=jnp.tile(params["conv1_b"], w1)[None, :].astype(jnp.float32),   # (1, 168)
        p1l=p1l, p1r=p1r,                                                   # (14,28), (168,84)
        c2m=_band_weights(params["conv2_w"], w1p),                          # (5, 84, 160)
        c2b=jnp.tile(params["conv2_b"], w2)[None, :].astype(jnp.float32),   # (1, 160)
        p2l=p2l, p2r=p2r,                                                   # (5,10), (160,80)
        c3m=_band_weights(params["conv3_w"], w2 // 2),                      # (5, 80, 120)
        c3b=params["conv3_b"][None, :].astype(jnp.float32),                 # (1, 120)
        f1w=params["linear1_w"].T.astype(jnp.float32),                      # (120, 84)
        f1b=params["linear1_b"][None, :].astype(jnp.float32),               # (1, 84)
        f2w=params["linear2_w"].T.astype(jnp.float32),                      # (84, 10)
        f2b=params["linear2_b"][None, :].astype(jnp.float32),               # (1, 10)
    )


_WEIGHT_ORDER = ("c1m", "c1b", "p1l", "p1r", "c2m", "c2b", "p2l", "p2r",
                 "c3m", "c3b", "f1w", "f1b", "f2w", "f2b")


# ---------------------------------------------------------------------------
# Fused Pallas kernel: whole LeNet forward for a batch-tile of `tb` images
# ---------------------------------------------------------------------------
def _lenet_kernel(x_ref,
                  c1m_ref, c1b_ref, p1l_ref, p1r_ref,
                  c2m_ref, c2b_ref, p2l_ref, p2r_ref,
                  c3m_ref, c3b_ref,
                  f1w_ref, f1b_ref, f2w_ref, f2b_ref,
                  out_ref, p1_scr, p2_scr, *, tb):
    f32 = jnp.float32
    kh = c1m_ref.shape[0]              # 5
    ho1 = p1l_ref.shape[1]             # 28  (conv1 output height)
    ho2 = p2l_ref.shape[1]             # 10  (conv2 output height)
    ho3 = p2_scr.shape[0] - (kh - 1)   # 1   (conv3 output height)

    def dot(a, b):
        return jnp.dot(a, b, preferred_element_type=f32)

    rows = []
    for t in range(tb):
        # ---- conv1 + ReLU (banded matmuls over the kh kernel rows) ----------
        acc = dot(x_ref[t, 0:ho1, :], c1m_ref[0])
        for di in range(1, kh):
            acc = acc + dot(x_ref[t, di:di + ho1, :], c1m_ref[di])
        y = jnp.maximum(acc + c1b_ref[...], 0.0)                    # (28, 28*6)
        # ---- avg-pool 2x2 (two matmuls) -------------------------------------
        p1_scr[...] = dot(dot(p1l_ref[...], y), p1r_ref[...])       # (14, 14*6)

        # ---- conv2 + ReLU ----------------------------------------------------
        acc = dot(p1_scr[0:ho2, :], c2m_ref[0])
        for di in range(1, kh):
            acc = acc + dot(p1_scr[di:di + ho2, :], c2m_ref[di])
        y = jnp.maximum(acc + c2b_ref[...], 0.0)                    # (10, 10*16)
        p2_scr[...] = dot(dot(p2l_ref[...], y), p2r_ref[...])       # (5, 5*16)

        # ---- conv3 + ReLU (5x5 -> 1x1) ---------------------------------------
        acc = dot(p2_scr[0:ho3, :], c3m_ref[0])
        for di in range(1, kh):
            acc = acc + dot(p2_scr[di:di + ho3, :], c3m_ref[di])
        y = jnp.maximum(acc + c3b_ref[...], 0.0)                    # (1, 120)

        # ---- fc1 + ReLU, fc2 ---------------------------------------------------
        y = jnp.maximum(dot(y, f1w_ref[...]) + f1b_ref[...], 0.0)   # (1, 84)
        y = dot(y, f2w_ref[...]) + f2b_ref[...]                     # (1, 10)
        rows.append(y)

    out = rows[0] if tb == 1 else jnp.concatenate(rows, axis=0)     # (tb, 10)
    out_ref[...] = out[None].astype(out_ref.dtype)


def _replicated_spec(shape):
    ndim = len(shape)
    return pl.BlockSpec(shape, lambda i: (0,) * ndim)


# ---------------------------------------------------------------------------
# Forward pass wrapper: one pallas_call over batch tiles
# ---------------------------------------------------------------------------
def lenet_forward(x_nchw, prepped, *, tb=2):
    """x_nchw: (B, Cin, 32, 32) -> logits (B, 10)."""
    x = jnp.transpose(x_nchw.astype(jnp.float32), (0, 2, 3, 1))     # NHWC
    b, h, w, c = x.shape
    x = x.reshape(b, h, w * c)                                      # lane-dense (H, W*C)

    b_pad = -(-b // tb) * tb
    if b_pad != b:
        x = jnp.pad(x, ((0, b_pad - b), (0, 0), (0, 0)))
    nb = b_pad // tb

    weights = [prepped[k] for k in _WEIGHT_ORDER]
    n_out = prepped["f2w"].shape[1]                                 # 10

    in_specs = [pl.BlockSpec((tb, h, w * c), lambda i: (i, 0, 0))]
    in_specs += [_replicated_spec(wg.shape) for wg in weights]

    p1_shape = (prepped["p1l"].shape[0], prepped["p1r"].shape[1])   # (14, 84)
    p2_shape = (prepped["p2l"].shape[0], prepped["p2r"].shape[1])   # (5, 80)

    # Advisory cost estimate (lets XLA schedule around the fused call).
    def dflops(m, kk, n):
        return 2 * m * kk * n
    kh, k1k, k1n = prepped["c1m"].shape
    _, k2k, k2n = prepped["c2m"].shape
    _, k3k, k3n = prepped["c3m"].shape
    h1 = prepped["p1l"].shape[1]
    h2 = prepped["p2l"].shape[1]
    flops_img = (kh * dflops(h1, k1k, k1n)
                 + dflops(p1_shape[0], h1, k1n) + dflops(p1_shape[0], k1n, p1_shape[1])
                 + kh * dflops(h2, k2k, k2n)
                 + dflops(p2_shape[0], h2, k2n) + dflops(p2_shape[0], k2n, p2_shape[1])
                 + kh * dflops(1, k3k, k3n)
                 + dflops(1, *prepped["f1w"].shape) + dflops(1, *prepped["f2w"].shape))
    bytes_accessed = 4 * (b_pad * h * w * c
                          + sum(math.prod(wg.shape) for wg in weights)
                          + b_pad * n_out)

    out = pl.pallas_call(
        functools.partial(_lenet_kernel, tb=tb),
        out_shape=jax.ShapeDtypeStruct((nb, tb, n_out), jnp.float32),
        grid=(nb,),
        in_specs=in_specs,
        out_specs=pl.BlockSpec((1, tb, n_out), lambda i: (i, 0, 0)),
        scratch_shapes=[pltpu.VMEM(p1_shape, jnp.float32),
                        pltpu.VMEM(p2_shape, jnp.float32)],
        compiler_params=pltpu.CompilerParams(dimension_semantics=("parallel",)),
        cost_estimate=pl.CostEstimate(flops=int(flops_img) * b_pad,
                                      transcendentals=0,
                                      bytes_accessed=int(bytes_accessed)),
    )(x, *weights)

    return out.reshape(b_pad, n_out)[:b]


# ---------------------------------------------------------------------------
# LeNet parameters (deterministic synthetic init, PyTorch-native shapes)
# ---------------------------------------------------------------------------
def init_params(key, in_channels=1):
    ks = jax.random.split(key, 10)
    scale = 0.1
    return {
        "conv1_w": jax.random.normal(ks[0], (6, in_channels, 5, 5), jnp.float32) * scale,
        "conv1_b": jax.random.normal(ks[1], (6,), jnp.float32) * scale,
        "conv2_w": jax.random.normal(ks[2], (16, 6, 5, 5), jnp.float32) * scale,
        "conv2_b": jax.random.normal(ks[3], (16,), jnp.float32) * scale,
        "conv3_w": jax.random.normal(ks[4], (120, 16, 5, 5), jnp.float32) * scale,
        "conv3_b": jax.random.normal(ks[5], (120,), jnp.float32) * scale,
        "linear1_w": jax.random.normal(ks[6], (84, 120), jnp.float32) * scale,  # (out, in)
        "linear1_b": jax.random.normal(ks[7], (84,), jnp.float32) * scale,
        "linear2_w": jax.random.normal(ks[8], (10, 84), jnp.float32) * scale,   # (out, in)
        "linear2_b": jax.random.normal(ks[9], (10,), jnp.float32) * scale,
    }


# ---------------------------------------------------------------------------
# Pure-JAX reference (correctness sanity check)
# ---------------------------------------------------------------------------
def lenet_forward_ref(x_nchw, params):
    def conv(x, w, b):
        y = jax.lax.conv_general_dilated(
            x, w, window_strides=(1, 1), padding="VALID",
            dimension_numbers=("NCHW", "OIHW", "NCHW"))
        return y + b.reshape(1, -1, 1, 1)

    def pool(x):
        bb, cc, hh, ww = x.shape
        return x.reshape(bb, cc, hh // 2, 2, ww // 2, 2).mean(axis=(3, 5))

    x = x_nchw.astype(jnp.float32)
    x = jax.nn.relu(conv(x, params["conv1_w"], params["conv1_b"]))
    x = pool(x)
    x = jax.nn.relu(conv(x, params["conv2_w"], params["conv2_b"]))
    x = pool(x)
    x = jax.nn.relu(conv(x, params["conv3_w"], params["conv3_b"]))
    x = x.reshape(x.shape[0], -1)
    x = jax.nn.relu(x @ params["linear1_w"].T + params["linear1_b"])
    x = x @ params["linear2_w"].T + params["linear2_b"]
    return x


if __name__ == "__main__":
    key = jax.random.PRNGKey(0)
    k_x, k_p = jax.random.split(key)

    # LeNet requires 32x32 spatial input (conv3 reduces 5x5 -> 1x1); small batch.
    batch, in_channels = 8, 1
    x = jax.random.normal(k_x, (batch, in_channels, 32, 32), jnp.float32)
    params = init_params(k_p, in_channels)
    prepped = prepare_params(params)

    fwd = jax.jit(functools.partial(lenet_forward, tb=2))
    out = jax.block_until_ready(fwd(x, prepped))
    assert out.shape == (batch, 10), out.shape

    ref = jax.block_until_ready(lenet_forward_ref(x, params))
    assert jnp.allclose(out, ref, atol=1e-3, rtol=1e-3), float(jnp.abs(out - ref).max())

    print("KERNEL_OK")
</pallas_src>

<mosaic_0001>
module attributes {stable_mosaic.version = 11 : i64} {
  func.func @_lenet_kernel(%arg0: i32, %arg1: memref<2x32x32xf32, #tpu.memory_space<vmem>>, %arg2: memref<5x32x168xf32, #tpu.memory_space<vmem>>, %arg3: memref<1x168xf32, #tpu.memory_space<vmem>>, %arg4: memref<14x28xf32, #tpu.memory_space<vmem>>, %arg5: memref<168x84xf32, #tpu.memory_space<vmem>>, %arg6: memref<5x84x160xf32, #tpu.memory_space<vmem>>, %arg7: memref<1x160xf32, #tpu.memory_space<vmem>>, %arg8: memref<5x10xf32, #tpu.memory_space<vmem>>, %arg9: memref<160x80xf32, #tpu.memory_space<vmem>>, %arg10: memref<5x80x120xf32, #tpu.memory_space<vmem>>, %arg11: memref<1x120xf32, #tpu.memory_space<vmem>>, %arg12: memref<120x84xf32, #tpu.memory_space<vmem>>, %arg13: memref<1x84xf32, #tpu.memory_space<vmem>>, %arg14: memref<84x10xf32, #tpu.memory_space<vmem>>, %arg15: memref<1x10xf32, #tpu.memory_space<vmem>>, %arg16: memref<1x2x10xf32, #tpu.memory_space<vmem>>, %arg17: memref<14x84xf32, #tpu.memory_space<vmem>>, %arg18: memref<5x80xf32, #tpu.memory_space<vmem>>) attributes {dimension_semantics = [#tpu.dimension_semantics<parallel>], iteration_bounds = array<i64: 4>, scalar_prefetch = 0 : i64, scratch_operands = 2 : i64, tpu.core_type = #tpu.core_type<tc>, window_params = [{transform_indices = @transform_0, window_bounds = array<i64: 2, 32, 32>}, {pipeline_mode = #tpu.pipeline_mode<synchronous>, transform_indices = @transform_1, window_bounds = array<i64: 5, 32, 168>}, {pipeline_mode = #tpu.pipeline_mode<synchronous>, transform_indices = @transform_2, window_bounds = array<i64: 1, 168>}, {pipeline_mode = #tpu.pipeline_mode<synchronous>, transform_indices = @transform_3, window_bounds = array<i64: 14, 28>}, {pipeline_mode = #tpu.pipeline_mode<synchronous>, transform_indices = @transform_4, window_bounds = array<i64: 168, 84>}, {pipeline_mode = #tpu.pipeline_mode<synchronous>, transform_indices = @transform_5, window_bounds = array<i64: 5, 84, 160>}, {pipeline_mode = #tpu.pipeline_mode<synchronous>, transform_indices = @transform_6, window_bounds = array<i64: 1, 160>}, {pipeline_mode = #tpu.pipeline_mode<synchronous>, transform_indices = @transform_7, window_bounds = array<i64: 5, 10>}, {pipeline_mode = #tpu.pipeline_mode<synchronous>, transform_indices = @transform_8, window_bounds = array<i64: 160, 80>}, {pipeline_mode = #tpu.pipeline_mode<synchronous>, transform_indices = @transform_9, window_bounds = array<i64: 5, 80, 120>}, {pipeline_mode = #tpu.pipeline_mode<synchronous>, transform_indices = @transform_10, window_bounds = array<i64: 1, 120>}, {pipeline_mode = #tpu.pipeline_mode<synchronous>, transform_indices = @transform_11, window_bounds = array<i64: 120, 84>}, {pipeline_mode = #tpu.pipeline_mode<synchronous>, transform_indices = @transform_12, window_bounds = array<i64: 1, 84>}, {pipeline_mode = #tpu.pipeline_mode<synchronous>, transform_indices = @transform_13, window_bounds = array<i64: 84, 10>}, {pipeline_mode = #tpu.pipeline_mode<synchronous>, transform_indices = @transform_14, window_bounds = array<i64: 1, 10>}, {transform_indices = @transform_15, window_bounds = array<i64: 1, 2, 10>}]} {
    %c0 = arith.constant 0 : index
    %c0_0 = arith.constant 0 : index
    %c0_1 = arith.constant 0 : index
    %0 = vector.load %arg1[%c0, %c0_0, %c0_1] : memref<2x32x32xf32, #tpu.memory_space<vmem>>, vector<1x28x32xf32>
    %1 = vector.shape_cast %0 : vector<1x28x32xf32> to vector<28x32xf32>
    %c0_2 = arith.constant 0 : index
    %c0_3 = arith.constant 0 : index
    %c0_4 = arith.constant 0 : index
    %2 = vector.load %arg2[%c0_2, %c0_3, %c0_4] : memref<5x32x168xf32, #tpu.memory_space<vmem>>, vector<1x32x168xf32>
    %3 = vector.shape_cast %2 : vector<1x32x168xf32> to vector<32x168xf32>
    %cst = arith.constant dense<0.000000e+00> : vector<28x168xf32>
    %4 = tpu.matmul %1, %3, %cst {dimension_numbers = #tpu.dot_dimension_numbers<[1], [0], [0], [1], [0, 0, 1, 1], [], []>} : vector<28x32xf32>, vector<32x168xf32>, vector<28x168xf32> -> vector<28x168xf32>
    %c0_5 = arith.constant 0 : index
    %c1 = arith.constant 1 : index
    %c0_6 = arith.constant 0 : index
    %5 = vector.load %arg1[%c0_5, %c1, %c0_6] : memref<2x32x32xf32, #tpu.memory_space<vmem>>, vector<1x28x32xf32>
    %6 = vector.shape_cast %5 : vector<1x28x32xf32> to vector<28x32xf32>
    %c1_7 = arith.constant 1 : index
    %c0_8 = arith.constant 0 : index
    %c0_9 = arith.constant 0 : index
    %7 = vector.load %arg2[%c1_7, %c0_8, %c0_9] : memref<5x32x168xf32, #tpu.memory_space<vmem>>, vector<1x32x168xf32>
    %8 = vector.shape_cast %7 : vector<1x32x168xf32> to vector<32x168xf32>
    %cst_10 = arith.constant dense<0.000000e+00> : vector<28x168xf32>
    %9 = tpu.matmul %6, %8, %cst_10 {dimension_numbers = #tpu.dot_dimension_numbers<[1], [0], [0], [1], [0, 0, 1, 1], [], []>} : vector<28x32xf32>, vector<32x168xf32>, vector<28x168xf32> -> vector<28x168xf32>
    %10 = arith.addf %4, %9 : vector<28x168xf32>
    %c0_11 = arith.constant 0 : index
    %c2 = arith.constant 2 : index
    %c0_12 = arith.constant 0 : index
    %11 = vector.load %arg1[%c0_11, %c2, %c0_12] : memref<2x32x32xf32, #tpu.memory_space<vmem>>, vector<1x28x32xf32>
    %12 = vector.shape_cast %11 : vector<1x28x32xf32> to vector<28x32xf32>
    %c2_13 = arith.constant 2 : index
    %c0_14 = arith.constant 0 : index
    %c0_15 = arith.constant 0 : index
    %13 = vector.load %arg2[%c2_13, %c0_14, %c0_15] : memref<5x32x168xf32, #tpu.memory_space<vmem>>, vector<1x32x168xf32>
    %14 = vector.shape_cast %13 : vector<1x32x168xf32> to vector<32x168xf32>
    %cst_16 = arith.constant dense<0.000000e+00> : vector<28x168xf32>
    %15 = tpu.matmul %12, %14, %cst_16 {dimension_numbers = #tpu.dot_dimension_numbers<[1], [0], [0], [1], [0, 0, 1, 1], [], []>} : vector<28x32xf32>, vector<32x168xf32>, vector<28x168xf32> -> vector<28x168xf32>
    %16 = arith.addf %10, %15 : vector<28x168xf32>
    %c0_17 = arith.constant 0 : index
    %c3 = arith.constant 3 : index
    %c0_18 = arith.constant 0 : index
    %17 = vector.load %arg1[%c0_17, %c3, %c0_18] : memref<2x32x32xf32, #tpu.memory_space<vmem>>, vector<1x28x32xf32>
    %18 = vector.shape_cast %17 : vector<1x28x32xf32> to vector<28x32xf32>
    %c3_19 = arith.constant 3 : index
    %c0_20 = arith.constant 0 : index
    %c0_21 = arith.constant 0 : index
    %19 = vector.load %arg2[%c3_19, %c0_20, %c0_21] : memref<5x32x168xf32, #tpu.memory_space<vmem>>, vector<1x32x168xf32>
    %20 = vector.shape_cast %19 : vector<1x32x168xf32> to vector<32x168xf32>
    %cst_22 = arith.constant dense<0.000000e+00> : vector<28x168xf32>
    %21 = tpu.matmul %18, %20, %cst_22 {dimension_numbers = #tpu.dot_dimension_numbers<[1], [0], [0], [1], [0, 0, 1, 1], [], []>} : vector<28x32xf32>, vector<32x168xf32>, vector<28x168xf32> -> vector<28x168xf32>
    %22 = arith.addf %16, %21 : vector<28x168xf32>
    %c0_23 = arith.constant 0 : index
    %c4 = arith.constant 4 : index
    %c0_24 = arith.constant 0 : index
    %23 = vector.load %arg1[%c0_23, %c4, %c0_24] : memref<2x32x32xf32, #tpu.memory_space<vmem>>, vector<1x28x32xf32>
    %24 = vector.shape_cast %23 : vector<1x28x32xf32> to vector<28x32xf32>
    %c4_25 = arith.constant 4 : index
    %c0_26 = arith.constant 0 : index
    %c0_27 = arith.constant 0 : index
    %25 = vector.load %arg2[%c4_25, %c0_26, %c0_27] : memref<5x32x168xf32, #tpu.memory_space<vmem>>, vector<1x32x168xf32>
    %26 = vector.shape_cast %25 : vector<1x32x168xf32> to vector<32x168xf32>
    %cst_28 = arith.constant dense<0.000000e+00> : vector<28x168xf32>
    %27 = tpu.matmul %24, %26, %cst_28 {dimension_numbers = #tpu.dot_dimension_numbers<[1], [0], [0], [1], [0, 0, 1, 1], [], []>} : vector<28x32xf32>, vector<32x168xf32>, vector<28x168xf32> -> vector<28x168xf32>
    %28 = arith.addf %22, %27 : vector<28x168xf32>
    %c0_29 = arith.constant 0 : index
    %c0_30 = arith.constant 0 : index
    %29 = vector.load %arg3[%c0_29, %c0_30] : memref<1x168xf32, #tpu.memory_space<vmem>>, vector<1x168xf32>
    %30 = vector.broadcast %29 : vector<1x168xf32> to vector<28x168xf32>
    %31 = arith.addf %28, %30 : vector<28x168xf32>
    %cst_31 = arith.constant 0.000000e+00 : f32
    %32 = vector.broadcast %cst_31 : f32 to vector<28x168xf32>
    %33 = arith.maximumf %31, %32 : vector<28x168xf32>
    %c0_32 = arith.constant 0 : index
    %c0_33 = arith.constant 0 : index
    %34 = vector.load %arg4[%c0_32, %c0_33] : memref<14x28xf32, #tpu.memory_space<vmem>>, vector<14x28xf32>
    %cst_34 = arith.constant dense<0.000000e+00> : vector<14x168xf32>
    %35 = tpu.matmul %34, %33, %cst_34 {dimension_numbers = #tpu.dot_dimension_numbers<[1], [0], [0], [1], [0, 0, 1, 1], [], []>} : vector<14x28xf32>, vector<28x168xf32>, vector<14x168xf32> -> vector<14x168xf32>
    %c0_35 = arith.constant 0 : index
    %c0_36 = arith.constant 0 : index
    %36 = vector.load %arg5[%c0_35, %c0_36] : memref<168x84xf32, #tpu.memory_space<vmem>>, vector<168x84xf32>
    %cst_37 = arith.constant dense<0.000000e+00> : vector<14x84xf32>
    %37 = tpu.matmul %35, %36, %cst_37 {dimension_numbers = #tpu.dot_dimension_numbers<[1], [0], [0], [1], [0, 0, 1, 1], [], []>} : vector<14x168xf32>, vector<168x84xf32>, vector<14x84xf32> -> vector<14x84xf32>
    %c0_38 = arith.constant 0 : index
    %c0_39 = arith.constant 0 : index
    %38 = vector.load %arg17[%c0_38, %c0_39] : memref<14x84xf32, #tpu.memory_space<vmem>>, vector<14x84xf32>
    tpu.vector_store %arg17[%c0_38, %c0_39], %37 {strides = array<i32>} : memref<14x84xf32, #tpu.memory_space<vmem>>, vector<14x84xf32>,
    %c0_40 = arith.constant 0 : index
    %c0_41 = arith.constant 0 : index
    %39 = vector.load %arg17[%c0_40, %c0_41] : memref<14x84xf32, #tpu.memory_space<vmem>>, vector<10x84xf32>
    %c0_42 = arith.constant 0 : index
    %c0_43 = arith.constant 0 : index
    %c0_44 = arith.constant 0 : index
    %40 = vector.load %arg6[%c0_42, %c0_43, %c0_44] : memref<5x84x160xf32, #tpu.memory_space<vmem>>, vector<1x84x160xf32>
    %41 = vector.shape_cast %40 : vector<1x84x160xf32> to vector<84x160xf32>
    %cst_45 = arith.constant dense<0.000000e+00> : vector<10x160xf32>
    %42 = tpu.matmul %39, %41, %cst_45 {dimension_numbers = #tpu.dot_dimension_numbers<[1], [0], [0], [1], [0, 0, 1, 1], [], []>} : vector<10x84xf32>, vector<84x160xf32>, vector<10x160xf32> -> vector<10x160xf32>
    %c1_46 = arith.constant 1 : index
    %c0_47 = arith.constant 0 : index
    %43 = vector.load %arg17[%c1_46, %c0_47] : memref<14x84xf32, #tpu.memory_space<vmem>>, vector<10x84xf32>
    %c1_48 = arith.constant 1 : index
    %c0_49 = arith.constant 0 : index
    %c0_50 = arith.constant 0 : index
    %44 = vector.load %arg6[%c1_48, %c0_49, %c0_50] : memref<5x84x160xf32, #tpu.memory_space<vmem>>, vector<1x84x160xf32>
    %45 = vector.shape_cast %44 : vector<1x84x160xf32> to vector<84x160xf32>
    %cst_51 = arith.constant dense<0.000000e+00> : vector<10x160xf32>
    %46 = tpu.matmul %43, %45, %cst_51 {dimension_numbers = #tpu.dot_dimension_numbers<[1], [0], [0], [1], [0, 0, 1, 1], [], []>} : vector<10x84xf32>, vector<84x160xf32>, vector<10x160xf32> -> vector<10x160xf32>
    %47 = arith.addf %42, %46 : vector<10x160xf32>
    %c2_52 = arith.constant 2 : index
    %c0_53 = arith.constant 0 : index
    %48 = vector.load %arg17[%c2_52, %c0_53] : memref<14x84xf32, #tpu.memory_space<vmem>>, vector<10x84xf32>
    %c2_54 = arith.constant 2 : index
    %c0_55 = arith.constant 0 : index
    %c0_56 = arith.constant 0 : index
    %49 = vector.load %arg6[%c2_54, %c0_55, %c0_56] : memref<5x84x160xf32, #tpu.memory_space<vmem>>, vector<1x84x160xf32>
    %50 = vector.shape_cast %49 : vector<1x84x160xf32> to vector<84x160xf32>
    %cst_57 = arith.constant dense<0.000000e+00> : vector<10x160xf32>
    %51 = tpu.matmul %48, %50, %cst_57 {dimension_numbers = #tpu.dot_dimension_numbers<[1], [0], [0], [1], [0, 0, 1, 1], [], []>} : vector<10x84xf32>, vector<84x160xf32>, vector<10x160xf32> -> vector<10x160xf32>
    %52 = arith.addf %47, %51 : vector<10x160xf32>
    %c3_58 = arith.constant 3 : index
    %c0_59 = arith.constant 0 : index
    %53 = vector.load %arg17[%c3_58, %c0_59] : memref<14x84xf32, #tpu.memory_space<vmem>>, vector<10x84xf32>
    %c3_60 = arith.constant 3 : index
    %c0_61 = arith.constant 0 : index
    %c0_62 = arith.constant 0 : index
    %54 = vector.load %arg6[%c3_60, %c0_61, %c0_62] : memref<5x84x160xf32, #tpu.memory_space<vmem>>, vector<1x84x160xf32>
    %55 = vector.shape_cast %54 : vector<1x84x160xf32> to vector<84x160xf32>
    %cst_63 = arith.constant dense<0.000000e+00> : vector<10x160xf32>
    %56 = tpu.matmul %53, %55, %cst_63 {dimension_numbers = #tpu.dot_dimension_numbers<[1], [0], [0], [1], [0, 0, 1, 1], [], []>} : vector<10x84xf32>, vector<84x160xf32>, vector<10x160xf32> -> vector<10x160xf32>
    %57 = arith.addf %52, %56 : vector<10x160xf32>
    %c4_64 = arith.constant 4 : index
    %c0_65 = arith.constant 0 : index
    %58 = vector.load %arg17[%c4_64, %c0_65] : memref<14x84xf32, #tpu.memory_space<vmem>>, vector<10x84xf32>
    %c4_66 = arith.constant 4 : index
    %c0_67 = arith.constant 0 : index
    %c0_68 = arith.constant 0 : index
    %59 = vector.load %arg6[%c4_66, %c0_67, %c0_68] : memref<5x84x160xf32, #tpu.memory_space<vmem>>, vector<1x84x160xf32>
    %60 = vector.shape_cast %59 : vector<1x84x160xf32> to vector<84x160xf32>
    %cst_69 = arith.constant dense<0.000000e+00> : vector<10x160xf32>
    %61 = tpu.matmul %58, %60, %cst_69 {dimension_numbers = #tpu.dot_dimension_numbers<[1], [0], [0], [1], [0, 0, 1, 1], [], []>} : vector<10x84xf32>, vector<84x160xf32>, vector<10x160xf32> -> vector<10x160xf32>
    %62 = arith.addf %57, %61 : vector<10x160xf32>
    %c0_70 = arith.constant 0 : index
    %c0_71 = arith.constant 0 : index
    %63 = vector.load %arg7[%c0_70, %c0_71] : memref<1x160xf32, #tpu.memory_space<vmem>>, vector<1x160xf32>
    %64 = vector.broadcast %63 : vector<1x160xf32> to vector<10x160xf32>
    %65 = arith.addf %62, %64 : vector<10x160xf32>
    %cst_72 = arith.constant 0.000000e+00 : f32
    %66 = vector.broadcast %cst_72 : f32 to vector<10x160xf32>
    %67 = arith.maximumf %65, %66 : vector<10x160xf32>
    %c0_73 = arith.constant 0 : index
    %c0_74 = arith.constant 0 : index
    %68 = vector.load %arg8[%c0_73, %c0_74] : memref<5x10xf32, #tpu.memory_space<vmem>>, vector<5x10xf32>
    %cst_75 = arith.constant dense<0.000000e+00> : vector<5x160xf32>
    %69 = tpu.matmul %68, %67, %cst_75 {dimension_numbers = #tpu.dot_dimension_numbers<[1], [0], [0], [1], [0, 0, 1, 1], [], []>} : vector<5x10xf32>, vector<10x160xf32>, vector<5x160xf32> -> vector<5x160xf32>
    %c0_76 = arith.constant 0 : index
    %c0_77 = arith.constant 0 : index
    %70 = vector.load %arg9[%c0_76, %c0_77] : memref<160x80xf32, #tpu.memory_space<vmem>>, vector<160x80xf32>
    %cst_78 = arith.constant dense<0.000000e+00> : vector<5x80xf32>
    %71 = tpu.matmul %69, %70, %cst_78 {dimension_numbers = #tpu.dot_dimension_numbers<[1], [0], [0], [1], [0, 0, 1, 1], [], []>} : vector<5x160xf32>, vector<160x80xf32>, vector<5x80xf32> -> vector<5x80xf32>
    %c0_79 = arith.constant 0 : index
    %c0_80 = arith.constant 0 : index
    %72 = vector.load %arg18[%c0_79, %c0_80] : memref<5x80xf32, #tpu.memory_space<vmem>>, vector<5x80xf32>
    tpu.vector_store %arg18[%c0_79, %c0_80], %71 {strides = array<i32>} : memref<5x80xf32, #tpu.memory_space<vmem>>, vector<5x80xf32>,
    %c0_81 = arith.constant 0 : index
    %c0_82 = arith.constant 0 : index
    %73 = vector.load %arg18[%c0_81, %c0_82] : memref<5x80xf32, #tpu.memory_space<vmem>>, vector<1x80xf32>
    %c0_83 = arith.constant 0 : index
    %c0_84 = arith.constant 0 : index
    %c0_85 = arith.constant 0 : index
    %74 = vector.load %arg10[%c0_83, %c0_84, %c0_85] : memref<5x80x120xf32, #tpu.memory_space<vmem>>, vector<1x80x120xf32>
    %75 = vector.shape_cast %74 : vector<1x80x120xf32> to vector<80x120xf32>
    %cst_86 = arith.constant dense<0.000000e+00> : vector<1x120xf32>
    %76 = tpu.matmul %73, %75, %cst_86 {dimension_numbers = #tpu.dot_dimension_numbers<[1], [0], [0], [1], [0, 0, 1, 1], [], []>} : vector<1x80xf32>, vector<80x120xf32>, vector<1x120xf32> -> vector<1x120xf32>
    %c1_87 = arith.constant 1 : index
    %c0_88 = arith.constant 0 : index
    %77 = vector.load %arg18[%c1_87, %c0_88] : memref<5x80xf32, #tpu.memory_space<vmem>>, vector<1x80xf32>
    %c1_89 = arith.constant 1 : index
    %c0_90 = arith.constant 0 : index
    %c0_91 = arith.constant 0 : index
    %78 = vector.load %arg10[%c1_89, %c0_90, %c0_91] : memref<5x80x120xf32, #tpu.memory_space<vmem>>, vector<1x80x120xf32>
    %79 = vector.shape_cast %78 : vector<1x80x120xf32> to vector<80x120xf32>
    %cst_92 = arith.constant dense<0.000000e+00> : vector<1x120xf32>
    %80 = tpu.matmul %77, %79, %cst_92 {dimension_numbers = #tpu.dot_dimension_numbers<[1], [0], [0], [1], [0, 0, 1, 1], [], []>} : vector<1x80xf32>, vector<80x120xf32>, vector<1x120xf32> -> vector<1x120xf32>
    %81 = arith.addf %76, %80 : vector<1x120xf32>
    %c2_93 = arith.constant 2 : index
    %c0_94 = arith.constant 0 : index
    %82 = vector.load %arg18[%c2_93, %c0_94] : memref<5x80xf32, #tpu.memory_space<vmem>>, vector<1x80xf32>
    %c2_95 = arith.constant 2 : index
    %c0_96 = arith.constant 0 : index
    %c0_97 = arith.constant 0 : index
    %83 = vector.load %arg10[%c2_95, %c0_96, %c0_97] : memref<5x80x120xf32, #tpu.memory_space<vmem>>, vector<1x80x120xf32>
    %84 = vector.shape_cast %83 : vector<1x80x120xf32> to vector<80x120xf32>
    %cst_98 = arith.constant dense<0.000000e+00> : vector<1x120xf32>
    %85 = tpu.matmul %82, %84, %cst_98 {dimension_numbers = #tpu.dot_dimension_numbers<[1], [0], [0], [1], [0, 0, 1, 1], [], []>} : vector<1x80xf32>, vector<80x120xf32>, vector<1x120xf32> -> vector<1x120xf32>
    %86 = arith.addf %81, %85 : vector<1x120xf32>
    %c3_99 = arith.constant 3 : index
    %c0_100 = arith.constant 0 : index
    %87 = vector.load %arg18[%c3_99, %c0_100] : memref<5x80xf32, #tpu.memory_space<vmem>>, vector<1x80xf32>
    %c3_101 = arith.constant 3 : index
    %c0_102 = arith.constant 0 : index
    %c0_103 = arith.constant 0 : index
    %88 = vector.load %arg10[%c3_101, %c0_102, %c0_103] : memref<5x80x120xf32, #tpu.memory_space<vmem>>, vector<1x80x120xf32>
    %89 = vector.shape_cast %88 : vector<1x80x120xf32> to vector<80x120xf32>
    %cst_104 = arith.constant dense<0.000000e+00> : vector<1x120xf32>
    %90 = tpu.matmul %87, %89, %cst_104 {dimension_numbers = #tpu.dot_dimension_numbers<[1], [0], [0], [1], [0, 0, 1, 1], [], []>} : vector<1x80xf32>, vector<80x120xf32>, vector<1x120xf32> -> vector<1x120xf32>
    %91 = arith.addf %86, %90 : vector<1x120xf32>
    %c4_105 = arith.constant 4 : index
    %c0_106 = arith.constant 0 : index
    %92 = vector.load %arg18[%c4_105, %c0_106] : memref<5x80xf32, #tpu.memory_space<vmem>>, vector<1x80xf32>
    %c4_107 = arith.constant 4 : index
    %c0_108 = arith.constant 0 : index
    %c0_109 = arith.constant 0 : index
    %93 = vector.load %arg10[%c4_107, %c0_108, %c0_109] : memref<5x80x120xf32, #tpu.memory_space<vmem>>, vector<1x80x120xf32>
    %94 = vector.shape_cast %93 : vector<1x80x120xf32> to vector<80x120xf32>
    %cst_110 = arith.constant dense<0.000000e+00> : vector<1x120xf32>
    %95 = tpu.matmul %92, %94, %cst_110 {dimension_numbers = #tpu.dot_dimension_numbers<[1], [0], [0], [1], [0, 0, 1, 1], [], []>} : vector<1x80xf32>, vector<80x120xf32>, vector<1x120xf32> -> vector<1x120xf32>
    %96 = arith.addf %91, %95 : vector<1x120xf32>
    %c0_111 = arith.constant 0 : index
    %c0_112 = arith.constant 0 : index
    %97 = vector.load %arg11[%c0_111, %c0_112] : memref<1x120xf32, #tpu.memory_space<vmem>>, vector<1x120xf32>
    %98 = arith.addf %96, %97 : vector<1x120xf32>
    %cst_113 = arith.constant 0.000000e+00 : f32
    %99 = vector.broadcast %cst_113 : f32 to vector<1x120xf32>
    %100 = arith.maximumf %98, %99 : vector<1x120xf32>
    %c0_114 = arith.constant 0 : index
    %c0_115 = arith.constant 0 : index
    %101 = vector.load %arg12[%c0_114, %c0_115] : memref<120x84xf32, #tpu.memory_space<vmem>>, vector<120x84xf32>
    %cst_116 = arith.constant dense<0.000000e+00> : vector<1x84xf32>
    %102 = tpu.matmul %100, %101, %cst_116 {dimension_numbers = #tpu.dot_dimension_numbers<[1], [0], [0], [1], [0, 0, 1, 1], [], []>} : vector<1x120xf32>, vector<120x84xf32>, vector<1x84xf32> -> vector<1x84xf32>
    %c0_117 = arith.constant 0 : index
    %c0_118 = arith.constant 0 : index
    %103 = vector.load %arg13[%c0_117, %c0_118] : memref<1x84xf32, #tpu.memory_space<vmem>>, vector<1x84xf32>
    %104 = arith.addf %102, %103 : vector<1x84xf32>
    %cst_119 = arith.constant 0.000000e+00 : f32
    %105 = vector.broadcast %cst_119 : f32 to vector<1x84xf32>
    %106 = arith.maximumf %104, %105 : vector<1x84xf32>
    %c0_120 = arith.constant 0 : index
    %c0_121 = arith.constant 0 : index
    %107 = vector.load %arg14[%c0_120, %c0_121] : memref<84x10xf32, #tpu.memory_space<vmem>>, vector<84x10xf32>
    %cst_122 = arith.constant dense<0.000000e+00> : vector<1x10xf32>
    %108 = tpu.matmul %106, %107, %cst_122 {dimension_numbers = #tpu.dot_dimension_numbers<[1], [0], [0], [1], [0, 0, 1, 1], [], []>} : vector<1x84xf32>, vector<84x10xf32>, vector<1x10xf32> -> vector<1x10xf32>
    %c0_123 = arith.constant 0 : index
    %c0_124 = arith.constant 0 : index
    %109 = vector.load %arg15[%c0_123, %c0_124] : memref<1x10xf32, #tpu.memory_space<vmem>>, vector<1x10xf32>
    %110 = arith.addf %108, %109 : vector<1x10xf32>
    %c1_125 = arith.constant 1 : index
    %c0_126 = arith.constant 0 : index
    %c0_127 = arith.constant 0 : index
    %111 = vector.load %arg1[%c1_125, %c0_126, %c0_127] : memref<2x32x32xf32, #tpu.memory_space<vmem>>, vector<1x28x32xf32>
    %112 = vector.shape_cast %111 : vector<1x28x32xf32> to vector<28x32xf32>
    %c0_128 = arith.constant 0 : index
    %c0_129 = arith.constant 0 : index
    %c0_130 = arith.constant 0 : index
    %113 = vector.load %arg2[%c0_128, %c0_129, %c0_130] : memref<5x32x168xf32, #tpu.memory_space<vmem>>, vector<1x32x168xf32>
    %114 = vector.shape_cast %113 : vector<1x32x168xf32> to vector<32x168xf32>
    %cst_131 = arith.constant dense<0.000000e+00> : vector<28x168xf32>
    %115 = tpu.matmul %112, %114, %cst_131 {dimension_numbers = #tpu.dot_dimension_numbers<[1], [0], [0], [1], [0, 0, 1, 1], [], []>} : vector<28x32xf32>, vector<32x168xf32>, vector<28x168xf32> -> vector<28x168xf32>
    %c1_132 = arith.constant 1 : index
    %c1_133 = arith.constant 1 : index
    %c0_134 = arith.constant 0 : index
    %116 = vector.load %arg1[%c1_132, %c1_133, %c0_134] : memref<2x32x32xf32, #tpu.memory_space<vmem>>, vector<1x28x32xf32>
    %117 = vector.shape_cast %116 : vector<1x28x32xf32> to vector<28x32xf32>
    %c1_135 = arith.constant 1 : index
    %c0_136 = arith.constant 0 : index
    %c0_137 = arith.constant 0 : index
    %118 = vector.load %arg2[%c1_135, %c0_136, %c0_137] : memref<5x32x168xf32, #tpu.memory_space<vmem>>, vector<1x32x168xf32>
    %119 = vector.shape_cast %118 : vector<1x32x168xf32> to vector<32x168xf32>
    %cst_138 = arith.constant dense<0.000000e+00> : vector<28x168xf32>
    %120 = tpu.matmul %117, %119, %cst_138 {dimension_numbers = #tpu.dot_dimension_numbers<[1], [0], [0], [1], [0, 0, 1, 1], [], []>} : vector<28x32xf32>, vector<32x168xf32>, vector<28x168xf32> -> vector<28x168xf32>
    %121 = arith.addf %115, %120 : vector<28x168xf32>
    %c1_139 = arith.constant 1 : index
    %c2_140 = arith.constant 2 : index
    %c0_141 = arith.constant 0 : index
    %122 = vector.load %arg1[%c1_139, %c2_140, %c0_141] : memref<2x32x32xf32, #tpu.memory_space<vmem>>, vector<1x28x32xf32>
    %123 = vector.shape_cast %122 : vector<1x28x32xf32> to vector<28x32xf32>
    %c2_142 = arith.constant 2 : index
    %c0_143 = arith.constant 0 : index
    %c0_144 = arith.constant 0 : index
    %124 = vector.load %arg2[%c2_142, %c0_143, %c0_144] : memref<5x32x168xf32, #tpu.memory_space<vmem>>, vector<1x32x168xf32>
    %125 = vector.shape_cast %124 : vector<1x32x168xf32> to vector<32x168xf32>
    %cst_145 = arith.constant dense<0.000000e+00> : vector<28x168xf32>
    %126 = tpu.matmul %123, %125, %cst_145 {dimension_numbers = #tpu.dot_dimension_numbers<[1], [0], [0], [1], [0, 0, 1, 1], [], []>} : vector<28x32xf32>, vector<32x168xf32>, vector<28x168xf32> -> vector<28x168xf32>
    %127 = arith.addf %121, %126 : vector<28x168xf32>
    %c1_146 = arith.constant 1 : index
    %c3_147 = arith.constant 3 : index
    %c0_148 = arith.constant 0 : index
    %128 = vector.load %arg1[%c1_146, %c3_147, %c0_148] : memref<2x32x32xf32, #tpu.memory_space<vmem>>, vector<1x28x32xf32>
    %129 = vector.shape_cast %128 : vector<1x28x32xf32> to vector<28x32xf32>
    %c3_149 = arith.constant 3 : index
    %c0_150 = arith.constant 0 : index
    %c0_151 = arith.constant 0 : index
    %130 = vector.load %arg2[%c3_149, %c0_150, %c0_151] : memref<5x32x168xf32, #tpu.memory_space<vmem>>, vector<1x32x168xf32>
    %131 = vector.shape_cast %130 : vector<1x32x168xf32> to vector<32x168xf32>
    %cst_152 = arith.constant dense<0.000000e+00> : vector<28x168xf32>
    %132 = tpu.matmul %129, %131, %cst_152 {dimension_numbers = #tpu.dot_dimension_numbers<[1], [0], [0], [1], [0, 0, 1, 1], [], []>} : vector<28x32xf32>, vector<32x168xf32>, vector<28x168xf32> -> vector<28x168xf32>
    %133 = arith.addf %127, %132 : vector<28x168xf32>
    %c1_153 = arith.constant 1 : index
    %c4_154 = arith.constant 4 : index
    %c0_155 = arith.constant 0 : index
    %134 = vector.load %arg1[%c1_153, %c4_154, %c0_155] : memref<2x32x32xf32, #tpu.memory_space<vmem>>, vector<1x28x32xf32>
    %135 = vector.shape_cast %134 : vector<1x28x32xf32> to vector<28x32xf32>
    %c4_156 = arith.constant 4 : index
    %c0_157 = arith.constant 0 : index
    %c0_158 = arith.constant 0 : index
    %136 = vector.load %arg2[%c4_156, %c0_157, %c0_158] : memref<5x32x168xf32, #tpu.memory_space<vmem>>, vector<1x32x168xf32>
    %137 = vector.shape_cast %136 : vector<1x32x168xf32> to vector<32x168xf32>
    %cst_159 = arith.constant dense<0.000000e+00> : vector<28x168xf32>
    %138 = tpu.matmul %135, %137, %cst_159 {dimension_numbers = #tpu.dot_dimension_numbers<[1], [0], [0], [1], [0, 0, 1, 1], [], []>} : vector<28x32xf32>, vector<32x168xf32>, vector<28x168xf32> -> vector<28x168xf32>
    %139 = arith.addf %133, %138 : vector<28x168xf32>
    %c0_160 = arith.constant 0 : index
    %c0_161 = arith.constant 0 : index
    %140 = vector.load %arg3[%c0_160, %c0_161] : memref<1x168xf32, #tpu.memory_space<vmem>>, vector<1x168xf32>
    %141 = vector.broadcast %140 : vector<1x168xf32> to vector<28x168xf32>
    %142 = arith.addf %139, %141 : vector<28x168xf32>
    %cst_162 = arith.constant 0.000000e+00 : f32
    %143 = vector.broadcast %cst_162 : f32 to vector<28x168xf32>
    %144 = arith.maximumf %142, %143 : vector<28x168xf32>
    %c0_163 = arith.constant 0 : index
    %c0_164 = arith.constant 0 : index
    %145 = vector.load %arg4[%c0_163, %c0_164] : memref<14x28xf32, #tpu.memory_space<vmem>>, vector<14x28xf32>
    %cst_165 = arith.constant dense<0.000000e+00> : vector<14x168xf32>
    %146 = tpu.matmul %145, %144, %cst_165 {dimension_numbers = #tpu.dot_dimension_numbers<[1], [0], [0], [1], [0, 0, 1, 1], [], []>} : vector<14x28xf32>, vector<28x168xf32>, vector<14x168xf32> -> vector<14x168xf32>
    %c0_166 = arith.constant 0 : index
    %c0_167 = arith.constant 0 : index
    %147 = vector.load %arg5[%c0_166, %c0_167] : memref<168x84xf32, #tpu.memory_space<vmem>>, vector<168x84xf32>
    %cst_168 = arith.constant dense<0.000000e+00> : vector<14x84xf32>
    %148 = tpu.matmul %146, %147, %cst_168 {dimension_numbers = #tpu.dot_dimension_numbers<[1], [0], [0], [1], [0, 0, 1, 1], [], []>} : vector<14x168xf32>, vector<168x84xf32>, vector<14x84xf32> -> vector<14x84xf32>
    %c0_169 = arith.constant 0 : index
    %c0_170 = arith.constant 0 : index
    %149 = vector.load %arg17[%c0_169, %c0_170] : memref<14x84xf32, #tpu.memory_space<vmem>>, vector<14x84xf32>
    tpu.vector_store %arg17[%c0_169, %c0_170], %148 {strides = array<i32>} : memref<14x84xf32, #tpu.memory_space<vmem>>, vector<14x84xf32>,
    %c0_171 = arith.constant 0 : index
    %c0_172 = arith.constant 0 : index
    %150 = vector.load %arg17[%c0_171, %c0_172] : memref<14x84xf32, #tpu.memory_space<vmem>>, vector<10x84xf32>
    %c0_173 = arith.constant 0 : index
    %c0_174 = arith.constant 0 : index
    %c0_175 = arith.constant 0 : index
    %151 = vector.load %arg6[%c0_173, %c0_174, %c0_175] : memref<5x84x160xf32, #tpu.memory_space<vmem>>, vector<1x84x160xf32>
    %152 = vector.shape_cast %151 : vector<1x84x160xf32> to vector<84x160xf32>
    %cst_176 = arith.constant dense<0.000000e+00> : vector<10x160xf32>
    %153 = tpu.matmul %150, %152, %cst_176 {dimension_numbers = #tpu.dot_dimension_numbers<[1], [0], [0], [1], [0, 0, 1, 1], [], []>} : vector<10x84xf32>, vector<84x160xf32>, vector<10x160xf32> -> vector<10x160xf32>
    %c1_177 = arith.constant 1 : index
    %c0_178 = arith.constant 0 : index
    %154 = vector.load %arg17[%c1_177, %c0_178] : memref<14x84xf32, #tpu.memory_space<vmem>>, vector<10x84xf32>
    %c1_179 = arith.constant 1 : index
    %c0_180 = arith.constant 0 : index
    %c0_181 = arith.constant 0 : index
    %155 = vector.load %arg6[%c1_179, %c0_180, %c0_181] : memref<5x84x160xf32, #tpu.memory_space<vmem>>, vector<1x84x160xf32>
    %156 = vector.shape_cast %155 : vector<1x84x160xf32> to vector<84x160xf32>
    %cst_182 = arith.constant dense<0.000000e+00> : vector<10x160xf32>
    %157 = tpu.matmul %154, %156, %cst_182 {dimension_numbers = #tpu.dot_dimension_numbers<[1], [0], [0], [1], [0, 0, 1, 1], [], []>} : vector<10x84xf32>, vector<84x160xf32>, vector<10x160xf32> -> vector<10x160xf32>
    %158 = arith.addf %153, %157 : vector<10x160xf32>
    %c2_183 = arith.constant 2 : index
    %c0_184 = arith.constant 0 : index
    %159 = vector.load %arg17[%c2_183, %c0_184] : memref<14x84xf32, #tpu.memory_space<vmem>>, vector<10x84xf32>
    %c2_185 = arith.constant 2 : index
    %c0_186 = arith.constant 0 : index
    %c0_187 = arith.constant 0 : index
    %160 = vector.load %arg6[%c2_185, %c0_186, %c0_187] : memref<5x84x160xf32, #tpu.memory_space<vmem>>, vector<1x84x160xf32>
    %161 = vector.shape_cast %160 : vector<1x84x160xf32> to vector<84x160xf32>
    %cst_188 = arith.constant dense<0.000000e+00> : vector<10x160xf32>
    %162 = tpu.matmul %159, %161, %cst_188 {dimension_numbers = #tpu.dot_dimension_numbers<[1], [0], [0], [1], [0, 0, 1, 1], [], []>} : vector<10x84xf32>, vector<84x160xf32>, vector<10x160xf32> -> vector<10x160xf32>
    %163 = arith.addf %158, %162 : vector<10x160xf32>
    %c3_189 = arith.constant 3 : index
    %c0_190 = arith.constant 0 : index
    %164 = vector.load %arg17[%c3_189, %c0_190] : memref<14x84xf32, #tpu.memory_space<vmem>>, vector<10x84xf32>
    %c3_191 = arith.constant 3 : index
    %c0_192 = arith.constant 0 : index
    %c0_193 = arith.constant 0 : index
    %165 = vector.load %arg6[%c3_191, %c0_192, %c0_193] : memref<5x84x160xf32, #tpu.memory_space<vmem>>, vector<1x84x160xf32>
    %166 = vector.shape_cast %165 : vector<1x84x160xf32> to vector<84x160xf32>
    %cst_194 = arith.constant dense<0.000000e+00> : vector<10x160xf32>
    %167 = tpu.matmul %164, %166, %cst_194 {dimension_numbers = #tpu.dot_dimension_numbers<[1], [0], [0], [1], [0, 0, 1, 1], [], []>} : vector<10x84xf32>, vector<84x160xf32>, vector<10x160xf32> -> vector<10x160xf32>
    %168 = arith.addf %163, %167 : vector<10x160xf32>
    %c4_195 = arith.constant 4 : index
    %c0_196 = arith.constant 0 : index
    %169 = vector.load %arg17[%c4_195, %c0_196] : memref<14x84xf32, #tpu.memory_space<vmem>>, vector<10x84xf32>
    %c4_197 = arith.constant 4 : index
    %c0_198 = arith.constant 0 : index
    %c0_199 = arith.constant 0 : index
    %170 = vector.load %arg6[%c4_197, %c0_198, %c0_199] : memref<5x84x160xf32, #tpu.memory_space<vmem>>, vector<1x84x160xf32>
    %171 = vector.shape_cast %170 : vector<1x84x160xf32> to vector<84x160xf32>
    %cst_200 = arith.constant dense<0.000000e+00> : vector<10x160xf32>
    %172 = tpu.matmul %169, %171, %cst_200 {dimension_numbers = #tpu.dot_dimension_numbers<[1], [0], [0], [1], [0, 0, 1, 1], [], []>} : vector<10x84xf32>, vector<84x160xf32>, vector<10x160xf32> -> vector<10x160xf32>
    %173 = arith.addf %168, %172 : vector<10x160xf32>
    %c0_201 = arith.constant 0 : index
    %c0_202 = arith.constant 0 : index
    %174 = vector.load %arg7[%c0_201, %c0_202] : memref<1x160xf32, #tpu.memory_space<vmem>>, vector<1x160xf32>
    %175 = vector.broadcast %174 : vector<1x160xf32> to vector<10x160xf32>
    %176 = arith.addf %173, %175 : vector<10x160xf32>
    %cst_203 = arith.constant 0.000000e+00 : f32
    %177 = vector.broadcast %cst_203 : f32 to vector<10x160xf32>
    %178 = arith.maximumf %176, %177 : vector<10x160xf32>
    %c0_204 = arith.constant 0 : index
    %c0_205 = arith.constant 0 : index
    %179 = vector.load %arg8[%c0_204, %c0_205] : memref<5x10xf32, #tpu.memory_space<vmem>>, vector<5x10xf32>
    %cst_206 = arith.constant dense<0.000000e+00> : vector<5x160xf32>
    %180 = tpu.matmul %179, %178, %cst_206 {dimension_numbers = #tpu.dot_dimension_numbers<[1], [0], [0], [1], [0, 0, 1, 1], [], []>} : vector<5x10xf32>, vector<10x160xf32>, vector<5x160xf32> -> vector<5x160xf32>
    %c0_207 = arith.constant 0 : index
    %c0_208 = arith.constant 0 : index
    %181 = vector.load %arg9[%c0_207, %c0_208] : memref<160x80xf32, #tpu.memory_space<vmem>>, vector<160x80xf32>
    %cst_209 = arith.constant dense<0.000000e+00> : vector<5x80xf32>
    %182 = tpu.matmul %180, %181, %cst_209 {dimension_numbers = #tpu.dot_dimension_numbers<[1], [0], [0], [1], [0, 0, 1, 1], [], []>} : vector<5x160xf32>, vector<160x80xf32>, vector<5x80xf32> -> vector<5x80xf32>
    %c0_210 = arith.constant 0 : index
    %c0_211 = arith.constant 0 : index
    %183 = vector.load %arg18[%c0_210, %c0_211] : memref<5x80xf32, #tpu.memory_space<vmem>>, vector<5x80xf32>
    tpu.vector_store %arg18[%c0_210, %c0_211], %182 {strides = array<i32>} : memref<5x80xf32, #tpu.memory_space<vmem>>, vector<5x80xf32>,
    %c0_212 = arith.constant 0 : index
    %c0_213 = arith.constant 0 : index
    %184 = vector.load %arg18[%c0_212, %c0_213] : memref<5x80xf32, #tpu.memory_space<vmem>>, vector<1x80xf32>
    %c0_214 = arith.constant 0 : index
    %c0_215 = arith.constant 0 : index
    %c0_216 = arith.constant 0 : index
    %185 = vector.load %arg10[%c0_214, %c0_215, %c0_216] : memref<5x80x120xf32, #tpu.memory_space<vmem>>, vector<1x80x120xf32>
    %186 = vector.shape_cast %185 : vector<1x80x120xf32> to vector<80x120xf32>
    %cst_217 = arith.constant dense<0.000000e+00> : vector<1x120xf32>
    %187 = tpu.matmul %184, %186, %cst_217 {dimension_numbers = #tpu.dot_dimension_numbers<[1], [0], [0], [1], [0, 0, 1, 1], [], []>} : vector<1x80xf32>, vector<80x120xf32>, vector<1x120xf32> -> vector<1x120xf32>
    %c1_218 = arith.constant 1 : index
    %c0_219 = arith.constant 0 : index
    %188 = vector.load %arg18[%c1_218, %c0_219] : memref<5x80xf32, #tpu.memory_space<vmem>>, vector<1x80xf32>
    %c1_220 = arith.constant 1 : index
    %c0_221 = arith.constant 0 : index
    %c0_222 = arith.constant 0 : index
    %189 = vector.load %arg10[%c1_220, %c0_221, %c0_222] : memref<5x80x120xf32, #tpu.memory_space<vmem>>, vector<1x80x120xf32>
    %190 = vector.shape_cast %189 : vector<1x80x120xf32> to vector<80x120xf32>
    %cst_223 = arith.constant dense<0.000000e+00> : vector<1x120xf32>
    %191 = tpu.matmul %188, %190, %cst_223 {dimension_numbers = #tpu.dot_dimension_numbers<[1], [0], [0], [1], [0, 0, 1, 1], [], []>} : vector<1x80xf32>, vector<80x120xf32>, vector<1x120xf32> -> vector<1x120xf32>
    %192 = arith.addf %187, %191 : vector<1x120xf32>
    %c2_224 = arith.constant 2 : index
    %c0_225 = arith.constant 0 : index
    %193 = vector.load %arg18[%c2_224, %c0_225] : memref<5x80xf32, #tpu.memory_space<vmem>>, vector<1x80xf32>
    %c2_226 = arith.constant 2 : index
    %c0_227 = arith.constant 0 : index
    %c0_228 = arith.constant 0 : index
    %194 = vector.load %arg10[%c2_226, %c0_227, %c0_228] : memref<5x80x120xf32, #tpu.memory_space<vmem>>, vector<1x80x120xf32>
    %195 = vector.shape_cast %194 : vector<1x80x120xf32> to vector<80x120xf32>
    %cst_229 = arith.constant dense<0.000000e+00> : vector<1x120xf32>
    %196 = tpu.matmul %193, %195, %cst_229 {dimension_numbers = #tpu.dot_dimension_numbers<[1], [0], [0], [1], [0, 0, 1, 1], [], []>} : vector<1x80xf32>, vector<80x120xf32>, vector<1x120xf32> -> vector<1x120xf32>
    %197 = arith.addf %192, %196 : vector<1x120xf32>
    %c3_230 = arith.constant 3 : index
    %c0_231 = arith.constant 0 : index
    %198 = vector.load %arg18[%c3_230, %c0_231] : memref<5x80xf32, #tpu.memory_space<vmem>>, vector<1x80xf32>
    %c3_232 = arith.constant 3 : index
    %c0_233 = arith.constant 0 : index
    %c0_234 = arith.constant 0 : index
    %199 = vector.load %arg10[%c3_232, %c0_233, %c0_234] : memref<5x80x120xf32, #tpu.memory_space<vmem>>, vector<1x80x120xf32>
    %200 = vector.shape_cast %199 : vector<1x80x120xf32> to vector<80x120xf32>
    %cst_235 = arith.constant dense<0.000000e+00> : vector<1x120xf32>
    %201 = tpu.matmul %198, %200, %cst_235 {dimension_numbers = #tpu.dot_dimension_numbers<[1], [0], [0], [1], [0, 0, 1, 1], [], []>} : vector<1x80xf32>, vector<80x120xf32>, vector<1x120xf32> -> vector<1x120xf32>
    %202 = arith.addf %197, %201 : vector<1x120xf32>
    %c4_236 = arith.constant 4 : index
    %c0_237 = arith.constant 0 : index
    %203 = vector.load %arg18[%c4_236, %c0_237] : memref<5x80xf32, #tpu.memory_space<vmem>>, vector<1x80xf32>
    %c4_238 = arith.constant 4 : index
    %c0_239 = arith.constant 0 : index
    %c0_240 = arith.constant 0 : index
    %204 = vector.load %arg10[%c4_238, %c0_239, %c0_240] : memref<5x80x120xf32, #tpu.memory_space<vmem>>, vector<1x80x120xf32>
    %205 = vector.shape_cast %204 : vector<1x80x120xf32> to vector<80x120xf32>
    %cst_241 = arith.constant dense<0.000000e+00> : vector<1x120xf32>
    %206 = tpu.matmul %203, %205, %cst_241 {dimension_numbers = #tpu.dot_dimension_numbers<[1], [0], [0], [1], [0, 0, 1, 1], [], []>} : vector<1x80xf32>, vector<80x120xf32>, vector<1x120xf32> -> vector<1x120xf32>
    %207 = arith.addf %202, %206 : vector<1x120xf32>
    %c0_242 = arith.constant 0 : index
    %c0_243 = arith.constant 0 : index
    %208 = vector.load %arg11[%c0_242, %c0_243] : memref<1x120xf32, #tpu.memory_space<vmem>>, vector<1x120xf32>
    %209 = arith.addf %207, %208 : vector<1x120xf32>
    %cst_244 = arith.constant 0.000000e+00 : f32
    %210 = vector.broadcast %cst_244 : f32 to vector<1x120xf32>
    %211 = arith.maximumf %209, %210 : vector<1x120xf32>
    %c0_245 = arith.constant 0 : index
    %c0_246 = arith.constant 0 : index
    %212 = vector.load %arg12[%c0_245, %c0_246] : memref<120x84xf32, #tpu.memory_space<vmem>>, vector<120x84xf32>
    %cst_247 = arith.constant dense<0.000000e+00> : vector<1x84xf32>
    %213 = tpu.matmul %211, %212, %cst_247 {dimension_numbers = #tpu.dot_dimension_numbers<[1], [0], [0], [1], [0, 0, 1, 1], [], []>} : vector<1x120xf32>, vector<120x84xf32>, vector<1x84xf32> -> vector<1x84xf32>
    %c0_248 = arith.constant 0 : index
    %c0_249 = arith.constant 0 : index
    %214 = vector.load %arg13[%c0_248, %c0_249] : memref<1x84xf32, #tpu.memory_space<vmem>>, vector<1x84xf32>
    %215 = arith.addf %213, %214 : vector<1x84xf32>
    %cst_250 = arith.constant 0.000000e+00 : f32
    %216 = vector.broadcast %cst_250 : f32 to vector<1x84xf32>
    %217 = arith.maximumf %215, %216 : vector<1x84xf32>
    %c0_251 = arith.constant 0 : index
    %c0_252 = arith.constant 0 : index
    %218 = vector.load %arg14[%c0_251, %c0_252] : memref<84x10xf32, #tpu.memory_space<vmem>>, vector<84x10xf32>
    %cst_253 = arith.constant dense<0.000000e+00> : vector<1x10xf32>
    %219 = tpu.matmul %217, %218, %cst_253 {dimension_numbers = #tpu.dot_dimension_numbers<[1], [0], [0], [1], [0, 0, 1, 1], [], []>} : vector<1x84xf32>, vector<84x10xf32>, vector<1x10xf32> -> vector<1x10xf32>
    %c0_254 = arith.constant 0 : index
    %c0_255 = arith.constant 0 : index
    %220 = vector.load %arg15[%c0_254, %c0_255] : memref<1x10xf32, #tpu.memory_space<vmem>>, vector<1x10xf32>
    %221 = arith.addf %219, %220 : vector<1x10xf32>
    %222 = tpu.concatenate %110, %221 in 0 : vector<1x10xf32>, vector<1x10xf32> -> vector<2x10xf32>
    %223 = vector.shape_cast %222 : vector<2x10xf32> to vector<1x2x10xf32>
    %c0_256 = arith.constant 0 : index
    %c0_257 = arith.constant 0 : index
    %c0_258 = arith.constant 0 : index
    %224 = vector.load %arg16[%c0_256, %c0_257, %c0_258] : memref<1x2x10xf32, #tpu.memory_space<vmem>>, vector<1x2x10xf32>
    tpu.vector_store %arg16[%c0_256, %c0_257, %c0_258], %223 {strides = array<i32>} : memref<1x2x10xf32, #tpu.memory_space<vmem>>, vector<1x2x10xf32>,
    return
  }
  func.func @transform_0(%arg0: i32) -> (i32, i32, i32) {
    %c0_i32 = arith.constant 0 : i32
    %c0_i32_0 = arith.constant 0 : i32
    %c0_i32_1 = arith.constant 0 : i32
    return %arg0, %c0_i32, %c0_i32_0 : i32, i32, i32
  }
  func.func @transform_1(%arg0: i32) -> (i32, i32, i32) {
    %c0_i32 = arith.constant 0 : i32
    %c0_i32_0 = arith.constant 0 : i32
    %c0_i32_1 = arith.constant 0 : i32
    %c0_i32_2 = arith.constant 0 : i32
    return %c0_i32, %c0_i32_0, %c0_i32_1 : i32, i32, i32
  }
  func.func @transform_2(%arg0: i32) -> (i32, i32) {
    %c0_i32 = arith.constant 0 : i32
    %c0_i32_0 = arith.constant 0 : i32
    %c0_i32_1 = arith.constant 0 : i32
    return %c0_i32, %c0_i32_0 : i32, i32
  }
  func.func @transform_3(%arg0: i32) -> (i32, i32) {
    %c0_i32 = arith.constant 0 : i32
    %c0_i32_0 = arith.constant 0 : i32
    %c0_i32_1 = arith.constant 0 : i32
    return %c0_i32, %c0_i32_0 : i32, i32
  }
  func.func @transform_4(%arg0: i32) -> (i32, i32) {
    %c0_i32 = arith.constant 0 : i32
    %c0_i32_0 = arith.constant 0 : i32
    %c0_i32_1 = arith.constant 0 : i32
    return %c0_i32, %c0_i32_0 : i32, i32
  }
  func.func @transform_5(%arg0: i32) -> (i32, i32, i32) {
    %c0_i32 = arith.constant 0 : i32
    %c0_i32_0 = arith.constant 0 : i32
    %c0_i32_1 = arith.constant 0 : i32
    %c0_i32_2 = arith.constant 0 : i32
    return %c0_i32, %c0_i32_0, %c0_i32_1 : i32, i32, i32
  }
  func.func @transform_6(%arg0: i32) -> (i32, i32) {
    %c0_i32 = arith.constant 0 : i32
    %c0_i32_0 = arith.constant 0 : i32
    %c0_i32_1 = arith.constant 0 : i32
    return %c0_i32, %c0_i32_0 : i32, i32
  }
  func.func @transform_7(%arg0: i32) -> (i32, i32) {
    %c0_i32 = arith.constant 0 : i32
    %c0_i32_0 = arith.constant 0 : i32
    %c0_i32_1 = arith.constant 0 : i32
    return %c0_i32, %c0_i32_0 : i32, i32
  }
  func.func @transform_8(%arg0: i32) -> (i32, i32) {
    %c0_i32 = arith.constant 0 : i32
    %c0_i32_0 = arith.constant 0 : i32
    %c0_i32_1 = arith.constant 0 : i32
    return %c0_i32, %c0_i32_0 : i32, i32
  }
  func.func @transform_9(%arg0: i32) -> (i32, i32, i32) {
    %c0_i32 = arith.constant 0 : i32
    %c0_i32_0 = arith.constant 0 : i32
    %c0_i32_1 = arith.constant 0 : i32
    %c0_i32_2 = arith.constant 0 : i32
    return %c0_i32, %c0_i32_0, %c0_i32_1 : i32, i32, i32
  }
  func.func @transform_10(%arg0: i32) -> (i32, i32) {
    %c0_i32 = arith.constant 0 : i32
    %c0_i32_0 = arith.constant 0 : i32
    %c0_i32_1 = arith.constant 0 : i32
    return %c0_i32, %c0_i32_0 : i32, i32
  }
  func.func @transform_11(%arg0: i32) -> (i32, i32) {
    %c0_i32 = arith.constant 0 : i32
    %c0_i32_0 = arith.constant 0 : i32
    %c0_i32_1 = arith.constant 0 : i32
    return %c0_i32, %c0_i32_0 : i32, i32
  }
  func.func @transform_12(%arg0: i32) -> (i32, i32) {
    %c0_i32 = arith.constant 0 : i32
    %c0_i32_0 = arith.constant 0 : i32
    %c0_i32_1 = arith.constant 0 : i32
    return %c0_i32, %c0_i32_0 : i32, i32
  }
  func.func @transform_13(%arg0: i32) -> (i32, i32) {
    %c0_i32 = arith.constant 0 : i32
    %c0_i32_0 = arith.constant 0 : i32
    %c0_i32_1 = arith.constant 0 : i32
    return %c0_i32, %c0_i32_0 : i32, i32
  }
  func.func @transform_14(%arg0: i32) -> (i32, i32) {
    %c0_i32 = arith.constant 0 : i32
    %c0_i32_0 = arith.constant 0 : i32
    %c0_i32_1 = arith.constant 0 : i32
    return %c0_i32, %c0_i32_0 : i32, i32
  }
  func.func @transform_15(%arg0: i32) -> (i32, i32, i32) {
    %c0_i32 = arith.constant 0 : i32
    %c0_i32_0 = arith.constant 0 : i32
    %c0_i32_1 = arith.constant 0 : i32
    return %arg0, %c0_i32, %c0_i32_0 : i32, i32, i32
  }
}

</mosaic_0001>

<bundles_post_ra>
// kernel: lenet_forward.1
= control target key start
LH: loop header
LB: loop body
LE: loop exit
PB: predicated region body
PF: predicated region fallthrough
CT: control target
= control target key end

     0   :  { %20 = vsyncpa [#allocation5], 0  ;;  %s9062_s0 = inlined_call_operand.vmem [shape: f32[8,32,32], index: 0, kind: input, shape index: {}]   ;;  %s9063_s1 = inlined_call_operand.vmem [shape: f32[5,32,168], index: 1, kind: input, shape index: {}]   ;;  %s9064_s2 = inlined_call_operand.vmem [shape: f32[1,168], index: 2, kind: input, shape index: {}]   ;;  %s9065_s3 = inlined_call_operand.vmem [shape: f32[14,28], index: 3, kind: input, shape index: {}]   ;;  %s9066_s4 = inlined_call_operand.vmem [shape: f32[168,84], index: 4, kind: input, shape index: {}]   ;;  %s9067_s5 = inlined_call_operand.vmem [shape: f32[5,84,160], index: 5, kind: input, shape index: {}]   ;;  %s9068_s6 = inlined_call_operand.vmem [shape: f32[1,160], index: 6, kind: input, shape index: {}]   ;;  %s9069_s7 = inlined_call_operand.vmem [shape: f32[5,10], index: 7, kind: input, shape index: {}]   ;;  %s9070_s8 = inlined_call_operand.vmem [shape: f32[160,80], index: 8, kind: input, shape index: {}]   ;;  %s9071_s9 = inlined_call_operand.vmem [shape: f32[5,80,120], index: 9, kind: input, shape index: {}]   ;;  %s9072_s10 = inlined_call_operand.vmem [shape: f32[1,120], index: 10, kind: input, shape index: {}]   ;;  %s9073_s11 = inlined_call_operand.vmem [shape: f32[120,84], index: 11, kind: input, shape index: {}]   ;;  %s9074_s12 = inlined_call_operand.vmem [shape: f32[1,84], index: 12, kind: input, shape index: {}]   ;;  %s9075_s13 = inlined_call_operand.vmem [shape: f32[84,10], index: 13, kind: input, shape index: {}]   ;;  %s9076_s14 = inlined_call_operand.vmem [shape: f32[1,10], index: 14, kind: input, shape index: {}]   ;;  %s9077_s15 = inlined_call_operand.hbm [shape: f32[4,2,10], index: 15, kind: output, shape index: {}]  }
   0x1   :  { %22 = vsyncpa [#allocation5 + $0x1], 0  ;;  %s6901_s18 = smov 0   ;;  %s6903_s19 = smov 0  }
   0x2   :  { %s6905_s20 = smov 0   ;;  %s6907_s21 = smov 0  }
   0x3 LB: > { %9084 = sst [smem:[#allocation7_spill]] %s6802_s18  ;;  %s6922_s22 = sadd.s32 4294967295, %s6814_s21   ;;  %s6814_s21 = sphi %s6907_s21, %s9099_s21   ;;  %s6810_s20 = sphi %s6905_s20, %s9101_s20   ;;  %s6806_s19 = sphi %s6903_s19, %s9103_s19   ;;  %s6802_s18 = sphi %s6901_s18, %s9102_s18  }
   0x4   : > { %9085 = sst [smem:[#allocation8_spill]] %s6810_s20  ;;  %s4978_s23 = sadd.s32 4294967294, %s6814_s21  }
   0x5   : > { %9086 = sst [smem:[#allocation9_spill]] %s6814_s21  ;;  %s6926_s24 = sadd.s32 1, %s6814_s21  }
   0x6   : > { %9087 = sst [smem:[#allocation10_spill]] %s6926_s24  ;;  %s355_s25 = sadd.s32 1, %s6810_s20 }
   0x7   : > { %s352_s26 = ssub.s32 %s6814_s21, %s6926_s24  ;;  %p365_p0 = scmp.ne.s32.totalorder %s6810_s20, %s6806_s19 }
   0x8   : > { %p353_p1 = scmp.eq.s32.totalorder %s352_s26, 0  ;;  %p366_p2 = scmp.eq.s32.totalorder %s6922_s22, 3 }
   0x9   : > { %p371_p3 = scmp.ne.s32.totalorder %s6806_s19, %s6802_s18  ;;  %p372_p4 = scmp.eq.s32.totalorder %s4978_s23, 3 }
   0xa   : > { %s6937_s27 = scalar_select %p353_p1, %s6810_s20, %s355_s25  }
   0xb   : > { %p6939_p5 = por %p366_p2, %p365_p0  ;;  %p6943_p6 = por %p372_p4, %p371_p3 }
   0xc   : > { %9088 = sst [smem:[#allocation11_spill]] %s6937_s27  ;;  %p4981_p7 = scmp.ge.s32.totalorder %s6814_s21, 1 }
   0xd   : > { %s9090_s29 = scalar_select %p6943_p6, 1, 0 }
   0xe   : > { %p442_p8 = scmp.lt.s32.totalorder %s6814_s21, 5 }
   0xf   : > { %9091 = sst [smem:[#allocation12_spill]] %s9090_s29 }
  0x10   : > { %p443_p9 = pnand %p4981_p7, %p442_p8 }
  0x11   : > { %v4987_v0 = vld [vmem:[%s9063_s1 + $0x48] sm:$0xff] (!%p443_p9)  ;;  %v4989_v1 = vld [vmem:[%s9063_s1 + $0x58] sm:$0xff] (!%p443_p9)  ;;  %v4986_v2 = vld [vmem:[%s9063_s1 + $0x40] sm:$0xff] (!%p443_p9)  ;;  %s4983_s27 = sshll.u32 (!%p443_p9), %s6922_s22, 1  ;;  %v6816_v7 = vmov (!%p443_p9), 0.0   ;;  %vm523_vm0 = vcmask (!%p443_p9), 261120  }
  0x12   : > { %446 = sbr.rel (%p443_p9) target bundleno = 3976 (0xf88), region = 80  ;;  %v5959_v3 = vpack.c.bf16 (!%p443_p9), %v4989_v1, %v4987_v0  ;;  %v4988_v4 = vld [vmem:[%s9063_s1 + $0x50] sm:$0xff] (!%p443_p9)  ;;  %v4991_v5 = vld [vmem:[%s9063_s1 + $0x68] sm:$0xff] (!%p443_p9)  ;;  %v4993_v6 = vld [vmem:[%s9063_s1 + $0x78] sm:$0xff] (!%p443_p9)  ;;  %600 = vmatprep.mubr.f32.mxu0 (!%p443_p9), %v6816_v7  ;;  %p492_p10 = scmp.lt.s32.totalorder (!%p443_p9), %s4983_s27, 7  ;;  %1200 = vmatprep.mubr.f32.mxu1 (!%p443_p9), %v6816_v7  ;;  %vm1129_vm1 = vcmask (!%p443_p9), 1043456  }
  0x13   : > { %v5961_v8 = vpack.c.bf16 (!%p443_p9), %v4988_v4, %v4986_v2  ;;  %v5963_v9 = vpack.c.bf16 (!%p443_p9), %v4993_v6, %v4991_v5  ;;  %v4990_v10 = vld [vmem:[%s9063_s1 + $0x60] sm:$0xff] (!%p443_p9)  ;;  %v4992_v11 = vld [vmem:[%s9063_s1 + $0x70] sm:$0xff] (!%p443_p9)  ;;  %v503_v12 = vld [vmem:[%s9063_s1 + $0x8] sm:$0xff] (!%p443_p9)  ;;  %vm6817_vm2 = vmmov (!%p443_p9), 1   ;;  %vm1122_vm4 = vcmask (!%p443_p9), 228352   ;;  %s488_s24 = sand.u32 (!%p443_p9), 1, %s6806_s19  }
  0x14   : > { %5960 = vmatprep.subr.bf16.mxu0 (!%p443_p9), %v5959_v3  ;;  %v505_v13 = vld [vmem:[%s9063_s1 + $0x18] sm:$0xff] (!%p443_p9)  ;;  %v5965_v14 = vpack.c.bf16 (!%p443_p9), %v4992_v11, %v4990_v10  ;;  %v502_v16 = vld [vmem:[%s9063_s1] sm:$0xff] (!%p443_p9)  ;;  %v504_v17 = vld [vmem:[%s9063_s1 + $0x10] sm:$0xff] (!%p443_p9)  ;;  %vm1234_vm5 = vcmask (!%p443_p9), 326656   ;;  %vm1316_vm6 = vcmask (!%p443_p9), 687104   ;;  %vm1318_vm7 = vcmask (!%p443_p9), 685056  }
  0x15   : > { %5962 = vmatpush1.bf16.msra.mxu0 (!%p443_p9), %v5961_v8  ;;  %v5967_v15 = vpack.c.bf16 (!%p443_p9), %v505_v13, %v503_v12  ;;  %v507_v18 = vld [vmem:[%s9063_s1 + $0x28] sm:$0xff] (!%p443_p9)  ;;  %v509_v19 = vld [vmem:[%s9063_s1 + $0x38] sm:$0xff] (!%p443_p9)  ;;  %v5969_v21 = vpack.c.bf16 (!%p443_p9), %v504_v17, %v502_v16  ;;  %v506_v23 = vld [vmem:[%s9063_s1 + $0x20] sm:$0xff] (!%p443_p9)  ;;  %vm1926_vm8 = vcmask (!%p443_p9), 1041408   ;;  %vm1922_vm10 = vcmask (!%p443_p9), 80896   ;;  %s4982_s21 = sshll.u32 (!%p443_p9), %s488_s24, 1 }
  0x16   : > { %5964 = vmatprep.subr.bf16.mxu0 (!%p443_p9), %v5963_v9  ;;  %v5971_v22 = vpack.c.bf16 (!%p443_p9), %v509_v19, %v507_v18  ;;  %v508_v24 = vld [vmem:[%s9063_s1 + $0x30] sm:$0xff] (!%p443_p9)  ;;  %v5003_v25 = vld [vmem:[%s9063_s1 + $0x88] sm:$0xff] (!%p443_p9)  ;;  %v5005_v26 = vld [vmem:[%s9063_s1 + $0x98] sm:$0xff] (!%p443_p9)  ;;  %v1094_v18 = vlaneseq (!%p443_p9)  ;;  %vm6819_vm11 = vmmov (!%p443_p9), 0   ;;  %vm2097_vm12 = vcmask (!%p443_p9), 651264   ;;  %s5443_s16 = sshll.u32 (!%p443_p9), %s6922_s22, 5 }
  0x17   : > { %v5973_v28 = vpack.c.bf16 (!%p443_p9), %v508_v24, %v506_v23  ;;  %v5975_v29 = vpack.c.bf16 (!%p443_p9), %v5005_v26, %v5003_v25  ;;  %v5002_v32 = vld [vmem:[%s9063_s1 + $0x80] sm:$0xff] (!%p443_p9)  ;;  %v5004_v33 = vld [vmem:[%s9063_s1 + $0x90] sm:$0xff] (!%p443_p9)  ;;  %v5007_v34 = vld [vmem:[%s9063_s1 + $0xa8] sm:$0xff] (!%p443_p9)  ;;  %vm2122_vm13 = vcmask (!%p443_p9), 654336   ;;  %vm2546_vm14 = vcmask (!%p443_p9), 982016   ;;  %s9020_s20 = scalar_lea.hbm (!%p443_p9), %s9077_s15, %s5443_s16  ;;  %s4906_s22 = scalar_lea.sflag (!%p443_p9), [#allocation5], %s488_s24 }
  0x18   : > { %v5009_v35 = vld [vmem:[%s9063_s1 + $0xb8] sm:$0xff] (!%p443_p9)  ;;  %v5977_v37 = vpack.c.bf16 (!%p443_p9), %v5004_v33, %v5002_v32  ;;  %v5006_v39 = vld [vmem:[%s9063_s1 + $0xa0] sm:$0xff] (!%p443_p9)  ;;  %v5008_v40 = vld [vmem:[%s9063_s1 + $0xb0] sm:$0xff] (!%p443_p9)  ;;  %v1095_v19 = vshrl.u32 (!%p443_p9), %v1094_v18, 7  ;;  %vm4901_vm15 = vcmask (!%p443_p9), 1040384   ;;  %s6820_s18 = smov (!%p443_p9), [#allocation4]  }
  0x19   : > { %s9105_s27 = smov (!%p492_p10, %s4983_s27), 7  ;;  %5966 = vmatpush1.bf16.msra.mxu0 %v5965_v14  ;;  %v5979_v38 = vpack.c.bf16 %v5009_v35, %v5007_v34  ;;  %v5015_v41 = vld [vmem:[%s9063_s1 + $0xc8] sm:$0xff]  ;;  %v5017_v42 = vld [vmem:[%s9063_s1 + $0xd8] sm:$0xff]  ;;  %v5981_v44 = vpack.c.bf16 %v5008_v40, %v5006_v39  ;;  %v5014_v48 = vld [vmem:[%s9063_s1 + $0xc0] sm:$0xff]  ;;  %s6756_s25 = sshll.u32 %s6820_s18, 4  ;;  %s6757_s25 = int_to_ptr.vmem [resolvable:$false] %s6756_s25 }
  0x1a   : > { %s5446_s30 = sshll.u32 %s9105_s27, 5  ;;  %5968 = vmatprep.subr.bf16.mxu0 %v5967_v15  ;;  %v5983_v45 = vpack.c.bf16 %v5017_v42, %v5015_v41  ;;  %v5016_v49 = vld [vmem:[%s9063_s1 + $0xd0] sm:$0xff]  ;;  %v5019_v50 = vld [vmem:[%s9063_s1 + $0xe8] sm:$0xff]  ;;  %v5021_v51 = vld [vmem:[%s9063_s1 + $0xf8] sm:$0xff]  ;;  %s6758_s26 = scalar_lea.vmem %s6757_s25, 64 }
  0x1b   : > { %s6991_s29 = scalar_lea.vmem %s9062_s0, %s5446_s30  ;;  %v5985_v53 = vpack.c.bf16 %v5016_v49, %v5014_v48  ;;  %v5987_v54 = vpack.c.bf16 %v5021_v51, %v5019_v50  ;;  %v5018_v55 = vld [vmem:[%s9063_s1 + $0xe0] sm:$0xff]  ;;  %v5020_v56 = vld [vmem:[%s9063_s1 + $0xf0] sm:$0xff]  ;;  %v5027_v57 = vld [vmem:[%s9063_s1 + $0x108] sm:$0xff]  ;;  %s490_s30 = scalar_lea.vmem [#allocation4], %s4982_s21 }
  0x1c   : > { %v510_v20 = vld [vmem:[%s6991_s29 + $0x1] sm:$0xff]  ;;  %v511_v27 = vld [vmem:[%s6991_s29 + $0x9] sm:$0xff]  ;;  %v512_v30 = vld [vmem:[%s6991_s29 + $0x11] sm:$0xff]  ;;  %v5989_v60 = vpack.c.bf16 %v5020_v56, %v5018_v55  ;;  %s4919_s17 = sshll.u32 %s490_s30, 4  ;;  %s9022_s17 = int_to_ptr.vmem [resolvable:$true] %s4919_s17 }
  0x1d   : > { %4994 = vmatmul.mubr.msk.f32.vlgmr.msra.gmra.mrb[0].mxu0 %vm523_vm0, %v510_v20  ;;  %v513_v31 = vld [vmem:[%s6991_s29 + $0x19] sm:$0xf]  ;;  %v498_v36 = vld [vmem:[%s6991_s29] sm:$0xff]  ;;  %v499_v43 = vld [vmem:[%s6991_s29 + $0x8] sm:$0xff]  ;;  %v7137_v20 = vsub.s32 0, %v1095_v19  ;;  %s6752_s21 = scalar_lea.vmem %s9022_s17, 32  ;;  %p6759_p0 = scmp.lt.s32.totalorder %s9022_s17, %s6757_s25 }
  0x1e   : > { %606 = vmatprep.mubr.f32.mxu0 %v6816_v7  ;;  %5970 = vmatpush1.bf16.msra.mxu0 %v5969_v21  ;;  %v500_v46 = vld [vmem:[%s6991_s29 + $0x10] sm:$0xff]  ;;  %v501_v47 = vld [vmem:[%s6991_s29 + $0x18] sm:$0xf]  ;;  %v726_v52 = vld [vmem:[%s6991_s29 + $0x2] sm:$0xff]  ;;  %p6753_p11 = scmp.ne.s32.totalorder %s9022_s17, %s6752_s21  ;;  %p6760_p1 = scmp.lt.s32.totalorder %s6758_s26, %s6752_s21 }
  0x1f   : > { %5972 = vmatprep.subr.bf16.mxu0 %v5971_v22  ;;  %v5029_v58 = vld [vmem:[%s9063_s1 + $0x118] sm:$0xff]  ;;  %v727_v59 = vld [vmem:[%s6991_s29 + $0xa] sm:$0xff]  ;;  %v5026_v0 = vld [vmem:[%s9063_s1 + $0x100] sm:$0xff]  ;;  %v7142_v22 = vsub.s32 1, %v1095_v19 }
  0x20   : > { %v5991_v61 = vpack.c.bf16 %v5029_v58, %v5027_v57  ;;  %v728_v62 = vld [vmem:[%s6991_s29 + $0x12] sm:$0xff]  ;;  %v729_v63 = vld [vmem:[%s6991_s29 + $0x1a] sm:$0xf]  ;;  %v5031_v2 = vld [vmem:[%s9063_s1 + $0x128] sm:$0xff]  ;;  %v6818_v58 = vmov 0.0|0.0   ;;  %p6754_p12 = pnand %p6753_p11, %p6939_p5  ;;  %p6761_p2 = por %p6760_p1, %p6759_p0 }
  0x21   : > { %4995 = vmatmul.mubr.msk.f32.gmra.mrb[2].mxu0 %vm523_vm0, %v511_v27  ;;  %v5028_v1 = vld [vmem:[%s9063_s1 + $0x110] sm:$0xff]  ;;  %v5033_v3 = vld [vmem:[%s9063_s1 + $0x138] sm:$0xff]  ;;  %v848_v4 = vld [vmem:[%s6991_s29 + $0x3] sm:$0xff] }
  0x22   : > { %612 = vmatprep.mubr.f32.mxu0 %v6816_v7  ;;  %5974 = vmatpush1.bf16.msra.mxu0 %v5973_v28  ;;  %v5993_v5 = vpack.c.bf16 %v5028_v1, %v5026_v0  ;;  %v5995_v6 = vpack.c.bf16 %v5033_v3, %v5031_v2  ;;  %v5030_v8 = vld [vmem:[%s9063_s1 + $0x120] sm:$0xff]  ;;  %v5032_v9 = vld [vmem:[%s9063_s1 + $0x130] sm:$0xff]  ;;  %v851_v13 = vld [vmem:[%s6991_s29 + $0x1b] sm:$0xf]  ;;  %p6755_p13 = pneg %p6754_p12 }
  0x23   : > { %5976 = vmatprep.subr.bf16.mxu0 %v5975_v29  ;;  %v849_v10 = vld [vmem:[%s6991_s29 + $0xb] sm:$0xff]  ;;  %v5997_v11 = vpack.c.bf16 %v5032_v9, %v5030_v8  ;;  %v850_v12 = vld [vmem:[%s6991_s29 + $0x13] sm:$0xff]  ;;  %v973_v17 = vld [vmem:[%s6991_s29 + $0x1c] sm:$0xf] }
  0x24   : > { %v970_v14 = vld [vmem:[%s6991_s29 + $0x4] sm:$0xff]  ;;  %v971_v15 = vld [vmem:[%s6991_s29 + $0xc] sm:$0xff]  ;;  %v972_v16 = vld [vmem:[%s6991_s29 + $0x14] sm:$0xff]  ;;  %p6762_p3 = pnand %p6761_p2, %p6755_p13 }
  0x25   : > { %4996 = vmatmul.mubr.msk.f32.gmra.mrb[4].mxu0 %vm523_vm0, %v512_v30  ;;  %v1092_v21 = vld [vmem:[%s9064_s2] sm:$0x3]  ;;  %vm7148_vm3 = vmpackc.low %vm1129_vm1, %vm6817_vm2  ;;  %v1214_v55 = vld [vmem:[%s9066_s4 + $0x8] sm:$0xff] }
  0x26   : > { %618 = vmatprep.mubr.f32.mxu0 %v6816_v7  ;;  %v1097_v23 = vrot.slane %v1092_v21, %v7137_v20  ;;  %v1101_v25 = vrot.slane %v1092_v21, %v7142_v22  ;;  %v1120_v56 = vld [vmem:[%s9065_s3] sm:$0xff]  ;;  %v1218_v0 = vld [vmem:[%s9066_s4 + $0x28] sm:$0xff]  ;;  %v1219_v2 = vld [vmem:[%s9066_s4 + $0x30] sm:$0xff] }
  0x27   : > { %v1220_v3 = vld [vmem:[%s9066_s4 + $0x38] sm:$0xff]  ;;  %v1223_v9 = vld [vmem:[%s9066_s4 + $0x50] sm:$0xff]  ;;  %v1229_v18 = vld [vmem:[%s9066_s4 + $0x80] sm:$0xff] }
  0x28   : > { %v1230_v19 = vld [vmem:[%s9066_s4 + $0x88] sm:$0xff]  ;;  %vm7610_vm9 = vmpackc.low %vm1926_vm8, %vm6817_vm2 }
  0x29   : > { %4997 = vmatmul.mubr.msk.f32.gmra.mrb[6].mxu0 %vm523_vm0, %v513_v31  ;;  %v6034_v21 = vpack.c.bf16 %v1230_v19, %v1229_v18  ;;  %v1331_v18 = vld [vmem:[%s9067_s5 + $0x48] sm:$0xff]  ;;  %v1333_v19 = vld [vmem:[%s9067_s5 + $0x58] sm:$0xff] }
  0x2a   : > { %701 = vmatprep.mubr.f32.mxu0 %v6816_v7 }
  0x2d   : > { %4998 = vmatmul.mubr.msk.f32.vlgmr.msra.gmra.mrb[0].mxu0 %vm523_vm0, %v498_v36 }
  0x2e   : > { %707 = vmatprep.mubr.f32.mxu0 %v6816_v7  ;;  %5978 = vmatpush1.bf16.msra.mxu0 %v5977_v37 }
  0x2f   : > { %5980 = vmatprep.subr.bf16.mxu0 %v5979_v38 }
  0x31   : > { %4999 = vmatmul.mubr.msk.f32.gmra.mrb[2].mxu0 %vm523_vm0, %v499_v43 }
  0x32   : > { %713 = vmatprep.mubr.f32.mxu0 %v6816_v7  ;;  %5982 = vmatpush1.bf16.msra.mxu0 %v5981_v44 }
  0x33   : > { %5984 = vmatprep.subr.bf16.mxu0 %v5983_v45 }
  0x35   : > { %5000 = vmatmul.mubr.msk.f32.gmra.mrb[4].mxu0 %vm523_vm0, %v500_v46 }
  0x36   : > { %719 = vmatprep.mubr.f32.mxu0 %v6816_v7 }
  0x39   : > { %5001 = vmatmul.mubr.msk.f32.gmra.mrb[6].mxu0 %vm523_vm0, %v501_v47 }
  0x3a   : > { %815 = vmatprep.mubr.f32.mxu0 %v6816_v7 }
  0x3d   : > { %5010 = vmatmul.mubr.msk.f32.vlgmr.msra.gmra.mrb[0].mxu0 %vm523_vm0, %v726_v52  ;;  %v3328_v52 = vld [vmem:[%s9065_s3 + $0x8] sm:$0x3f] }
  0x3e   : > { %821 = vmatprep.mubr.f32.mxu0 %v6816_v7  ;;  %5986 = vmatpush1.bf16.msra.mxu0 %v5985_v53 }
  0x3f   : > { %5988 = vmatprep.subr.bf16.mxu0 %v5987_v54  ;;  %v1213_v54 = vld [vmem:[%s9066_s4] sm:$0xff] }
  0x40   : > { %v6010_v57 = vpack.c.bf16 %v1214_v55, %v1213_v54  ;;  %v5058_v54 = vld [vmem:[%s9067_s5 + $0x120] sm:$0xff] }
  0x41   : > { %5011 = vmatmul.mubr.msk.f32.gmra.mrb[2].mxu0 %vm523_vm0, %v727_v59  ;;  %v1215_v59 = vld [vmem:[%s9066_s4 + $0x10] sm:$0xff] }
  0x42   : > { %827 = vmatprep.mubr.f32.mxu0 %v6816_v7  ;;  %5990 = vmatpush1.bf16.msra.mxu0 %v5989_v60  ;;  %v1216_v60 = vld [vmem:[%s9066_s4 + $0x18] sm:$0xff] }
  0x43   : > { %5992 = vmatprep.subr.bf16.mxu0 %v5991_v61  ;;  %v1121_v61 = vld [vmem:[%s9065_s3 + $0x8] sm:$0x3f] }
  0x45   : > { %5012 = vmatmul.mubr.msk.f32.gmra.mrb[4].mxu0 %vm523_vm0, %v728_v62  ;;  %v6013_v62 = vpack.c.bf16 %v1216_v60, %v1215_v59  ;;  %v5060_v60 = vld [vmem:[%s9067_s5 + $0x130] sm:$0xff] }
  0x46   : > { %833 = vmatprep.mubr.f32.mxu0 %v6816_v7 }
  0x49   : > { %5013 = vmatmul.mubr.msk.f32.gmra.mrb[6].mxu0 %vm523_vm0, %v729_v63  ;;  %v1217_v63 = vld [vmem:[%s9066_s4 + $0x20] sm:$0xff] }
  0x4a   : > { %937 = vmatprep.mubr.f32.mxu0 %v6816_v7  ;;  %v6016_v1 = vpack.c.bf16 %v1218_v0, %v1217_v63  ;;  %v5065_v63 = vld [vmem:[%s9067_s5 + $0x158] sm:$0xf]  ;;  %v1323_v0 = vld [vmem:[%s9067_s5 + $0x8] sm:$0xff] }
  0x4d   : > { %5022 = vmatmul.mubr.msk.f32.vlgmr.msra.gmra.mrb[0].mxu0 %vm523_vm0, %v848_v4  ;;  %v6019_v4 = vpack.c.bf16 %v1220_v3, %v1219_v2  ;;  %v5064_v2 = vld [vmem:[%s9067_s5 + $0x150] sm:$0xf] }
  0x4e   : > { %943 = vmatprep.mubr.f32.mxu0 %v6816_v7  ;;  %5994 = vmatpush1.bf16.msra.mxu0 %v5993_v5  ;;  %v1221_v5 = vld [vmem:[%s9066_s4 + $0x40] sm:$0xff] }
  0x4f   : > { %5996 = vmatprep.subr.bf16.mxu0 %v5995_v6  ;;  %v1222_v6 = vld [vmem:[%s9066_s4 + $0x48] sm:$0xff] }
  0x50   : > { %v6022_v8 = vpack.c.bf16 %v1222_v6, %v1221_v5 }
  0x51   : > { %5023 = vmatmul.mubr.msk.f32.gmra.mrb[2].mxu0 %vm523_vm0, %v849_v10  ;;  %v1224_v10 = vld [vmem:[%s9066_s4 + $0x58] sm:$0xff] }
  0x52   : > { %949 = vmatprep.mubr.f32.mxu0 %v6816_v7  ;;  %5998 = vmatpush1.bf16.msra.mxu0 %v5997_v11  ;;  %v6025_v11 = vpack.c.bf16 %v1224_v10, %v1223_v9  ;;  %v1322_v9 = vld [vmem:[%s9067_s5] sm:$0xff]  ;;  %v1324_v10 = vld [vmem:[%s9067_s5 + $0x10] sm:$0xff] }
  0x55   : > { %5024 = vmatmul.mubr.msk.f32.gmra.mrb[4].mxu0 %vm523_vm0, %v850_v12  ;;  %v1225_v12 = vld [vmem:[%s9066_s4 + $0x60] sm:$0xff] }
  0x56   : > { %955 = vmatprep.mubr.f32.mxu0 %v6816_v7 }
  0x59   : > { %5025 = vmatmul.mubr.msk.f32.gmra.mrb[6].mxu0 %vm523_vm0, %v851_v13  ;;  %v1226_v13 = vld [vmem:[%s9066_s4 + $0x68] sm:$0xff] }
  0x5a   : > { %1059 = vmatprep.mubr.f32.mxu0 %v6816_v7 }
  0x5d   : > { %5034 = vmatmul.mubr.msk.f32.vlgmr.msra.gmra.mrb[0].mxu0 %vm523_vm0, %v970_v14  ;;  %v6028_v14 = vpack.c.bf16 %v1226_v13, %v1225_v12  ;;  %v1329_v12 = vld [vmem:[%s9067_s5 + $0x38] sm:$0xff]  ;;  %v6061_v13 = vpack.c.bf16 %v1324_v10, %v1322_v9  ;;  %v5090_v10 = vld [vmem:[%s9067_s5 + $0x1e0] sm:$0xff] }
  0x5e   : > { %1065 = vmatprep.mubr.f32.mxu0 %v6816_v7 }
  0x61   : > { %5035 = vmatmul.mubr.msk.f32.gmra.mrb[2].mxu0 %vm523_vm0, %v971_v15  ;;  %v1227_v15 = vld [vmem:[%s9066_s4 + $0x70] sm:$0xff] }
  0x62   : > { %1071 = vmatprep.mubr.f32.mxu0 %v6816_v7 }
  0x65   : > { %5036 = vmatmul.mubr.msk.f32.gmra.mrb[4].mxu0 %vm523_vm0, %v972_v16  ;;  %v1228_v16 = vld [vmem:[%s9066_s4 + $0x78] sm:$0xff] }
  0x66   : > { %1077 = vmatprep.mubr.f32.mxu0 %v6816_v7 }
  0x69   : > { %5037 = vmatmul.mubr.msk.f32.gmra.mrb[6].mxu0 %vm523_vm0, %v973_v17  ;;  %v6031_v17 = vpack.c.bf16 %v1228_v16, %v1227_v15  ;;  %v1326_v15 = vld [vmem:[%s9067_s5 + $0x20] sm:$0xff]  ;;  %v1328_v16 = vld [vmem:[%s9067_s5 + $0x30] sm:$0xff] }
  0x6a   : > { %1997 = vmatprep.mubr.f32.mxu0 %v6816_v7 }
 0x130   : > { %v1061_v24 = vpop.f32.mrb[0].mxu0 }
 0x131   : > { %v1063_v26 = vpop.f32.mrb[1].mxu0  ;;  %v1104_v27 = vadd.f32 %v1097_v23, %v1061_v24  ;;  %v1232_v24 = vld [vmem:[%s9066_s4 + $0x98] sm:$0xff] }
 0x132   : > { %v1105_v28 = vadd.f32 %v1101_v25, %v1063_v26  ;;  %v1233_v26 = vld [vmem:[%s9066_s4 + $0xa0] sm:$0xff] }
 0x133   : > { %v1112_v33 = vmax.f32 %v1104_v27, 0.0  ;;  %v5045_v27 = vld [vmem:[%s9067_s5 + $0xb8] sm:$0xff] }
 0x134   : > { %v1067_v29 = vpop.f32.mrb[2].mxu0  ;;  %v1113_v35 = vmax.f32 %v1105_v28, 0.0  ;;  %v5047_v28 = vld [vmem:[%s9067_s5 + $0xc8] sm:$0xff] }
 0x135   : > { %v1106_v30 = vadd.f32 %v1097_v23, %v1067_v29  ;;  %v1069_v31 = vpop.f32.mrb[3].mxu0  ;;  %v6039_v29 = vpack.c.bf16 %v5047_v28, %v5045_v27  ;;  %v1335_v27 = vld [vmem:[%s9067_s5 + $0x68] sm:$0xff]  ;;  %v1337_v28 = vld [vmem:[%s9067_s5 + $0x78] sm:$0xff] }
 0x136   : > { %v1107_v32 = vadd.f32 %v1101_v25, %v1069_v31  ;;  %v5046_v31 = vld [vmem:[%s9067_s5 + $0xc0] sm:$0xff] }
 0x137   : > { %v1114_v34 = vmax.f32 %v1106_v30, 0.0  ;;  %v5044_v30 = vld [vmem:[%s9067_s5 + $0xb0] sm:$0xff] }
 0x138   : > { %v1115_v36 = vmax.f32 %v1107_v32, 0.0  ;;  %v1073_v37 = vpop.f32.mrb[4].mxu0  ;;  %v5049_v32 = vld [vmem:[%s9067_s5 + $0xd8] sm:$0xff] }
 0x139   : > { %v1075_v38 = vpop.f32.mrb[5].mxu0  ;;  %v6001_v39 = vpack.c.bf16 %v1114_v34, %v1112_v33  ;;  %v1108_v41 = vadd.f32 %v1097_v23, %v1073_v37  ;;  %v5051_v33 = vld [vmem:[%s9067_s5 + $0xe8] sm:$0xff] }
 0x13a   : > { %v5999_v40 = vpack.c.bf16 %v1115_v36, %v1113_v35  ;;  %v1109_v42 = vadd.f32 %v1101_v25, %v1075_v38  ;;  %v6041_v35 = vpack.c.bf16 %v5046_v31, %v5044_v30  ;;  %v6043_v37 = vpack.c.bf16 %v5051_v33, %v5049_v32  ;;  %v5048_v38 = vld [vmem:[%s9067_s5 + $0xd0] sm:$0xff]  ;;  %v1334_v31 = vld [vmem:[%s9067_s5 + $0x60] sm:$0xff]  ;;  %v1339_v33 = vld [vmem:[%s9067_s5 + $0x88] sm:$0xff] }
 0x13b   : > { %v1116_v47 = vmax.f32 %v1108_v41, 0.0  ;;  %v5055_v41 = vld [vmem:[%s9067_s5 + $0x108] sm:$0xff]  ;;  %v6071_v30 = vpack.c.bf16 %v1337_v28, %v1335_v27  ;;  %v1336_v32 = vld [vmem:[%s9067_s5 + $0x70] sm:$0xff]  ;;  %v5106_v27 = vld [vmem:[%s9067_s5 + $0x240] sm:$0xff] }
 0x13c   : > { %v1079_v43 = vpop.f32.mrb[6].mxu0  ;;  %6000 = vmatprep.subr.bf16.mxu1 %v5999_v40  ;;  %v1117_v49 = vmax.f32 %v1109_v42, 0.0  ;;  %v5053_v40 = vld [vmem:[%s9067_s5 + $0xf8] sm:$0xff] }
 0x13d   : > { %v1110_v44 = vadd.f32 %v1097_v23, %v1079_v43  ;;  %v1081_v45 = vpop.f32.mrb[7].mxu0  ;;  %6002 = vmatpush1.bf16.msra.mxu1 %v6001_v39  ;;  %v1231_v23 = vld [vmem:[%s9066_s4 + $0x90] sm:$0xff]  ;;  %v5050_v39 = vld [vmem:[%s9067_s5 + $0xe0] sm:$0xff] }
 0x13e   : > { %v1111_v46 = vadd.f32 %v1101_v25, %v1081_v45  ;;  %v6037_v25 = vpack.c.bf16 %v1232_v24, %v1231_v23  ;;  %v6045_v43 = vpack.c.bf16 %v5050_v39, %v5048_v38  ;;  %v6047_v45 = vpack.c.bf16 %v5055_v41, %v5053_v40  ;;  %v1330_v24 = vld [vmem:[%s9067_s5 + $0x40] sm:$0xff]  ;;  %v1340_v38 = vld [vmem:[%s9067_s5 + $0x90] sm:$0xff]  ;;  %v1343_v40 = vld [vmem:[%s9067_s5 + $0xa8] sm:$0xf] }
 0x13f   : > { %v1118_v48 = vmax.f32 %v1110_v44, 0.0  ;;  %v6067_v23 = vpack.c.bf16 %v1333_v19, %v1331_v18  ;;  %v5075_v41 = vld [vmem:[%s9067_s5 + $0x168] sm:$0xff]  ;;  %v5105_v18 = vld [vmem:[%s9067_s5 + $0x238] sm:$0xff] }
 0x140   : > { %v1119_v50 = vmax.f32 %v1111_v46, 0.0  ;;  %v5052_v46 = vld [vmem:[%s9067_s5 + $0xf0] sm:$0xff]  ;;  %v5107_v19 = vld [vmem:[%s9067_s5 + $0x248] sm:$0xff] }
 0x141   : > { %v6006_v51 = vpack.c.bf16 %v1118_v48, %v1116_v47  ;;  %v5054_v47 = vld [vmem:[%s9067_s5 + $0x100] sm:$0xff] }
 0x142   : > { %v6003_v53 = vpack.c.bf16 %v1119_v50, %v1117_v49  ;;  %v6049_v48 = vpack.c.bf16 %v5054_v47, %v5052_v46  ;;  %v5057_v49 = vld [vmem:[%s9067_s5 + $0x118] sm:$0xff]  ;;  %v5059_v50 = vld [vmem:[%s9067_s5 + $0x128] sm:$0xff]  ;;  %v1342_v47 = vld [vmem:[%s9067_s5 + $0xa0] sm:$0xf] }
 0x143   : > { %v5081_v46 = vld [vmem:[%s9067_s5 + $0x198] sm:$0xff] }
 0x144   : > { %6005 = vmatprep.subr.msk.bf16.mxu1 %vm7148_vm3, %v6003_v53  ;;  %v5056_v53 = vld [vmem:[%s9067_s5 + $0x110] sm:$0xff] }
 0x145   : > { %6008 = vmatpush1.bf16.msk.msra.mxu1 %vm7148_vm3, %v6006_v51  ;;  %v6051_v51 = vpack.c.bf16 %v5059_v50, %v5057_v49  ;;  %v6053_v55 = vpack.c.bf16 %v5058_v54, %v5056_v53  ;;  %v5080_v53 = vld [vmem:[%s9067_s5 + $0x190] sm:$0xff] }
 0x146   : > { %6009 = vmatprep.subr.bf16.mxu1 %v6818_v58 }
 0x148   : > { %5040 = vmatmul.mubr.msk.f32.vlgmr.msra.gmra.mrb[0].mxu1 %vm1122_vm4, %v1120_v56  ;;  %v5061_v56 = vld [vmem:[%s9067_s5 + $0x138] sm:$0xff] }
 0x149   : > { %1206 = vmatprep.mubr.f32.mxu1 %v6816_v7  ;;  %6011 = vmatpush1.bf16.msra.mxu1 %v6010_v57  ;;  %v5063_v57 = vld [vmem:[%s9067_s5 + $0x148] sm:$0xff] }
 0x14a   : > { %6012 = vmatprep.subr.bf16.mxu1 %v6818_v58  ;;  %v6055_v59 = vpack.c.bf16 %v5063_v57, %v5061_v56  ;;  %v5085_v56 = vld [vmem:[%s9067_s5 + $0x1b8] sm:$0xff] }
 0x14c   : > { %5041 = vmatmul.mubr.msk.f32.gmra.mrb[2].mxu1 %vm1122_vm4, %v1121_v61  ;;  %v5062_v61 = vld [vmem:[%s9067_s5 + $0x140] sm:$0xff] }
 0x14d   : > { %6014 = vmatpush1.bf16.msra.mxu1 %v6013_v62  ;;  %v6057_v62 = vpack.c.bf16 %v5062_v61, %v5060_v60  ;;  %v5082_v60 = vld [vmem:[%s9067_s5 + $0x1a0] sm:$0xff]  ;;  %v5084_v61 = vld [vmem:[%s9067_s5 + $0x1b0] sm:$0xff] }
 0x14e   : > { %6015 = vmatprep.subr.bf16.mxu1 %v6818_v58 }
 0x151   : > { %6017 = vmatpush1.bf16.msra.mxu1 %v6016_v1  ;;  %v1325_v1 = vld [vmem:[%s9067_s5 + $0x18] sm:$0xff] }
 0x152   : > { %6018 = vmatprep.subr.bf16.mxu1 %v6818_v58  ;;  %v6059_v3 = vpack.c.bf16 %v1325_v1, %v1323_v0  ;;  %v5089_v0 = vld [vmem:[%s9067_s5 + $0x1d8] sm:$0xff]  ;;  %v6089_v1 = vpack.c.bf16 %v5084_v61, %v5082_v60 }
 0x155   : > { %6020 = vmatpush1.bf16.msra.mxu1 %v6019_v4 }
 0x156   : > { %6021 = vmatprep.subr.bf16.mxu1 %v6818_v58 }
 0x159   : > { %6023 = vmatpush1.bf16.msra.mxu1 %v6022_v8 }
 0x15a   : > { %6024 = vmatprep.subr.bf16.mxu1 %v6818_v58 }
 0x15d   : > { %6026 = vmatpush1.bf16.msra.mxu1 %v6025_v11  ;;  %v1327_v11 = vld [vmem:[%s9067_s5 + $0x28] sm:$0xff] }
 0x15e   : > { %6027 = vmatprep.subr.bf16.mxu1 %v6818_v58 }
 0x161   : > { %6029 = vmatpush1.bf16.msra.mxu1 %v6028_v14  ;;  %v6063_v14 = vpack.c.bf16 %v1329_v12, %v1327_v11  ;;  %v5092_v11 = vld [vmem:[%s9067_s5 + $0x1f0] sm:$0xff] }
 0x162   : > { %6030 = vmatprep.subr.bf16.mxu1 %v6818_v58  ;;  %v6097_v12 = vpack.c.bf16 %v5092_v11, %v5090_v10  ;;  %v5141_v10 = vld [vmem:[%s9067_s5 + $0x338] sm:$0xff] }
 0x165   : > { %6032 = vmatpush1.bf16.msra.mxu1 %v6031_v17 }
 0x166   : > { %6033 = vmatprep.subr.bf16.mxu1 %v6818_v58 }
 0x169   : > { %6035 = vmatpush1.bf16.msra.mxu1 %v6034_v21  ;;  %v6065_v21 = vpack.c.bf16 %v1328_v16, %v1326_v15  ;;  %v5103_v15 = vld [vmem:[%s9067_s5 + $0x228] sm:$0xff]  ;;  %v5100_v16 = vld [vmem:[%s9067_s5 + $0x210] sm:$0xff] }
 0x16a   : > { %6036 = vmatprep.subr.bf16.mxu1 %v6818_v58 }
 0x16d   : > { %6038 = vmatpush1.bf16.msra.mxu1 %v6037_v25  ;;  %v1332_v25 = vld [vmem:[%s9067_s5 + $0x50] sm:$0xff] }
 0x16e   : > { %1281 = vmatprep.subr.mxu1 %v6816_v7 }
 0x171   : > { %1282 = vmatpush1.msra.mxu1 %v1233_v26 }
 0x172   : > { %6040 = vmatprep.subr.bf16.mxu1 %v6039_v29  ;;  %v6069_v29 = vpack.c.bf16 %v1332_v25, %v1330_v24  ;;  %v6103_v25 = vpack.c.bf16 %v5107_v19, %v5105_v18  ;;  %v5142_v19 = vld [vmem:[%s9067_s5 + $0x340] sm:$0xff] }
 0x21b   : > { %v1202_v34 = vpop.f32.mrb[0].mxu1 }
 0x21c   : > { %v1204_v36 = vpop.f32.mrb[1].mxu1 }
 0x21d   : > { %5042 = vmatprep.mubr.msk.f32.mxu1 %vm1234_vm5, %v1204_v36 }
 0x21e   : > { %1306 = vmatmul.mubr.f32.vlgmr.msra.gmra.mrb[4].mxu1 %v1202_v34  ;;  %v1341_v34 = vld [vmem:[%s9067_s5 + $0x98] sm:$0xff] }
 0x21f   : > { %v1208_v42 = vpop.f32.mrb[2].mxu1  ;;  %6042 = vmatpush1.bf16.msra.mxu1 %v6041_v35  ;;  %v6073_v35 = vpack.c.bf16 %v1336_v32, %v1334_v31  ;;  %v6075_v36 = vpack.c.bf16 %v1341_v34, %v1339_v33  ;;  %v5108_v33 = vld [vmem:[%s9067_s5 + $0x250] sm:$0xff]  ;;  %v5110_v34 = vld [vmem:[%s9067_s5 + $0x260] sm:$0xff] }
 0x220   : > { %v1210_v44 = vpop.f32.mrb[3].mxu1  ;;  %6044 = vmatprep.subr.bf16.mxu1 %v6043_v37  ;;  %v1338_v37 = vld [vmem:[%s9067_s5 + $0x80] sm:$0xff] }
 0x221   : > { %5043 = vmatprep.mubr.msk.f32.mxu1 %vm1234_vm5, %v1210_v44  ;;  %v6077_v39 = vpack.c.bf16 %v1340_v38, %v1338_v37  ;;  %v5076_v44 = vld [vmem:[%s9067_s5 + $0x170] sm:$0xff]  ;;  %v5115_v37 = vld [vmem:[%s9067_s5 + $0x288] sm:$0xff]  ;;  %v6109_v38 = vpack.c.bf16 %v5110_v34, %v5108_v33 }
 0x222   : > { %1311 = vmatmul.mubr.f32.gmra.mrb[6].mxu1 %v1208_v42  ;;  %v5077_v42 = vld [vmem:[%s9067_s5 + $0x178] sm:$0xff] }
 0x223   : > { %6046 = vmatpush1.bf16.msra.mxu1 %v6045_v43  ;;  %1445 = vmatprep.mubr.f32.mxu1 %v6816_v7  ;;  %v5074_v43 = vld [vmem:[%s9067_s5 + $0x160] sm:$0xff] }
 0x224   : > { %6048 = vmatprep.subr.bf16.mxu1 %v6047_v45  ;;  %v5079_v45 = vld [vmem:[%s9067_s5 + $0x188] sm:$0xff]  ;;  %v6081_v49 = vpack.c.bf16 %v5076_v44, %v5074_v43 }
 0x225   : > { %v6083_v50 = vpack.c.bf16 %v5081_v46, %v5079_v45  ;;  %v5119_v43 = vld [vmem:[%s9067_s5 + $0x2a8] sm:$0xff]  ;;  %v5116_v46 = vld [vmem:[%s9067_s5 + $0x290] sm:$0xff] }
 0x227   : > { %6050 = vmatpush1.bf16.msra.mxu1 %v6049_v48  ;;  %v6079_v48 = vpack.c.bf16 %v5077_v42, %v5075_v41  ;;  %v5114_v41 = vld [vmem:[%s9067_s5 + $0x280] sm:$0xff]  ;;  %v5117_v42 = vld [vmem:[%s9067_s5 + $0x298] sm:$0xff] }
 0x228   : > { %6052 = vmatprep.subr.bf16.mxu1 %v6051_v51  ;;  %v5078_v51 = vld [vmem:[%s9067_s5 + $0x180] sm:$0xff]  ;;  %v6115_v45 = vpack.c.bf16 %v5119_v43, %v5117_v42 }
 0x229   : > { %v6085_v57 = vpack.c.bf16 %v5080_v53, %v5078_v51  ;;  %v5129_v51 = vld [vmem:[%s9067_s5 + $0x2d8] sm:$0xff]  ;;  %v5126_v53 = vld [vmem:[%s9067_s5 + $0x2c0] sm:$0xff] }
 0x22b   : > { %6054 = vmatpush1.bf16.msra.mxu1 %v6053_v55  ;;  %v5083_v55 = vld [vmem:[%s9067_s5 + $0x1a8] sm:$0xff] }
 0x22c   : > { %6056 = vmatprep.subr.bf16.mxu1 %v6055_v59  ;;  %v6087_v59 = vpack.c.bf16 %v5085_v56, %v5083_v55  ;;  %v5131_v55 = vld [vmem:[%s9067_s5 + $0x2e8] sm:$0xff]  ;;  %v5133_v56 = vld [vmem:[%s9067_s5 + $0x2f8] sm:$0xff] }
 0x22d   : > { %v6123_v61 = vpack.c.bf16 %v5133_v56, %v5131_v55  ;;  %v2009_v55 = vld [vmem:[%s9070_s8 + $0x28] sm:$0xff] }
 0x22f   : > { %6058 = vmatpush1.bf16.msra.mxu1 %v6057_v62 }
 0x230   : > { %5066 = vmatprep.subr.msk.mxu1 %vm1129_vm1, %v5065_v63  ;;  %v5087_v63 = vld [vmem:[%s9067_s5 + $0x1c8] sm:$0xff] }
 0x233   : > { %5067 = vmatpush1.msk.msra.mxu1 %vm1129_vm1, %v5064_v2  ;;  %v6091_v2 = vpack.c.bf16 %v5089_v0, %v5087_v63  ;;  %v5132_v63 = vld [vmem:[%s9067_s5 + $0x2f0] sm:$0xff] }
 0x234   : > { %6060 = vmatprep.subr.bf16.mxu1 %v6059_v3  ;;  %v5086_v3 = vld [vmem:[%s9067_s5 + $0x1c0] sm:$0xff] }
 0x2f1   : > { %v1307_v4 = vpop.f32.mrb[4].mxu1 }
 0x2f2   : > { %1317 = vst.msk [vmem:[#allocation2] sm:$0xff] %vm1316_vm6, %v1307_v4  ;;  %v1309_v5 = vpop.f32.mrb[5].mxu1  ;;  %v5088_v4 = vld [vmem:[%s9067_s5 + $0x1d0] sm:$0xff] }
 0x2f3   : > { %v5091_v5 = vld [vmem:[%s9067_s5 + $0x1e8] sm:$0xff] }
 0x2f5   : > { %v1312_v6 = vpop.f32.mrb[6].mxu1 }
 0x2f6   : > { %1319 = vst.msk [vmem:[#allocation2 + $0x8] sm:$0x3f] %vm1318_vm7, %v1312_v6  ;;  %v1314_v8 = vpop.f32.mrb[7].mxu1  ;;  %v5093_v6 = vld [vmem:[%s9067_s5 + $0x1f8] sm:$0xff] }
 0x2f7   : > { %v6093_v8 = vpack.c.bf16 %v5088_v4, %v5086_v3  ;;  %v6095_v9 = vpack.c.bf16 %v5093_v6, %v5091_v5  ;;  %v5134_v5 = vld [vmem:[%s9067_s5 + $0x300] sm:$0xff]  ;;  %v5136_v6 = vld [vmem:[%s9067_s5 + $0x310] sm:$0xff] }
 0x2f8   : > { %v6129_v11 = vpack.c.bf16 %v5136_v6, %v5134_v5  ;;  %v2018_v6 = vld [vmem:[%s9070_s8 + $0x70] sm:$0xff] }
 0x2f9   : > { %v1320_v54 = vld [vmem:[#allocation2] sm:$0xff] }
 0x2fd   : > { %v1344_v17 = vld [vmem:[#allocation2 + $0x1] sm:$0xff]  ;;  %v1345_v26 = vld [vmem:[#allocation2 + $0x9] sm:$0x3] }
 0x2fe   : > { %5068 = vmatmul.mubr.msk.f32.vlgmr.msra.gmra.mrb[8].mxu1 %vm1316_vm6, %v1344_v17  ;;  %v1321_v62 = vld [vmem:[#allocation2 + $0x8] sm:$0x3]  ;;  %v5102_v17 = vld [vmem:[%s9067_s5 + $0x220] sm:$0xff] }
 0x2ff   : > { %6062 = vmatpush1.bf16.msra.mxu1 %v6061_v13  ;;  %1451 = vmatprep.mubr.f32.mxu1 %v6816_v7  ;;  %v5095_v13 = vld [vmem:[%s9067_s5 + $0x208] sm:$0xf]  ;;  %v6101_v24 = vpack.c.bf16 %v5102_v17, %v5100_v16  ;;  %v5145_v16 = vld [vmem:[%s9067_s5 + $0x358] sm:$0xff] }
 0x300   : > { %6064 = vmatprep.subr.bf16.mxu1 %v6063_v14  ;;  %v5101_v14 = vld [vmem:[%s9067_s5 + $0x218] sm:$0xff]  ;;  %v1547_v28 = vld [vmem:[#allocation2 + $0x2] sm:$0xff] }
 0x301   : > { %v1665_v0 = vld [vmem:[#allocation2 + $0x3] sm:$0xff] }
 0x302   : > { %5069 = vmatmul.mubr.msk.f32.gmra.mrb[10].mxu1 %vm1316_vm6, %v1345_v26  ;;  %v5104_v26 = vld [vmem:[%s9067_s5 + $0x230] sm:$0xff] }
 0x303   : > { %6066 = vmatpush1.bf16.msra.mxu1 %v6065_v21  ;;  %1534 = vmatprep.mubr.f32.mxu1 %v6816_v7  ;;  %v5094_v21 = vld [vmem:[%s9067_s5 + $0x200] sm:$0xf]  ;;  %v6105_v31 = vpack.c.bf16 %v5106_v27, %v5104_v26  ;;  %v1783_v26 = vld [vmem:[#allocation2 + $0x4] sm:$0xff]  ;;  %v1784_v27 = vld [vmem:[#allocation2 + $0xc] sm:$0x3] }
 0x304   : > { %6068 = vmatprep.subr.bf16.mxu1 %v6067_v23  ;;  %v6099_v23 = vpack.c.bf16 %v5103_v15, %v5101_v14  ;;  %v5140_v14 = vld [vmem:[%s9067_s5 + $0x330] sm:$0xff]  ;;  %v5143_v15 = vld [vmem:[%s9067_s5 + $0x348] sm:$0xff] }
 0x305   : > { %v6135_v18 = vpack.c.bf16 %v5145_v16, %v5143_v15  ;;  %v5168_v16 = vld [vmem:[%s9071_s9 + $0xa0] sm:$0xff] }
 0x307   : > { %6070 = vmatpush1.bf16.msra.mxu1 %v6069_v29  ;;  %v5109_v29 = vld [vmem:[%s9067_s5 + $0x258] sm:$0xff] }
 0x308   : > { %6072 = vmatprep.subr.bf16.mxu1 %v6071_v30  ;;  %v5111_v30 = vld [vmem:[%s9067_s5 + $0x268] sm:$0xff] }
 0x309   : > { %v6107_v32 = vpack.c.bf16 %v5111_v30, %v5109_v29 }
 0x30b   : > { %6074 = vmatpush1.bf16.msra.mxu1 %v6073_v35  ;;  %v1548_v35 = vld [vmem:[#allocation2 + $0xa] sm:$0x3] }
 0x30c   : > { %6076 = vmatprep.subr.bf16.mxu1 %v6075_v36  ;;  %v5113_v36 = vld [vmem:[%s9067_s5 + $0x278] sm:$0xff] }
 0x30f   : > { %6078 = vmatpush1.bf16.msra.mxu1 %v6077_v39  ;;  %v6111_v39 = vpack.c.bf16 %v5115_v37, %v5113_v36 }
 0x310   : > { %5070 = vmatprep.subr.msk.mxu1 %vm1129_vm1, %v1343_v40  ;;  %v5112_v40 = vld [vmem:[%s9067_s5 + $0x270] sm:$0xff] }
 0x311   : > { %v6113_v44 = vpack.c.bf16 %v5114_v41, %v5112_v40 }
 0x313   : > { %5071 = vmatpush1.msk.msra.mxu1 %vm1129_vm1, %v1342_v47  ;;  %v5118_v47 = vld [vmem:[%s9067_s5 + $0x2a0] sm:$0xff] }
 0x314   : > { %5072 = vmatmul.mubr.msk.f32.vlgmr.msra.gmra.mrb[8].mxu1 %vm1316_vm6, %v1320_v54  ;;  %6080 = vmatprep.subr.bf16.mxu1 %v6079_v48  ;;  %v6117_v48 = vpack.c.bf16 %v5118_v47, %v5116_v46  ;;  %v5128_v54 = vld [vmem:[%s9067_s5 + $0x2d0] sm:$0xff]  ;;  %v2004_v46 = vld [vmem:[%s9070_s8] sm:$0xff]  ;;  %v2005_v47 = vld [vmem:[%s9070_s8 + $0x8] sm:$0xff] }
 0x315   : > { %6082 = vmatpush1.bf16.msra.mxu1 %v6081_v49  ;;  %1540 = vmatprep.mubr.f32.mxu1 %v6816_v7  ;;  %v5121_v49 = vld [vmem:[%s9067_s5 + $0x2b8] sm:$0xf]  ;;  %v6121_v60 = vpack.c.bf16 %v5128_v54, %v5126_v53  ;;  %v2008_v54 = vld [vmem:[%s9070_s8 + $0x20] sm:$0xff] }
 0x316   : > { %6084 = vmatprep.subr.bf16.mxu1 %v6083_v50  ;;  %v5127_v50 = vld [vmem:[%s9067_s5 + $0x2c8] sm:$0xff]  ;;  %v6152_v56 = vpack.c.bf16 %v2009_v55, %v2008_v54  ;;  %v2100_v54 = vld [vmem:[%s9071_s9] sm:$0xff] }
 0x317   : > { %v2101_v55 = vld [vmem:[%s9071_s9 + $0x8] sm:$0xff] }
 0x318   : > { %5073 = vmatmul.mubr.msk.f32.gmra.mrb[10].mxu1 %vm1316_vm6, %v1321_v62  ;;  %v5130_v62 = vld [vmem:[%s9067_s5 + $0x2e0] sm:$0xff] }
 0x319   : > { %6086 = vmatpush1.bf16.msra.mxu1 %v6085_v57  ;;  %1648 = vmatprep.mubr.f32.mxu1 %v6816_v7  ;;  %v5120_v57 = vld [vmem:[%s9067_s5 + $0x2b0] sm:$0xf]  ;;  %v6125_v3 = vpack.c.bf16 %v5132_v63, %v5130_v62  ;;  %v2013_v62 = vld [vmem:[%s9070_s8 + $0x48] sm:$0xff] }
 0x31a   : > { %6088 = vmatprep.subr.bf16.mxu1 %v6087_v59  ;;  %v6119_v59 = vpack.c.bf16 %v5129_v51, %v5127_v50  ;;  %v2006_v50 = vld [vmem:[%s9070_s8 + $0x10] sm:$0xff]  ;;  %v2007_v51 = vld [vmem:[%s9070_s8 + $0x18] sm:$0xff] }
 0x31b   : > { %v6149_v53 = vpack.c.bf16 %v2007_v51, %v2006_v50 }
 0x31d   : > { %6090 = vmatpush1.bf16.msra.mxu1 %v6089_v1  ;;  %v5135_v1 = vld [vmem:[%s9067_s5 + $0x308] sm:$0xff] }
 0x31e   : > { %6092 = vmatprep.subr.bf16.mxu1 %v6091_v2  ;;  %v5137_v2 = vld [vmem:[%s9067_s5 + $0x318] sm:$0xff] }
 0x31f   : > { %v6127_v4 = vpack.c.bf16 %v5137_v2, %v5135_v1  ;;  %v2015_v1 = vld [vmem:[%s9070_s8 + $0x58] sm:$0xff] }
 0x321   : > { %6094 = vmatpush1.bf16.msra.mxu1 %v6093_v8  ;;  %v1666_v8 = vld [vmem:[#allocation2 + $0xb] sm:$0x3] }
 0x322   : > { %6096 = vmatprep.subr.bf16.mxu1 %v6095_v9  ;;  %v5139_v9 = vld [vmem:[%s9067_s5 + $0x328] sm:$0xff] }
 0x325   : > { %6098 = vmatpush1.bf16.msra.mxu1 %v6097_v12  ;;  %v6131_v12 = vpack.c.bf16 %v5141_v10, %v5139_v9  ;;  %v2020_v10 = vld [vmem:[%s9070_s8 + $0x80] sm:$0xff] }
 0x326   : > { %5096 = vmatprep.subr.msk.mxu1 %vm1129_vm1, %v5095_v13  ;;  %v5138_v13 = vld [vmem:[%s9067_s5 + $0x320] sm:$0xff] }
 0x327   : > { %v6133_v17 = vpack.c.bf16 %v5140_v14, %v5138_v13  ;;  %v2022_v13 = vld [vmem:[%s9070_s8 + $0x90] sm:$0xff]  ;;  %v2023_v14 = vld [vmem:[%s9070_s8 + $0x98] sm:$0xff] }
 0x328   : > { %v6173_v15 = vpack.c.bf16 %v2023_v14, %v2022_v13  ;;  %v2107_v13 = vld [vmem:[%s9071_s9 + $0x38] sm:$0xff]  ;;  %v5196_v14 = vld [vmem:[%s9071_s9 + $0x170] sm:$0xff] }
 0x329   : > { %5097 = vmatpush1.msk.msra.mxu1 %vm1129_vm1, %v5094_v21  ;;  %v5144_v21 = vld [vmem:[%s9067_s5 + $0x350] sm:$0xff] }
 0x32a   : > { %5098 = vmatmul.mubr.msk.f32.vlgmr.msra.gmra.mrb[8].mxu1 %vm1316_vm6, %v1547_v28  ;;  %6100 = vmatprep.subr.bf16.mxu1 %v6099_v23  ;;  %v6137_v23 = vpack.c.bf16 %v5144_v21, %v5142_v19  ;;  %v1901_v28 = vld [vmem:[%s9068_s6] sm:$0x3]  ;;  %v5170_v19 = vld [vmem:[%s9071_s9 + $0xb0] sm:$0xff]  ;;  %v5171_v21 = vld [vmem:[%s9071_s9 + $0xb8] sm:$0xff] }
 0x32b   : > { %6102 = vmatpush1.bf16.msra.mxu1 %v6101_v24  ;;  %1654 = vmatprep.mubr.f32.mxu1 %v6816_v7  ;;  %v5147_v24 = vld [vmem:[%s9067_s5 + $0x368] sm:$0xf]  ;;  %v1906_v29 = vrot.slane %v1901_v28, %v7137_v20 }
 0x32c   : > { %6104 = vmatprep.subr.bf16.mxu1 %v6103_v25  ;;  %v5146_v25 = vld [vmem:[%s9067_s5 + $0x360] sm:$0xf] }
 0x32e   : > { %5099 = vmatmul.mubr.msk.f32.gmra.mrb[10].mxu1 %vm1316_vm6, %v1548_v35 }
 0x32f   : > { %6106 = vmatpush1.bf16.msra.mxu1 %v6105_v31  ;;  %1766 = vmatprep.mubr.f32.mxu1 %v6816_v7  ;;  %v1910_v31 = vrot.slane %v1901_v28, %v7142_v22  ;;  %v5157_v28 = vld [vmem:[%s9071_s9 + $0x58] sm:$0xff] }
 0x330   : > { %6108 = vmatprep.subr.bf16.mxu1 %v6107_v32 }
 0x333   : > { %6110 = vmatpush1.bf16.msra.mxu1 %v6109_v38 }
 0x334   : > { %6112 = vmatprep.subr.bf16.mxu1 %v6111_v39 }
 0x337   : > { %6114 = vmatpush1.bf16.msra.mxu1 %v6113_v44 }
 0x338   : > { %6116 = vmatprep.subr.bf16.mxu1 %v6115_v45 }
 0x33b   : > { %6118 = vmatpush1.bf16.msra.mxu1 %v6117_v48  ;;  %v1921_v48 = vld [vmem:[%s9069_s7] sm:$0x1f] }
 0x33c   : > { %5122 = vmatprep.subr.msk.mxu1 %vm1129_vm1, %v5121_v49  ;;  %v6146_v49 = vpack.c.bf16 %v2005_v47, %v2004_v46  ;;  %v5165_v46 = vld [vmem:[%s9071_s9 + $0x98] sm:$0xff]  ;;  %v5176_v47 = vld [vmem:[%s9071_s9 + $0xe0] sm:$0xff] }
 0x33f   : > { %5123 = vmatpush1.msk.msra.mxu1 %vm1129_vm1, %v5120_v57  ;;  %v2010_v57 = vld [vmem:[%s9070_s8 + $0x30] sm:$0xff] }
 0x340   : > { %5124 = vmatmul.mubr.msk.f32.vlgmr.msra.gmra.mrb[8].mxu1 %vm1316_vm6, %v1665_v0  ;;  %6120 = vmatprep.subr.bf16.mxu1 %v6119_v59  ;;  %v2011_v59 = vld [vmem:[%s9070_s8 + $0x38] sm:$0xff]  ;;  %v2014_v0 = vld [vmem:[%s9070_s8 + $0x50] sm:$0xff] }
 0x341   : > { %6122 = vmatpush1.bf16.msra.mxu1 %v6121_v60  ;;  %1772 = vmatprep.mubr.f32.mxu1 %v6816_v7  ;;  %v6155_v60 = vpack.c.bf16 %v2011_v59, %v2010_v57  ;;  %v6161_v2 = vpack.c.bf16 %v2015_v1, %v2014_v0  ;;  %v5191_v57 = vld [vmem:[%s9071_s9 + $0x148] sm:$0xff]  ;;  %v6191_v59 = vpack.c.bf16 %v2101_v55, %v2100_v54  ;;  %v5193_v0 = vld [vmem:[%s9071_s9 + $0x158] sm:$0xff]  ;;  %v2536_v55 = vld [vmem:[%s9073_s11 + $0x30] sm:$0xff] }
 0x342   : > { %6124 = vmatprep.subr.bf16.mxu1 %v6123_v61  ;;  %v2012_v61 = vld [vmem:[%s9070_s8 + $0x40] sm:$0xff] }
 0x343   : > { %v6158_v63 = vpack.c.bf16 %v2013_v62, %v2012_v61  ;;  %v2102_v61 = vld [vmem:[%s9071_s9 + $0x10] sm:$0xff]  ;;  %v2103_v62 = vld [vmem:[%s9071_s9 + $0x18] sm:$0xff] }
 0x344   : > { %5125 = vmatmul.mubr.msk.f32.gmra.mrb[10].mxu1 %vm1316_vm6, %v1666_v8  ;;  %v2019_v8 = vld [vmem:[%s9070_s8 + $0x78] sm:$0xff] }
 0x345   : > { %6126 = vmatpush1.bf16.msra.mxu1 %v6125_v3  ;;  %1884 = vmatprep.mubr.f32.mxu1 %v6816_v7  ;;  %v2016_v3 = vld [vmem:[%s9070_s8 + $0x60] sm:$0xff]  ;;  %v6167_v9 = vpack.c.bf16 %v2019_v8, %v2018_v6  ;;  %v2105_v6 = vld [vmem:[%s9071_s9 + $0x28] sm:$0xff] }
 0x346   : > { %6128 = vmatprep.subr.bf16.mxu1 %v6127_v4  ;;  %v2017_v4 = vld [vmem:[%s9070_s8 + $0x68] sm:$0xff]  ;;  %v5194_v8 = vld [vmem:[%s9071_s9 + $0x160] sm:$0xff] }
 0x347   : > { %v6164_v5 = vpack.c.bf16 %v2017_v4, %v2016_v3  ;;  %v6194_v3 = vpack.c.bf16 %v2103_v62, %v2102_v61  ;;  %v2540_v62 = vld [vmem:[%s9073_s11 + $0x50] sm:$0xff] }
 0x349   : > { %6130 = vmatpush1.bf16.msra.mxu1 %v6129_v11  ;;  %v2021_v11 = vld [vmem:[%s9070_s8 + $0x88] sm:$0xff] }
 0x34a   : > { %6132 = vmatprep.subr.bf16.mxu1 %v6131_v12  ;;  %v6170_v12 = vpack.c.bf16 %v2021_v11, %v2020_v10 }
 0x34d   : > { %6134 = vmatpush1.bf16.msra.mxu1 %v6133_v17  ;;  %v5169_v17 = vld [vmem:[%s9071_s9 + $0xa8] sm:$0xff] }
 0x34e   : > { %6136 = vmatprep.subr.bf16.mxu1 %v6135_v18  ;;  %v6206_v18 = vpack.c.bf16 %v5169_v17, %v5168_v16 }
 0x351   : > { %6138 = vmatpush1.bf16.msra.mxu1 %v6137_v23  ;;  %v6209_v23 = vpack.c.bf16 %v5171_v21, %v5170_v19  ;;  %v2109_v19 = vld [vmem:[%s9071_s9 + $0x48] sm:$0xff]  ;;  %v5198_v21 = vld [vmem:[%s9071_s9 + $0x180] sm:$0xff] }
 0x352   : > { %5148 = vmatprep.subr.msk.mxu1 %vm1129_vm1, %v5147_v24  ;;  %v5172_v24 = vld [vmem:[%s9071_s9 + $0xc0] sm:$0xff] }
 0x355   : > { %5149 = vmatpush1.msk.msra.mxu1 %vm1129_vm1, %v5146_v25  ;;  %v5173_v25 = vld [vmem:[%s9071_s9 + $0xc8] sm:$0xff] }
 0x356   : > { %5150 = vmatmul.mubr.msk.f32.vlgmr.msra.gmra.mrb[8].mxu1 %vm1316_vm6, %v1783_v26  ;;  %6205 = vmatprep.subr.bf16.mxu1 %v6818_v58  ;;  %v6212_v26 = vpack.c.bf16 %v5173_v25, %v5172_v24 }
 0x357   : > { %1890 = vmatprep.mubr.f32.mxu1 %v6816_v7  ;;  %6207 = vmatpush3.bf16.msra.mxu1 %v6206_v18  ;;  %v2108_v18 = vld [vmem:[%s9071_s9 + $0x40] sm:$0xff] }
 0x358   : > { %6208 = vmatprep.subr.bf16.mxu1 %v6818_v58  ;;  %v6203_v24 = vpack.c.bf16 %v2109_v19, %v2108_v18  ;;  %v2625_v19 = vld [vmem:[%s9075_s13 + $0x20] sm:$0xff] }
 0x35a   : > { %5151 = vmatmul.mubr.msk.f32.gmra.mrb[10].mxu1 %vm1316_vm6, %v1784_v27  ;;  %v5156_v27 = vld [vmem:[%s9071_s9 + $0x50] sm:$0xff] }
 0x35b   : > { %6210 = vmatpush3.bf16.msra.mxu1 %v6209_v23  ;;  %5679 = vmatprep.mubr.msk.f32.mxu1 %vm6819_vm11, %v6816_v7  ;;  %v5199_v23 = vld [vmem:[%s9071_s9 + $0x188] sm:$0xff] }
 0x35c   : > { %6211 = vmatprep.subr.bf16.mxu1 %v6818_v58  ;;  %v6248_v25 = vpack.c.bf16 %v5199_v23, %v5198_v21  ;;  %v2626_v21 = vld [vmem:[%s9075_s13 + $0x28] sm:$0xff] }
 0x35d   : > { %v6278_v23 = vpack.c.bf16 %v2626_v21, %v2625_v19  ;;  %v5205_v19 = vld [vmem:[%s6991_s29 + $0x28] sm:$0xff] }
 0x35f   : > { %6213 = vmatpush3.bf16.msra.mxu1 %v6212_v26  ;;  %v5179_v26 = vld [vmem:[%s9071_s9 + $0xf0] sm:$0xff] }
 0x360   : > { %6214 = vmatprep.subr.bf16.mxu1 %v6818_v58 }
 0x429   : > { %v1886_v30 = vpop.f32.mrb[8].mxu1 }
 0x42a   : > { %v1888_v32 = vpop.f32.mrb[9].mxu1  ;;  %v1913_v33 = vadd.f32 %v1906_v29, %v1886_v30  ;;  %v6176_v30 = vpack.c.bf16 %v5157_v28, %v5156_v27  ;;  %v5180_v27 = vld [vmem:[%s9071_s9 + $0xf8] sm:$0xff] }
 0x42b   : > { %v1914_v34 = vadd.f32 %v1910_v31, %v1888_v32  ;;  %v5158_v32 = vld [vmem:[%s9071_s9 + $0x60] sm:$0xff]  ;;  %v6221_v28 = vpack.c.bf16 %v5180_v27, %v5179_v26 }
 0x42c   : > { %v1917_v39 = vmax.f32 %v1913_v33, 0.0  ;;  %v5159_v33 = vld [vmem:[%s9071_s9 + $0x68] sm:$0xff] }
 0x42d   : > { %v1892_v35 = vpop.f32.mrb[10].mxu1  ;;  %v1918_v41 = vmax.f32 %v1914_v34, 0.0  ;;  %v6179_v34 = vpack.c.bf16 %v5159_v33, %v5158_v32 }
 0x42e   : > { %v1915_v36 = vadd.f32 %v1906_v29, %v1892_v35  ;;  %v1894_v37 = vpop.f32.mrb[11].mxu1  ;;  %v5160_v35 = vld [vmem:[%s9071_s9 + $0x70] sm:$0xff] }
 0x42f   : > { %v1916_v38 = vadd.f32 %v1910_v31, %v1894_v37 }
 0x430   : > { %v1919_v40 = vmax.f32 %v1915_v36, 0.0  ;;  %v5161_v36 = vld [vmem:[%s9071_s9 + $0x78] sm:$0xff] }
 0x431   : > { %v1920_v42 = vmax.f32 %v1916_v38, 0.0  ;;  %v6182_v37 = vpack.c.bf16 %v5161_v36, %v5160_v35  ;;  %v5162_v38 = vld [vmem:[%s9071_s9 + $0x80] sm:$0xff]  ;;  %v5184_v35 = vld [vmem:[%s9071_s9 + $0x118] sm:$0xff] }
 0x432   : > { %v6142_v43 = vpack.c.bf16 %v1919_v40, %v1917_v39  ;;  %v5163_v39 = vld [vmem:[%s9071_s9 + $0x88] sm:$0xff]  ;;  %v5174_v40 = vld [vmem:[%s9071_s9 + $0xd0] sm:$0xff] }
 0x433   : > { %v6139_v45 = vpack.c.bf16 %v1920_v42, %v1918_v41  ;;  %v6185_v41 = vpack.c.bf16 %v5163_v39, %v5162_v38  ;;  %v5175_v42 = vld [vmem:[%s9071_s9 + $0xd8] sm:$0xff]  ;;  %v5186_v38 = vld [vmem:[%s9071_s9 + $0x128] sm:$0xff] }
 0x435   : > { %6141 = vmatprep.subr.msk.bf16.mxu0 %vm7610_vm9, %v6139_v45  ;;  %v5164_v45 = vld [vmem:[%s9071_s9 + $0x90] sm:$0xff] }
 0x436   : > { %6144 = vmatpush1.bf16.msk.msra.mxu0 %vm7610_vm9, %v6142_v43  ;;  %v6215_v43 = vpack.c.bf16 %v5175_v42, %v5174_v40  ;;  %v5187_v40 = vld [vmem:[%s9071_s9 + $0x130] sm:$0xff] }
 0x437   : > { %6145 = vmatprep.subr.bf16.mxu0 %v6818_v58 }
 0x438   : > { %6216 = vmatpush3.bf16.msra.mxu1 %v6215_v43 }
 0x439   : > { %5154 = vmatmul.mubr.msk.f32.vlgmr.msra.gmra.mrb[8].mxu0 %vm1922_vm10, %v1921_v48  ;;  %v6188_v48 = vpack.c.bf16 %v5165_v46, %v5164_v45  ;;  %6217 = vmatprep.subr.bf16.mxu1 %v6818_v58  ;;  %v2530_v45 = vld [vmem:[%s9073_s11] sm:$0xff]  ;;  %v2531_v46 = vld [vmem:[%s9073_s11 + $0x8] sm:$0xff] }
 0x43a   : > { %6147 = vmatpush1.bf16.msra.mxu0 %v6146_v49  ;;  %v5177_v49 = vld [vmem:[%s9071_s9 + $0xe8] sm:$0xff] }
 0x43b   : > { %6148 = vmatprep.subr.bf16.mxu0 %v6818_v58  ;;  %v6218_v50 = vpack.c.bf16 %v5177_v49, %v5176_v47  ;;  %v6251_v47 = vpack.c.bf16 %v2531_v46, %v2530_v45  ;;  %v2533_v49 = vld [vmem:[%s9073_s11 + $0x18] sm:$0xff] }
 0x43d   : > { %6219 = vmatpush3.bf16.msra.mxu1 %v6218_v50 }
 0x43e   : > { %6150 = vmatpush1.bf16.msra.mxu0 %v6149_v53  ;;  %6235 = vmatprep.subr.bf16.mxu1 %v6818_v58 }
 0x43f   : > { %6151 = vmatprep.subr.bf16.mxu0 %v6818_v58 }
 0x442   : > { %6153 = vmatpush1.bf16.msra.mxu0 %v6152_v56  ;;  %v5190_v56 = vld [vmem:[%s9071_s9 + $0x140] sm:$0xff] }
 0x443   : > { %6154 = vmatprep.subr.bf16.mxu0 %v6818_v58 }
 0x446   : > { %6156 = vmatpush1.bf16.msra.mxu0 %v6155_v60  ;;  %v6236_v60 = vpack.c.bf16 %v5191_v57, %v5190_v56  ;;  %v2537_v56 = vld [vmem:[%s9073_s11 + $0x38] sm:$0xff] }
 0x447   : > { %6157 = vmatprep.subr.bf16.mxu0 %v6818_v58  ;;  %v6260_v57 = vpack.c.bf16 %v2537_v56, %v2536_v55  ;;  %v2716_v55 = vld [vmem:[%s9063_s1 + $0x10] sm:$0xff]  ;;  %v2719_v56 = vld [vmem:[%s9063_s1 + $0x28] sm:$0xff] }
 0x44a   : > { %6159 = vmatpush1.bf16.msra.mxu0 %v6158_v63  ;;  %v5192_v63 = vld [vmem:[%s9071_s9 + $0x150] sm:$0xff] }
 0x44b   : > { %6160 = vmatprep.subr.bf16.mxu0 %v6818_v58  ;;  %v6239_v4 = vpack.c.bf16 %v5193_v0, %v5192_v63  ;;  %v2541_v63 = vld [vmem:[%s9073_s11 + $0x58] sm:$0xff] }
 0x44c   : > { %v6266_v0 = vpack.c.bf16 %v2541_v63, %v2540_v62  ;;  %v2718_v62 = vld [vmem:[%s9063_s1 + $0x20] sm:$0xff]  ;;  %v2720_v63 = vld [vmem:[%s9063_s1 + $0x30] sm:$0xff] }
 0x44e   : > { %6162 = vmatpush1.bf16.msra.mxu0 %v6161_v2 }
 0x44f   : > { %6163 = vmatprep.subr.bf16.mxu0 %v6818_v58 }
 0x452   : > { %6165 = vmatpush1.bf16.msra.mxu0 %v6164_v5  ;;  %v2104_v5 = vld [vmem:[%s9071_s9 + $0x20] sm:$0xff] }
 0x453   : > { %6166 = vmatprep.subr.bf16.mxu0 %v6818_v58  ;;  %v6197_v10 = vpack.c.bf16 %v2105_v6, %v2104_v5  ;;  %v5215_v5 = vld [vmem:[%s9063_s1 + $0x58] sm:$0xff]  ;;  %v2544_v6 = vld [vmem:[%s9073_s11 + $0x70] sm:$0xff] }
 0x456   : > { %6168 = vmatpush1.bf16.msra.mxu0 %v6167_v9  ;;  %v5195_v9 = vld [vmem:[%s9071_s9 + $0x168] sm:$0xff] }
 0x457   : > { %6169 = vmatprep.subr.bf16.mxu0 %v6818_v58  ;;  %v6242_v11 = vpack.c.bf16 %v5195_v9, %v5194_v8 }
 0x45a   : > { %6171 = vmatpush1.bf16.msra.mxu0 %v6170_v12  ;;  %v2106_v12 = vld [vmem:[%s9071_s9 + $0x30] sm:$0xff] }
 0x45b   : > { %6172 = vmatprep.subr.bf16.mxu0 %v6818_v58  ;;  %v6200_v16 = vpack.c.bf16 %v2107_v13, %v2106_v12  ;;  %v2621_v13 = vld [vmem:[%s9075_s13] sm:$0xff] }
 0x45e   : > { %6174 = vmatpush1.bf16.msra.mxu0 %v6173_v15  ;;  %v5197_v15 = vld [vmem:[%s9071_s9 + $0x178] sm:$0xff] }
 0x45f   : > { %6175 = vmatprep.subr.bf16.mxu0 %v6818_v58  ;;  %v6245_v17 = vpack.c.bf16 %v5197_v15, %v5196_v14  ;;  %v2622_v14 = vld [vmem:[%s9075_s13 + $0x8] sm:$0xff]  ;;  %v2623_v15 = vld [vmem:[%s9075_s13 + $0x10] sm:$0xff] }
 0x50c   : > { %v1999_v29 = vpop.f32.mrb[8].mxu0 }
 0x50d   : > { %v2001_v31 = vpop.f32.mrb[9].mxu0 }
 0x50e   : > { %5155 = vmatprep.mubr.msk.f32.mxu0 %vm523_vm0, %v2001_v31 }
 0x50f   : > { %2092 = vmatmul.mubr.f32.vlgmr.msra.gmra.mrb[10].mxu0 %v1999_v29  ;;  %v5181_v29 = vld [vmem:[%s9071_s9 + $0x100] sm:$0xff] }
 0x510   : > { %6177 = vmatpush3.bf16.msra.mxu0 %v6176_v30  ;;  %5633 = vmatprep.mubr.msk.f32.mxu0 %vm6819_vm11, %v6816_v7  ;;  %v5182_v30 = vld [vmem:[%s9071_s9 + $0x108] sm:$0xff] }
 0x511   : > { %6178 = vmatprep.subr.bf16.mxu0 %v6818_v58  ;;  %v6224_v33 = vpack.c.bf16 %v5182_v30, %v5181_v29 }
 0x514   : > { %6180 = vmatpush3.bf16.msra.mxu0 %v6179_v34  ;;  %v5183_v34 = vld [vmem:[%s9071_s9 + $0x110] sm:$0xff] }
 0x515   : > { %6181 = vmatprep.subr.bf16.mxu0 %v6818_v58  ;;  %v6227_v36 = vpack.c.bf16 %v5184_v35, %v5183_v34 }
 0x518   : > { %6183 = vmatpush3.bf16.msra.mxu0 %v6182_v37  ;;  %v5185_v37 = vld [vmem:[%s9071_s9 + $0x120] sm:$0xff] }
 0x519   : > { %6184 = vmatprep.subr.bf16.mxu0 %v6818_v58  ;;  %v6230_v39 = vpack.c.bf16 %v5186_v38, %v5185_v37  ;;  %v5212_v38 = vld [vmem:[%s9063_s1 + $0x40] sm:$0xff] }
 0x51c   : > { %6186 = vmatpush3.bf16.msra.mxu0 %v6185_v41  ;;  %v5188_v41 = vld [vmem:[%s9071_s9 + $0x138] sm:$0xff] }
 0x51d   : > { %6187 = vmatprep.subr.bf16.mxu0 %v6818_v58  ;;  %v6233_v42 = vpack.c.bf16 %v5188_v41, %v5187_v40  ;;  %v5217_v40 = vld [vmem:[%s9063_s1 + $0x68] sm:$0xff]  ;;  %v5219_v41 = vld [vmem:[%s9063_s1 + $0x78] sm:$0xff] }
 0x51e   : > { %v6290_v46 = vpack.c.bf16 %v5219_v41, %v5217_v40  ;;  %v5230_v40 = vld [vmem:[%s6991_s29 + $0x32] sm:$0xff]  ;;  %v5231_v41 = vld [vmem:[%s6991_s29 + $0x3a] sm:$0xf] }
 0x520   : > { %6189 = vmatpush3.bf16.msra.mxu0 %v6188_v48  ;;  %v2532_v48 = vld [vmem:[%s9073_s11 + $0x10] sm:$0xff] }
 0x521   : > { %6190 = vmatprep.subr.bf16.mxu0 %v6818_v58  ;;  %v6254_v50 = vpack.c.bf16 %v2533_v49, %v2532_v48  ;;  %v5218_v48 = vld [vmem:[%s9063_s1 + $0x70] sm:$0xff]  ;;  %v2715_v49 = vld [vmem:[%s9063_s1 + $0x8] sm:$0xff] }
 0x5e2   : > { %v2093_v51 = vpop.f32.mrb[10].mxu0 }
 0x5e3   : > { %2098 = vst.msk [vmem:[#allocation3] sm:$0x1f] %vm2097_vm12, %v2093_v51  ;;  %v2095_v53 = vpop.f32.mrb[11].mxu0  ;;  %v2534_v51 = vld [vmem:[%s9073_s11 + $0x20] sm:$0xff] }
 0x5e4   : > { %v2535_v53 = vld [vmem:[%s9073_s11 + $0x28] sm:$0xff] }
 0x5e5   : > { %v6257_v54 = vpack.c.bf16 %v2535_v53, %v2534_v51 }
 0x5ea   : > { %v2110_v1 = vld [vmem:[#allocation3 + $0x1] sm:$0x1]  ;;  %v2269_v2 = vld [vmem:[#allocation3 + $0x2] sm:$0x1]  ;;  %v2099_v31 = vld [vmem:[#allocation3] sm:$0x1] }
 0x5eb   : > { %5634 = vmatmul.mubr.msk.f32.vlgmr.msra.gmra.mrb[12].mxu0 %vm2122_vm13, %v2110_v1  ;;  %5680 = vmatmul.mubr.msk.f32.vlgmr.msra.gmra.mrb[12].mxu1 %vm2122_vm13, %v2269_v2  ;;  %v2441_v32 = vld [vmem:[#allocation3 + $0x4] sm:$0x1]  ;;  %v2355_v43 = vld [vmem:[#allocation3 + $0x3] sm:$0x1]  ;;  %v2542_v1 = vld [vmem:[%s9073_s11 + $0x60] sm:$0xff] }
 0x5ec   : > { %6192 = vmatpush3.bf16.msra.mxu0 %v6191_v59  ;;  %6237 = vmatpush3.bf16.msra.mxu1 %v6236_v60  ;;  %v2538_v59 = vld [vmem:[%s9073_s11 + $0x40] sm:$0xff]  ;;  %v2539_v60 = vld [vmem:[%s9073_s11 + $0x48] sm:$0xff] }
 0x5ed   : > { %6193 = vmatprep.subr.bf16.mxu0 %v6818_v58  ;;  %6238 = vmatprep.subr.bf16.mxu1 %v6818_v58  ;;  %v6263_v61 = vpack.c.bf16 %v2539_v60, %v2538_v59  ;;  %v2543_v2 = vld [vmem:[%s9073_s11 + $0x68] sm:$0xff] }
 0x5ee   : > { %5656 = vmatprep.mubr.msk.f32.mxu0 %vm6819_vm11, %v6816_v7  ;;  %5725 = vmatprep.mubr.msk.f32.mxu1 %vm6819_vm11, %v6816_v7  ;;  %v5208_v59 = vld [vmem:[%s6991_s29 + $0x21] sm:$0xff] }
 0x5f0   : > { %6195 = vmatpush3.bf16.msra.mxu0 %v6194_v3  ;;  %6240 = vmatpush3.bf16.msra.mxu1 %v6239_v4  ;;  %v6269_v3 = vpack.c.bf16 %v2543_v2, %v2542_v1  ;;  %v5213_v4 = vld [vmem:[%s9063_s1 + $0x48] sm:$0xff]  ;;  %v5235_v1 = vld [vmem:[%s9063_s1 + $0x98] sm:$0xff] }
 0x5f1   : > { %6196 = vmatprep.subr.bf16.mxu0 %v6818_v58  ;;  %6241 = vmatprep.subr.bf16.mxu1 %v6818_v58  ;;  %v6286_v8 = vpack.c.bf16 %v5215_v5, %v5213_v4  ;;  %v5209_v2 = vld [vmem:[%s6991_s29 + $0x29] sm:$0xff]  ;;  %v5210_v5 = vld [vmem:[%s6991_s29 + $0x31] sm:$0xff] }
 0x5f4   : > { %6198 = vmatpush3.bf16.msra.mxu0 %v6197_v10  ;;  %6243 = vmatpush3.bf16.msra.mxu1 %v6242_v11 }
 0x5f5   : > { %6199 = vmatprep.subr.bf16.mxu0 %v6818_v58  ;;  %6244 = vmatprep.subr.bf16.mxu1 %v6818_v58 }
 0x5f8   : > { %6201 = vmatpush3.bf16.msra.mxu0 %v6200_v16  ;;  %6246 = vmatpush3.bf16.msra.mxu1 %v6245_v17  ;;  %v6272_v16 = vpack.c.bf16 %v2622_v14, %v2621_v13  ;;  %v2624_v17 = vld [vmem:[%s9075_s13 + $0x18] sm:$0xff] }
 0x5f9   : > { %6202 = vmatprep.subr.bf16.mxu0 %v6818_v58  ;;  %6247 = vmatprep.subr.bf16.mxu1 %v6818_v58  ;;  %v6275_v18 = vpack.c.bf16 %v2624_v17, %v2623_v15  ;;  %v5236_v15 = vld [vmem:[%s9063_s1 + $0xa0] sm:$0xff]  ;;  %v5249_v17 = vld [vmem:[%s9063_s1 + $0xc8] sm:$0xff] }
 0x5fc   : > { %6204 = vmatpush3.bf16.msra.mxu0 %v6203_v24  ;;  %6249 = vmatpush3.bf16.msra.mxu1 %v6248_v25  ;;  %v2627_v24 = vld [vmem:[%s9075_s13 + $0x30] sm:$0xff]  ;;  %v2628_v25 = vld [vmem:[%s9075_s13 + $0x38] sm:$0xff] }
 0x5fd   : > { %6220 = vmatprep.subr.bf16.mxu0 %v6818_v58  ;;  %6271 = vmatprep.subr.bf16.mxu1 %v6818_v58  ;;  %v6281_v26 = vpack.c.bf16 %v2628_v25, %v2627_v24  ;;  %v5206_v24 = vld [vmem:[%s6991_s29 + $0x30] sm:$0xff]  ;;  %v5207_v25 = vld [vmem:[%s6991_s29 + $0x38] sm:$0xf] }
 0x5ff   : > { %5657 = vmatmul.mubr.msk.f32.vlgmr.msra.gmra.mrb[14].mxu0 %vm2122_vm13, %v2099_v31  ;;  %5726 = vmatmul.mubr.msk.f32.vlgmr.msra.gmra.mrb[14].mxu1 %vm2122_vm13, %v2441_v32 }
 0x600   : > { %6222 = vmatpush3.bf16.msra.mxu0 %v6221_v28  ;;  %5702 = vmatprep.mubr.msk.f32.mxu0 %vm6819_vm11, %v6816_v7 }
 0x601   : > { %6223 = vmatprep.subr.bf16.mxu0 %v6818_v58  ;;  %5783 = vmatprep.mubr.msk.f32.mxu1 %vm6819_vm11, %v6816_v7 }
 0x602   : > { %6273 = vmatpush3.bf16.msra.mxu1 %v6272_v16  ;;  %v5238_v16 = vld [vmem:[%s9063_s1 + $0xb0] sm:$0xff] }
 0x603   : > { %6274 = vmatprep.subr.bf16.mxu1 %v6818_v58  ;;  %v6308_v21 = vpack.c.bf16 %v5238_v16, %v5236_v15 }
 0x604   : > { %6225 = vmatpush3.bf16.msra.mxu0 %v6224_v33 }
 0x605   : > { %6226 = vmatprep.subr.bf16.mxu0 %v6818_v58 }
 0x606   : > { %6276 = vmatpush3.bf16.msra.mxu1 %v6275_v18  ;;  %v5251_v18 = vld [vmem:[%s9063_s1 + $0xd8] sm:$0xff] }
 0x607   : > { %6277 = vmatprep.subr.bf16.mxu1 %v6818_v58 }
 0x608   : > { %6228 = vmatpush3.bf16.msra.mxu0 %v6227_v36  ;;  %v2527_v36 = vld [vmem:[%s9072_s10] sm:$0x1] }
 0x609   : > { %6229 = vmatprep.subr.bf16.mxu0 %v6818_v58 }
 0x60a   : > { %6279 = vmatpush3.bf16.msra.mxu1 %v6278_v23  ;;  %v6310_v23 = vpack.c.bf16 %v5251_v18, %v5249_v17 }
 0x60b   : > { %6280 = vmatprep.subr.bf16.mxu1 %v6818_v58 }
 0x60c   : > { %6231 = vmatpush3.bf16.msra.mxu0 %v6230_v39  ;;  %v5214_v39 = vld [vmem:[%s9063_s1 + $0x50] sm:$0xff] }
 0x60d   : > { %6232 = vmatprep.subr.bf16.mxu0 %v6818_v58 }
 0x60e   : > { %6282 = vmatpush3.bf16.msra.mxu1 %v6281_v26  ;;  %v5248_v26 = vld [vmem:[%s9063_s1 + $0xc0] sm:$0xff] }
 0x60f   : > { %6283 = vmatprep.subr.bf16.mxu1 %v6818_v58 }
 0x610   : > { %6234 = vmatpush3.bf16.msra.mxu0 %v6233_v42 }
 0x611   : > { %6250 = vmatprep.subr.bf16.mxu0 %v6818_v58 }
 0x613   : > { %5703 = vmatmul.mubr.msk.f32.vlgmr.msra.gmra.mrb[16].mxu0 %vm2122_vm13, %v2355_v43  ;;  %v6288_v43 = vpack.c.bf16 %v5214_v39, %v5212_v38 }
 0x614   : > { %5758 = vmatprep.mubr.msk.f32.mxu0 %vm6819_vm11, %v6816_v7  ;;  %6252 = vmatpush3.bf16.msra.mxu0 %v6251_v47  ;;  %v5216_v47 = vld [vmem:[%s9063_s1 + $0x60] sm:$0xff] }
 0x615   : > { %6253 = vmatprep.subr.bf16.mxu0 %v6818_v58  ;;  %v6292_v51 = vpack.c.bf16 %v5218_v48, %v5216_v47  ;;  %v5244_v47 = vld [vmem:[%s6991_s29 + $0x23] sm:$0xff] }
 0x618   : > { %6255 = vmatpush3.bf16.msra.mxu0 %v6254_v50  ;;  %v2717_v50 = vld [vmem:[%s9063_s1 + $0x18] sm:$0xff] }
 0x619   : > { %6256 = vmatprep.subr.bf16.mxu0 %v6818_v58  ;;  %v6294_v53 = vpack.c.bf16 %v2717_v50, %v2715_v49  ;;  %v5268_v50 = vld [vmem:[%s9063_s1 + $0x120] sm:$0xff] }
 0x61c   : > { %6258 = vmatpush3.bf16.msra.mxu0 %v6257_v54  ;;  %v2714_v54 = vld [vmem:[%s9063_s1] sm:$0xff] }
 0x61d   : > { %6259 = vmatprep.subr.bf16.mxu0 %v6818_v58  ;;  %v6296_v60 = vpack.c.bf16 %v2716_v55, %v2714_v54  ;;  %v5246_v55 = vld [vmem:[%s6991_s29 + $0x33] sm:$0xff] }
 0x620   : > { %6261 = vmatpush3.bf16.msra.mxu0 %v6260_v57  ;;  %v2721_v57 = vld [vmem:[%s9063_s1 + $0x38] sm:$0xff] }
 0x621   : > { %6262 = vmatprep.subr.bf16.mxu0 %v6818_v58 }
 0x624   : > { %6264 = vmatpush3.bf16.msra.mxu0 %v6263_v61  ;;  %v6298_v61 = vpack.c.bf16 %v2721_v57, %v2719_v56  ;;  %v5247_v56 = vld [vmem:[%s6991_s29 + $0x3b] sm:$0xf]  ;;  %v5260_v57 = vld [vmem:[%s6991_s29 + $0x24] sm:$0xff] }
 0x625   : > { %6265 = vmatprep.subr.bf16.mxu0 %v6818_v58 }
 0x628   : > { %6267 = vmatpush3.bf16.msra.mxu0 %v6266_v0  ;;  %v5233_v0 = vld [vmem:[%s9063_s1 + $0x88] sm:$0xff] }
 0x629   : > { %6268 = vmatprep.subr.bf16.mxu0 %v6818_v58  ;;  %v6302_v4 = vpack.c.bf16 %v5235_v1, %v5233_v0  ;;  %v2631_v1 = vld [vmem:[%s9075_s13 + $0x50] sm:$0xf] }
 0x62c   : > { %6270 = vmatpush3.bf16.msra.mxu0 %v6269_v3  ;;  %v6300_v3 = vpack.c.bf16 %v2720_v63, %v2718_v62  ;;  %v2629_v62 = vld [vmem:[%s9075_s13 + $0x40] sm:$0xff]  ;;  %v2630_v63 = vld [vmem:[%s9075_s13 + $0x48] sm:$0xff] }
 0x62d   : > { %5756 = vmatprep.subr.mxu0 %v6816_v7  ;;  %v6284_v0 = vpack.c.bf16 %v2630_v63, %v2629_v62  ;;  %v3430_v63 = vld [vmem:[%s9066_s4 + $0x60] sm:$0xff] }
 0x62f   : > { %6285 = vmatpush3.bf16.msra.mxu1 %v6284_v0  ;;  %v3431_v0 = vld [vmem:[%s9066_s4 + $0x68] sm:$0xff] }
 0x630   : > { %5757 = vmatpush3.msra.mxu0 %v2544_v6  ;;  %v5211_v6 = vld [vmem:[%s6991_s29 + $0x39] sm:$0xf]  ;;  %5781 = vmatprep.subr.mxu1 %v6816_v7 }
 0x631   : > { %6287 = vmatprep.subr.bf16.mxu0 %v6286_v8  ;;  %v5232_v8 = vld [vmem:[%s9063_s1 + $0x80] sm:$0xff] }
 0x633   : > { %5782 = vmatpush3.msk.msra.mxu1 %vm1129_vm1, %v2631_v1  ;;  %v6355_v1 = vpack.c.bf16 %v3431_v0, %v3430_v63  ;;  %v3526_v63 = vld [vmem:[%s9067_s5 + $0x10] sm:$0xff]  ;;  %v3529_v0 = vld [vmem:[%s9067_s5 + $0x28] sm:$0xff] }
 0x6be   : > { %v2192_v9 = vpop.f32.mrb[12].mxu0  ;;  %v2350_v10 = vpop.f32.mrb[12].mxu1 }
 0x6bf   : > { %v5635_v11 = vpop.f32.mrb[13].mxu0  ;;  %v5681_v12 = vpop.f32.mrb[13].mxu1 }
 0x6c0   : > { %v5239_v11 = vld [vmem:[%s9063_s1 + $0xb8] sm:$0xff]  ;;  %v5204_v12 = vld [vmem:[%s6991_s29 + $0x20] sm:$0xff] }
 0x6d2   : > { %v2265_v27 = vpop.f32.mrb[14].mxu0  ;;  %v2522_v28 = vpop.f32.mrb[14].mxu1 }
 0x6d3   : > { %v2266_v29 = vadd.f32 %v2265_v27, %v2192_v9  ;;  %v5658_v30 = vpop.f32.mrb[15].mxu0  ;;  %v5727_v31 = vpop.f32.mrb[15].mxu1  ;;  %v5234_v9 = vld [vmem:[%s9063_s1 + $0x90] sm:$0xff] }
 0x6d4   : > { %v6304_v13 = vpack.c.bf16 %v5234_v9, %v5232_v8  ;;  %v5250_v27 = vld [vmem:[%s9063_s1 + $0xd0] sm:$0xff]  ;;  %v5228_v30 = vld [vmem:[%s6991_s29 + $0x22] sm:$0xff]  ;;  %v3299_v8 = vld [vmem:[%s9064_s2] sm:$0x3] }
 0x6d5   : > { %v2354_v32 = vadd.f32 %v2350_v10, %v2266_v29  ;;  %v5237_v10 = vld [vmem:[%s9063_s1 + $0xa8] sm:$0xff]  ;;  %v5255_v29 = vld [vmem:[%s9063_s1 + $0xf8] sm:$0xff]  ;;  %v6312_v31 = vpack.c.bf16 %v5250_v27, %v5248_v26  ;;  %v3304_v9 = vrot.slane %v3299_v8, %v7137_v20 }
 0x6d6   : > { %v6306_v14 = vpack.c.bf16 %v5239_v11, %v5237_v10  ;;  %v3308_v11 = vrot.slane %v3299_v8, %v7142_v22 }
 0x6e6   : > { %v2436_v33 = vpop.f32.mrb[16].mxu0 }
 0x6e7   : > { %v2440_v34 = vadd.f32 %v2436_v33, %v2354_v32  ;;  %v5704_v35 = vpop.f32.mrb[17].mxu0  ;;  %v5252_v33 = vld [vmem:[%s9063_s1 + $0xe0] sm:$0xff] }
 0x6e8   : > { %v5265_v35 = vld [vmem:[%s9063_s1 + $0x108] sm:$0xff] }
 0x6e9   : > { %v2526_v37 = vadd.f32 %v2522_v28, %v2440_v34  ;;  %v5253_v28 = vld [vmem:[%s9063_s1 + $0xe8] sm:$0xff]  ;;  %v5254_v34 = vld [vmem:[%s9063_s1 + $0xf0] sm:$0xff] }
 0x6ea   : > { %v6314_v32 = vpack.c.bf16 %v5255_v29, %v5253_v28  ;;  %v6316_v38 = vpack.c.bf16 %v5254_v34, %v5252_v33 }
 0x6eb   : > { %v2528_v42 = vadd.f32 %v2527_v36, %v2526_v37  ;;  %v5267_v36 = vld [vmem:[%s9063_s1 + $0x118] sm:$0xff]  ;;  %v5229_v37 = vld [vmem:[%s6991_s29 + $0x2a] sm:$0xff] }
 0x6ec   : > { %v6318_v39 = vpack.c.bf16 %v5267_v36, %v5265_v35 }
 0x6ed   : > { %v2529_v45 = vmax.f32 %v2528_v42, 0.0  ;;  %v5264_v42 = vld [vmem:[%s9063_s1 + $0x100] sm:$0xff] }
 0x6ef   : > { %5759 = vmatmul.mubr.msk.f32.vlgmr.msra.gmra.mrb[18].mxu0 %vm2546_vm14, %v2529_v45  ;;  %v5269_v45 = vld [vmem:[%s9063_s1 + $0x128] sm:$0xff] }
 0x6f0   : > { %6289 = vmatpush1.bf16.msra.mxu0 %v6288_v43  ;;  %2810 = vmatprep.mubr.f32.mxu0 %v6816_v7  ;;  %v5266_v43 = vld [vmem:[%s9063_s1 + $0x110] sm:$0xff] }
 0x6f1   : > { %6291 = vmatprep.subr.bf16.mxu0 %v6290_v46  ;;  %v5271_v46 = vld [vmem:[%s9063_s1 + $0x138] sm:$0xff]  ;;  %v6320_v48 = vpack.c.bf16 %v5266_v43, %v5264_v42  ;;  %v3419_v42 = vld [vmem:[%s9066_s4 + $0x8] sm:$0xff]  ;;  %v3327_v43 = vld [vmem:[%s9065_s3] sm:$0xff] }
 0x6f2   : > { %v6322_v49 = vpack.c.bf16 %v5271_v46, %v5269_v45  ;;  %v3420_v46 = vld [vmem:[%s9066_s4 + $0x10] sm:$0xff] }
 0x6f4   : > { %6293 = vmatpush1.bf16.msra.mxu0 %v6292_v51  ;;  %v5270_v51 = vld [vmem:[%s9063_s1 + $0x130] sm:$0xff] }
 0x6f5   : > { %6295 = vmatprep.subr.bf16.mxu0 %v6294_v53  ;;  %v5245_v53 = vld [vmem:[%s6991_s29 + $0x2b] sm:$0xff]  ;;  %v6324_v54 = vpack.c.bf16 %v5270_v51, %v5268_v50 }
 0x6f6   : > { %v3423_v50 = vld [vmem:[%s9066_s4 + $0x28] sm:$0xff] }
 0x6f7   : > { %5220 = vmatmul.mubr.msk.f32.vlgmr.msra.gmra.mrb[20].mxu0 %vm523_vm0, %v5208_v59  ;;  %v5261_v59 = vld [vmem:[%s6991_s29 + $0x2c] sm:$0xff] }
 0x6f8   : > { %2816 = vmatprep.mubr.f32.mxu0 %v6816_v7  ;;  %6297 = vmatpush1.bf16.msra.mxu0 %v6296_v60  ;;  %v5262_v60 = vld [vmem:[%s6991_s29 + $0x34] sm:$0xff] }
 0x6f9   : > { %6299 = vmatprep.subr.bf16.mxu0 %v6298_v61  ;;  %v5263_v61 = vld [vmem:[%s6991_s29 + $0x3c] sm:$0xf] }
 0x6fb   : > { %5221 = vmatmul.mubr.msk.f32.gmra.mrb[22].mxu0 %vm523_vm0, %v5209_v2  ;;  %v2545_v2 = vld [vmem:[%s9074_s12] sm:$0x1] }
 0x6fc   : > { %2822 = vmatprep.mubr.f32.mxu0 %v6816_v7  ;;  %6301 = vmatpush1.bf16.msra.mxu0 %v6300_v3 }
 0x6fd   : > { %6303 = vmatprep.subr.bf16.mxu0 %v6302_v4 }
 0x6ff   : > { %5222 = vmatmul.mubr.msk.f32.gmra.mrb[24].mxu0 %vm523_vm0, %v5210_v5 }
 0x700   : > { %2828 = vmatprep.mubr.f32.mxu0 %v6816_v7 }
 0x703   : > { %5223 = vmatmul.mubr.msk.f32.gmra.mrb[26].mxu0 %vm523_vm0, %v5211_v6 }
 0x704   : > { %2911 = vmatprep.mubr.f32.mxu0 %v6816_v7 }
 0x707   : > { %5224 = vmatmul.mubr.msk.f32.vlgmr.msra.gmra.mrb[20].mxu0 %vm523_vm0, %v5204_v12 }
 0x708   : > { %2917 = vmatprep.mubr.f32.mxu0 %v6816_v7  ;;  %6305 = vmatpush1.bf16.msra.mxu0 %v6304_v13 }
 0x709   : > { %6307 = vmatprep.subr.bf16.mxu0 %v6306_v14 }
 0x70b   : > { %5225 = vmatmul.mubr.msk.f32.gmra.mrb[22].mxu0 %vm523_vm0, %v5205_v19 }
 0x70c   : > { %2923 = vmatprep.mubr.f32.mxu0 %v6816_v7  ;;  %6309 = vmatpush1.bf16.msra.mxu0 %v6308_v21 }
 0x70d   : > { %6311 = vmatprep.subr.bf16.mxu0 %v6310_v23 }
 0x70f   : > { %5226 = vmatmul.mubr.msk.f32.gmra.mrb[24].mxu0 %vm523_vm0, %v5206_v24 }
 0x710   : > { %2929 = vmatprep.mubr.f32.mxu0 %v6816_v7 }
 0x713   : > { %5227 = vmatmul.mubr.msk.f32.gmra.mrb[26].mxu0 %vm523_vm0, %v5207_v25 }
 0x714   : > { %3024 = vmatprep.mubr.f32.mxu0 %v6816_v7 }
 0x717   : > { %5240 = vmatmul.mubr.msk.f32.vlgmr.msra.gmra.mrb[20].mxu0 %vm523_vm0, %v5228_v30 }
 0x718   : > { %3030 = vmatprep.mubr.f32.mxu0 %v6816_v7  ;;  %6313 = vmatpush1.bf16.msra.mxu0 %v6312_v31 }
 0x719   : > { %6315 = vmatprep.subr.bf16.mxu0 %v6314_v32 }
 0x71b   : > { %5241 = vmatmul.mubr.msk.f32.gmra.mrb[22].mxu0 %vm523_vm0, %v5229_v37 }
 0x71c   : > { %3036 = vmatprep.mubr.f32.mxu0 %v6816_v7  ;;  %6317 = vmatpush1.bf16.msra.mxu0 %v6316_v38 }
 0x71d   : > { %6319 = vmatprep.subr.bf16.mxu0 %v6318_v39 }
 0x71f   : > { %5242 = vmatmul.mubr.msk.f32.gmra.mrb[24].mxu0 %vm523_vm0, %v5230_v40 }
 0x720   : > { %3042 = vmatprep.mubr.f32.mxu0 %v6816_v7 }
 0x723   : > { %5243 = vmatmul.mubr.msk.f32.gmra.mrb[26].mxu0 %vm523_vm0, %v5231_v41  ;;  %v3418_v41 = vld [vmem:[%s9066_s4] sm:$0xff] }
 0x724   : > { %3145 = vmatprep.mubr.f32.mxu0 %v6816_v7  ;;  %v6337_v45 = vpack.c.bf16 %v3419_v42, %v3418_v41  ;;  %v5294_v42 = vld [vmem:[%s9067_s5 + $0x110] sm:$0xff] }
 0x727   : > { %5256 = vmatmul.mubr.msk.f32.vlgmr.msra.gmra.mrb[20].mxu0 %vm523_vm0, %v5244_v47  ;;  %v3421_v47 = vld [vmem:[%s9066_s4 + $0x18] sm:$0xff] }
 0x728   : > { %3151 = vmatprep.mubr.f32.mxu0 %v6816_v7  ;;  %6321 = vmatpush1.bf16.msra.mxu0 %v6320_v48  ;;  %v6340_v48 = vpack.c.bf16 %v3421_v47, %v3420_v46  ;;  %v5299_v46 = vld [vmem:[%s9067_s5 + $0x138] sm:$0xff]  ;;  %v5301_v47 = vld [vmem:[%s9067_s5 + $0x148] sm:$0xff] }
 0x729   : > { %6323 = vmatprep.subr.bf16.mxu0 %v6322_v49  ;;  %v3422_v49 = vld [vmem:[%s9066_s4 + $0x20] sm:$0xff] }
 0x72a   : > { %v6343_v51 = vpack.c.bf16 %v3423_v50, %v3422_v49  ;;  %v5300_v49 = vld [vmem:[%s9067_s5 + $0x140] sm:$0xff] }
 0x72b   : > { %5257 = vmatmul.mubr.msk.f32.gmra.mrb[22].mxu0 %vm523_vm0, %v5245_v53  ;;  %v3424_v53 = vld [vmem:[%s9066_s4 + $0x30] sm:$0xff] }
 0x72c   : > { %3157 = vmatprep.mubr.f32.mxu0 %v6816_v7  ;;  %6325 = vmatpush1.bf16.msra.mxu0 %v6324_v54  ;;  %v3425_v54 = vld [vmem:[%s9066_s4 + $0x38] sm:$0xff] }
 0x72f   : > { %5258 = vmatmul.mubr.msk.f32.gmra.mrb[24].mxu0 %vm523_vm0, %v5246_v55  ;;  %v6346_v55 = vpack.c.bf16 %v3425_v54, %v3424_v53  ;;  %v3525_v53 = vld [vmem:[%s9067_s5 + $0x8] sm:$0xff]  ;;  %v3527_v54 = vld [vmem:[%s9067_s5 + $0x18] sm:$0xff] }
 0x730   : > { %3163 = vmatprep.mubr.f32.mxu0 %v6816_v7 }
 0x733   : > { %5259 = vmatmul.mubr.msk.f32.gmra.mrb[26].mxu0 %vm523_vm0, %v5247_v56  ;;  %v3426_v56 = vld [vmem:[%s9066_s4 + $0x40] sm:$0xff] }
 0x734   : > { %3266 = vmatprep.mubr.f32.mxu0 %v6816_v7 }
 0x737   : > { %5272 = vmatmul.mubr.msk.f32.vlgmr.msra.gmra.mrb[20].mxu0 %vm523_vm0, %v5260_v57  ;;  %v3427_v57 = vld [vmem:[%s9066_s4 + $0x48] sm:$0xff] }
 0x738   : > { %3272 = vmatprep.mubr.f32.mxu0 %v6816_v7 }
 0x73b   : > { %5273 = vmatmul.mubr.msk.f32.gmra.mrb[22].mxu0 %vm523_vm0, %v5261_v59  ;;  %v6349_v59 = vpack.c.bf16 %v3427_v57, %v3426_v56  ;;  %v6386_v56 = vpack.c.bf16 %v3527_v54, %v3525_v53  ;;  %v5325_v53 = vld [vmem:[%s9067_s5 + $0x1c8] sm:$0xff]  ;;  %v5327_v54 = vld [vmem:[%s9067_s5 + $0x1d8] sm:$0xff] }
 0x73c   : > { %3278 = vmatprep.mubr.f32.mxu0 %v6816_v7 }
 0x73f   : > { %5274 = vmatmul.mubr.msk.f32.gmra.mrb[24].mxu0 %vm523_vm0, %v5262_v60  ;;  %v3428_v60 = vld [vmem:[%s9066_s4 + $0x50] sm:$0xff] }
 0x740   : > { %3284 = vmatprep.mubr.f32.mxu0 %v6816_v7 }
 0x743   : > { %5275 = vmatmul.mubr.msk.f32.gmra.mrb[26].mxu0 %vm523_vm0, %v5263_v61  ;;  %v3429_v61 = vld [vmem:[%s9066_s4 + $0x58] sm:$0xff] }
 0x744   : > { %4193 = vmatprep.mubr.f32.mxu0 %v6816_v7  ;;  %v6352_v62 = vpack.c.bf16 %v3429_v61, %v3428_v60 }
 0x7c2   : > { %v2616_v3 = vpop.f32.mrb[18].mxu0 }
 0x7c3   : > { %v2617_v4 = vadd.f32 %v2616_v3, %v2545_v2  ;;  %v5760_v5 = vpop.f32.mrb[19].mxu0  ;;  %v3432_v2 = vld [vmem:[%s9066_s4 + $0x70] sm:$0xff]  ;;  %v3433_v3 = vld [vmem:[%s9066_s4 + $0x78] sm:$0xff] }
 0x7c4   : > { %v3434_v5 = vld [vmem:[%s9066_s4 + $0x80] sm:$0xff] }
 0x7c5   : > { %v2620_v6 = vmax.f32 %v2617_v4, 0.0  ;;  %v6358_v4 = vpack.c.bf16 %v3433_v3, %v3432_v2 }
 0x7c7   : > { %5784 = vmatmul.mubr.msk.f32.vlgmr.msra.gmra.mrb[16].mxu1 %vm1316_vm6, %v2620_v6  ;;  %v3435_v6 = vld [vmem:[%s9066_s4 + $0x88] sm:$0xff] }
 0x7c8   : > { %3405 = vmatprep.mubr.f32.mxu1 %v6816_v7  ;;  %v6361_v8 = vpack.c.bf16 %v3435_v6, %v3434_v5  ;;  %v3530_v5 = vld [vmem:[%s9067_s5 + $0x30] sm:$0xff] }
 0x80a   : > { %v3268_v10 = vpop.f32.mrb[20].mxu0 }
 0x80b   : > { %v3270_v12 = vpop.f32.mrb[21].mxu0  ;;  %v3311_v13 = vadd.f32 %v3304_v9, %v3268_v10  ;;  %v3437_v10 = vld [vmem:[%s9066_s4 + $0x98] sm:$0xff] }
 0x80c   : > { %v3312_v14 = vadd.f32 %v3308_v11, %v3270_v12  ;;  %v3438_v12 = vld [vmem:[%s9066_s4 + $0xa0] sm:$0xff] }
 0x80d   : > { %v3319_v19 = vmax.f32 %v3311_v13, 0.0  ;;  %v5283_v13 = vld [vmem:[%s9067_s5 + $0xb8] sm:$0xff] }
 0x80e   : > { %v3274_v15 = vpop.f32.mrb[22].mxu0  ;;  %v3320_v23 = vmax.f32 %v3312_v14, 0.0  ;;  %v5285_v14 = vld [vmem:[%s9067_s5 + $0xc8] sm:$0xff] }
 0x80f   : > { %v3313_v16 = vadd.f32 %v3304_v9, %v3274_v15  ;;  %v3276_v17 = vpop.f32.mrb[23].mxu0  ;;  %v6366_v15 = vpack.c.bf16 %v5285_v14, %v5283_v13  ;;  %v3534_v13 = vld [vmem:[%s9067_s5 + $0x50] sm:$0xff] }
 0x810   : > { %v3314_v18 = vadd.f32 %v3308_v11, %v3276_v17 }
 0x811   : > { %v3321_v21 = vmax.f32 %v3313_v16, 0.0 }
 0x812   : > { %v3322_v24 = vmax.f32 %v3314_v18, 0.0  ;;  %v3280_v25 = vpop.f32.mrb[24].mxu0  ;;  %v5282_v18 = vld [vmem:[%s9067_s5 + $0xb0] sm:$0xff] }
 0x813   : > { %v6328_v26 = vpack.c.bf16 %v3321_v21, %v3319_v19  ;;  %v3282_v27 = vpop.f32.mrb[25].mxu0  ;;  %v3315_v29 = vadd.f32 %v3304_v9, %v3280_v25  ;;  %v5284_v19 = vld [vmem:[%s9067_s5 + $0xc0] sm:$0xff]  ;;  %v5287_v21 = vld [vmem:[%s9067_s5 + $0xd8] sm:$0xff] }
 0x814   : > { %v6326_v28 = vpack.c.bf16 %v3322_v24, %v3320_v23  ;;  %v3316_v30 = vadd.f32 %v3308_v11, %v3282_v27  ;;  %v5289_v23 = vld [vmem:[%s9067_s5 + $0xe8] sm:$0xff]  ;;  %v6368_v25 = vpack.c.bf16 %v5284_v19, %v5282_v18 }
 0x815   : > { %v3323_v35 = vmax.f32 %v3315_v29, 0.0  ;;  %v6370_v27 = vpack.c.bf16 %v5289_v23, %v5287_v21  ;;  %v5288_v29 = vld [vmem:[%s9067_s5 + $0xe0] sm:$0xff]  ;;  %v3538_v23 = vld [vmem:[%s9067_s5 + $0x70] sm:$0xff] }
 0x816   : > { %v3286_v31 = vpop.f32.mrb[26].mxu0  ;;  %6327 = vmatprep.subr.bf16.mxu1 %v6326_v28  ;;  %v3324_v37 = vmax.f32 %v3316_v30, 0.0  ;;  %v5286_v28 = vld [vmem:[%s9067_s5 + $0xd0] sm:$0xff]  ;;  %v5291_v30 = vld [vmem:[%s9067_s5 + $0xf8] sm:$0xff]  ;;  %v3536_v21 = vld [vmem:[%s9067_s5 + $0x60] sm:$0xff] }
 0x817   : > { %v3317_v32 = vadd.f32 %v3304_v9, %v3286_v31  ;;  %v3288_v33 = vpop.f32.mrb[27].mxu0  ;;  %6329 = vmatpush1.bf16.msra.mxu1 %v6328_v26  ;;  %v3436_v9 = vld [vmem:[%s9066_s4 + $0x90] sm:$0xff]  ;;  %v5293_v31 = vld [vmem:[%s9067_s5 + $0x108] sm:$0xff] }
 0x818   : > { %v3318_v34 = vadd.f32 %v3308_v11, %v3288_v33  ;;  %v6364_v11 = vpack.c.bf16 %v3437_v10, %v3436_v9  ;;  %v6372_v33 = vpack.c.bf16 %v5288_v29, %v5286_v28  ;;  %v3535_v9 = vld [vmem:[%s9067_s5 + $0x58] sm:$0xff]  ;;  %v3540_v28 = vld [vmem:[%s9067_s5 + $0x80] sm:$0xff]  ;;  %v3542_v29 = vld [vmem:[%s9067_s5 + $0x90] sm:$0xff] }
 0x819   : > { %v3325_v36 = vmax.f32 %v3317_v32, 0.0 }
 0x81a   : > { %v3326_v38 = vmax.f32 %v3318_v34, 0.0 }
 0x81b   : > { %v6333_v39 = vpack.c.bf16 %v3325_v36, %v3323_v35  ;;  %v6374_v35 = vpack.c.bf16 %v5293_v31, %v5291_v30  ;;  %v5290_v36 = vld [vmem:[%s9067_s5 + $0xf0] sm:$0xff]  ;;  %v6404_v30 = vpack.c.bf16 %v3542_v29, %v3540_v28  ;;  %v3545_v31 = vld [vmem:[%s9067_s5 + $0xa8] sm:$0xf]  ;;  %v5351_v28 = vld [vmem:[%s9067_s5 + $0x278] sm:$0xff] }
 0x81c   : > { %v6330_v40 = vpack.c.bf16 %v3326_v38, %v3324_v37  ;;  %v5292_v37 = vld [vmem:[%s9067_s5 + $0x100] sm:$0xff]  ;;  %v5353_v29 = vld [vmem:[%s9067_s5 + $0x288] sm:$0xff] }
 0x81d   : > { %v6376_v38 = vpack.c.bf16 %v5292_v37, %v5290_v36  ;;  %v5317_v36 = vld [vmem:[%s9067_s5 + $0x188] sm:$0xff]  ;;  %v5319_v37 = vld [vmem:[%s9067_s5 + $0x198] sm:$0xff] }
 0x81e   : > { %6332 = vmatprep.subr.msk.bf16.mxu1 %vm7148_vm3, %v6330_v40  ;;  %v5297_v40 = vld [vmem:[%s9067_s5 + $0x128] sm:$0xff] }
 0x81f   : > { %6335 = vmatpush1.bf16.msk.msra.mxu1 %vm7148_vm3, %v6333_v39  ;;  %v5295_v39 = vld [vmem:[%s9067_s5 + $0x118] sm:$0xff] }
 0x820   : > { %6336 = vmatprep.subr.bf16.mxu1 %v6818_v58  ;;  %v6378_v41 = vpack.c.bf16 %v5297_v40, %v5295_v39 }
 0x822   : > { %5278 = vmatmul.mubr.msk.f32.vlgmr.msra.gmra.mrb[18].mxu1 %vm1122_vm4, %v3327_v43  ;;  %v5296_v43 = vld [vmem:[%s9067_s5 + $0x120] sm:$0xff] }
 0x823   : > { %3411 = vmatprep.mubr.f32.mxu1 %v6816_v7  ;;  %6338 = vmatpush1.bf16.msra.mxu1 %v6337_v45  ;;  %v6380_v45 = vpack.c.bf16 %v5296_v43, %v5294_v42  ;;  %v5316_v42 = vld [vmem:[%s9067_s5 + $0x180] sm:$0xff]  ;;  %v5318_v43 = vld [vmem:[%s9067_s5 + $0x190] sm:$0xff] }
 0x824   : > { %6339 = vmatprep.subr.bf16.mxu1 %v6818_v58 }
 0x826   : > { %5279 = vmatmul.mubr.msk.f32.gmra.mrb[20].mxu1 %vm1122_vm4, %v3328_v52  ;;  %v6382_v52 = vpack.c.bf16 %v5301_v47, %v5299_v46  ;;  %v5321_v46 = vld [vmem:[%s9067_s5 + $0x1a8] sm:$0xff]  ;;  %v5323_v47 = vld [vmem:[%s9067_s5 + $0x1b8] sm:$0xff] }
 0x827   : > { %6341 = vmatpush1.bf16.msra.mxu1 %v6340_v48  ;;  %v5298_v48 = vld [vmem:[%s9067_s5 + $0x130] sm:$0xff] }
 0x828   : > { %6342 = vmatprep.subr.bf16.mxu1 %v6818_v58  ;;  %v6384_v50 = vpack.c.bf16 %v5300_v49, %v5298_v48  ;;  %v6414_v48 = vpack.c.bf16 %v5323_v47, %v5321_v46  ;;  %v5320_v49 = vld [vmem:[%s9067_s5 + $0x1a0] sm:$0xff]  ;;  %v5366_v46 = vld [vmem:[%s9067_s5 + $0x2d0] sm:$0xff]  ;;  %v5369_v47 = vld [vmem:[%s9067_s5 + $0x2e8] sm:$0xff] }
 0x82b   : > { %6344 = vmatpush1.bf16.msra.mxu1 %v6343_v51  ;;  %v5303_v51 = vld [vmem:[%s9067_s5 + $0x158] sm:$0xf] }
 0x82c   : > { %6345 = vmatprep.subr.bf16.mxu1 %v6818_v58 }
 0x82f   : > { %6347 = vmatpush1.bf16.msra.mxu1 %v6346_v55  ;;  %v5302_v55 = vld [vmem:[%s9067_s5 + $0x150] sm:$0xf] }
 0x830   : > { %6348 = vmatprep.subr.bf16.mxu1 %v6818_v58 }
 0x833   : > { %6350 = vmatpush1.bf16.msra.mxu1 %v6349_v59 }
 0x834   : > { %6351 = vmatprep.subr.bf16.mxu1 %v6818_v58 }
 0x837   : > { %6353 = vmatpush1.bf16.msra.mxu1 %v6352_v62  ;;  %v3524_v62 = vld [vmem:[%s9067_s5] sm:$0xff] }
 0x838   : > { %6354 = vmatprep.subr.bf16.mxu1 %v6818_v58  ;;  %v6388_v2 = vpack.c.bf16 %v3526_v63, %v3524_v62 }
 0x83b   : > { %6356 = vmatpush1.bf16.msra.mxu1 %v6355_v1  ;;  %v3531_v1 = vld [vmem:[%s9067_s5 + $0x38] sm:$0xff] }
 0x83c   : > { %6357 = vmatprep.subr.bf16.mxu1 %v6818_v58  ;;  %v6390_v3 = vpack.c.bf16 %v3531_v1, %v3529_v0  ;;  %v5328_v0 = vld [vmem:[%s9067_s5 + $0x1e0] sm:$0xff]  ;;  %v5330_v1 = vld [vmem:[%s9067_s5 + $0x1f0] sm:$0xff] }
 0x83f   : > { %6359 = vmatpush1.bf16.msra.mxu1 %v6358_v4  ;;  %v3528_v4 = vld [vmem:[%s9067_s5 + $0x20] sm:$0xff] }
 0x840   : > { %6360 = vmatprep.subr.bf16.mxu1 %v6818_v58  ;;  %v6392_v10 = vpack.c.bf16 %v3530_v5, %v3528_v4  ;;  %v5339_v4 = vld [vmem:[%s9067_s5 + $0x218] sm:$0xff]  ;;  %v5341_v5 = vld [vmem:[%s9067_s5 + $0x228] sm:$0xff] }
 0x843   : > { %6362 = vmatpush1.bf16.msra.mxu1 %v6361_v8  ;;  %v3533_v8 = vld [vmem:[%s9067_s5 + $0x48] sm:$0xff] }
 0x844   : > { %6363 = vmatprep.subr.bf16.mxu1 %v6818_v58 }
 0x847   : > { %6365 = vmatpush1.bf16.msra.mxu1 %v6364_v11  ;;  %v6394_v11 = vpack.c.bf16 %v3535_v9, %v3533_v8  ;;  %v5340_v8 = vld [vmem:[%s9067_s5 + $0x220] sm:$0xff]  ;;  %v5343_v9 = vld [vmem:[%s9067_s5 + $0x238] sm:$0xff] }
 0x848   : > { %3485 = vmatprep.subr.mxu1 %v6816_v7 }
 0x84b   : > { %3486 = vmatpush1.msra.mxu1 %v3438_v12  ;;  %v3532_v12 = vld [vmem:[%s9067_s5 + $0x40] sm:$0xff] }
 0x84c   : > { %6367 = vmatprep.subr.bf16.mxu1 %v6366_v15  ;;  %v3537_v15 = vld [vmem:[%s9067_s5 + $0x68] sm:$0xff]  ;;  %v6396_v18 = vpack.c.bf16 %v3534_v13, %v3532_v12  ;;  %v6426_v12 = vpack.c.bf16 %v5341_v5, %v5339_v4  ;;  %v5376_v4 = vld [vmem:[%s9067_s5 + $0x320] sm:$0xff]  ;;  %v5378_v5 = vld [vmem:[%s9067_s5 + $0x330] sm:$0xff] }
 0x89a   : > { %v8268_v16 = vpop.f32.mrb[16].mxu1 }
 0x89b   : > { %v5785_v17 = vpop.f32.mrb[17].mxu1 }
 0x89c   : > { %v3539_v17 = vld [vmem:[%s9067_s5 + $0x78] sm:$0xff] }
 0x89d   : > { %v6398_v19 = vpack.c.bf16 %v3539_v17, %v3537_v15  ;;  %v5342_v15 = vld [vmem:[%s9067_s5 + $0x230] sm:$0xff]  ;;  %v5344_v17 = vld [vmem:[%s9067_s5 + $0x240] sm:$0xff] }
 0x8f5   : > { %v3407_v24 = vpop.f32.mrb[18].mxu1 }
 0x8f6   : > { %v3409_v26 = vpop.f32.mrb[19].mxu1 }
 0x8f7   : > { %5280 = vmatprep.mubr.msk.f32.mxu1 %vm1234_vm5, %v3409_v26  ;;  %v6400_v26 = vpack.c.bf16 %v3538_v23, %v3536_v21  ;;  %v5349_v21 = vld [vmem:[%s9067_s5 + $0x268] sm:$0xff]  ;;  %v6432_v23 = vpack.c.bf16 %v5344_v17, %v5342_v15  ;;  %v5384_v15 = vld [vmem:[%s9067_s5 + $0x360] sm:$0xf] }
 0x8f8   : > { %3510 = vmatmul.mubr.f32.vlgmr.msra.gmra.mrb[22].mxu1 %v3407_v24  ;;  %v3541_v24 = vld [vmem:[%s9067_s5 + $0x88] sm:$0xff] }
 0x8f9   : > { %v3413_v32 = vpop.f32.mrb[20].mxu1  ;;  %6369 = vmatpush1.bf16.msra.mxu1 %v6368_v25  ;;  %v3543_v25 = vld [vmem:[%s9067_s5 + $0x98] sm:$0xff] }
 0x8fa   : > { %v3415_v34 = vpop.f32.mrb[21].mxu1  ;;  %6371 = vmatprep.subr.bf16.mxu1 %v6370_v27  ;;  %v6402_v27 = vpack.c.bf16 %v3543_v25, %v3541_v24  ;;  %v5346_v25 = vld [vmem:[%s9067_s5 + $0x250] sm:$0xff] }
 0x8fb   : > { %5281 = vmatprep.mubr.msk.f32.mxu1 %vm1234_vm5, %v3415_v34  ;;  %v5312_v34 = vld [vmem:[%s9067_s5 + $0x160] sm:$0xff] }
 0x8fc   : > { %3515 = vmatmul.mubr.f32.gmra.mrb[24].mxu1 %v3413_v32  ;;  %v5313_v32 = vld [vmem:[%s9067_s5 + $0x168] sm:$0xff] }
 0x8fd   : > { %6373 = vmatpush1.bf16.msra.mxu1 %v6372_v33  ;;  %3646 = vmatprep.mubr.f32.mxu1 %v6816_v7  ;;  %v5315_v33 = vld [vmem:[%s9067_s5 + $0x178] sm:$0xff] }
 0x8fe   : > { %6375 = vmatprep.subr.bf16.mxu1 %v6374_v35  ;;  %v5314_v35 = vld [vmem:[%s9067_s5 + $0x170] sm:$0xff]  ;;  %v6406_v39 = vpack.c.bf16 %v5315_v33, %v5313_v32  ;;  %v5352_v33 = vld [vmem:[%s9067_s5 + $0x280] sm:$0xff] }
 0x8ff   : > { %v6408_v40 = vpack.c.bf16 %v5314_v35, %v5312_v34  ;;  %v5350_v32 = vld [vmem:[%s9067_s5 + $0x270] sm:$0xff]  ;;  %v5355_v34 = vld [vmem:[%s9067_s5 + $0x298] sm:$0xff]  ;;  %v5357_v35 = vld [vmem:[%s9067_s5 + $0x2a8] sm:$0xff] }
 0x901   : > { %6377 = vmatpush1.bf16.msra.mxu1 %v6376_v38  ;;  %v3544_v38 = vld [vmem:[%s9067_s5 + $0xa0] sm:$0xf] }
 0x902   : > { %6379 = vmatprep.subr.bf16.mxu1 %v6378_v41  ;;  %v6410_v41 = vpack.c.bf16 %v5319_v37, %v5317_v36  ;;  %v6440_v36 = vpack.c.bf16 %v5352_v33, %v5350_v32  ;;  %v6442_v37 = vpack.c.bf16 %v5357_v35, %v5355_v34 }
 0x905   : > { %6381 = vmatpush1.bf16.msra.mxu1 %v6380_v45 }
 0x906   : > { %6383 = vmatprep.subr.bf16.mxu1 %v6382_v52  ;;  %v6412_v52 = vpack.c.bf16 %v5318_v43, %v5316_v42  ;;  %v5365_v42 = vld [vmem:[%s9067_s5 + $0x2c8] sm:$0xff]  ;;  %v5367_v43 = vld [vmem:[%s9067_s5 + $0x2d8] sm:$0xff] }
 0x909   : > { %6385 = vmatpush1.bf16.msra.mxu1 %v6384_v50  ;;  %v5322_v50 = vld [vmem:[%s9067_s5 + $0x1b0] sm:$0xff] }
 0x90a   : > { %5304 = vmatprep.subr.msk.mxu1 %vm1129_vm1, %v5303_v51 }
 0x90d   : > { %5305 = vmatpush1.msk.msra.mxu1 %vm1129_vm1, %v5302_v55  ;;  %v6416_v55 = vpack.c.bf16 %v5322_v50, %v5320_v49  ;;  %v6446_v49 = vpack.c.bf16 %v5367_v43, %v5365_v42  ;;  %v4204_v42 = vld [vmem:[%s9070_s8 + $0x20] sm:$0xff]  ;;  %v4205_v43 = vld [vmem:[%s9070_s8 + $0x28] sm:$0xff] }
 0x90e   : > { %6387 = vmatprep.subr.bf16.mxu1 %v6386_v56  ;;  %v6418_v56 = vpack.c.bf16 %v5327_v54, %v5325_v53  ;;  %v5368_v53 = vld [vmem:[%s9067_s5 + $0x2e0] sm:$0xff]  ;;  %v5370_v54 = vld [vmem:[%s9067_s5 + $0x2f0] sm:$0xff] }
 0x9cb   : > { %v3511_v57 = vpop.f32.mrb[22].mxu1 }
 0x9cc   : > { %3520 = vst.msk [vmem:[#allocation2] sm:$0xff] %vm1316_vm6, %v3511_v57  ;;  %v3513_v59 = vpop.f32.mrb[23].mxu1  ;;  %v5324_v57 = vld [vmem:[%s9067_s5 + $0x1c0] sm:$0xff] }
 0x9cd   : > { %v5326_v59 = vld [vmem:[%s9067_s5 + $0x1d0] sm:$0xff] }
 0x9ce   : > { %v6420_v62 = vpack.c.bf16 %v5326_v59, %v5324_v57  ;;  %v5375_v57 = vld [vmem:[%s9067_s5 + $0x318] sm:$0xff]  ;;  %v6452_v59 = vpack.c.bf16 %v5370_v54, %v5368_v53 }
 0x9cf   : > { %v3516_v60 = vpop.f32.mrb[24].mxu1  ;;  %v4211_v53 = vld [vmem:[%s9070_s8 + $0x58] sm:$0xff] }
 0x9d0   : > { %3521 = vst.msk [vmem:[#allocation2 + $0x8] sm:$0x3f] %vm1318_vm7, %v3516_v60  ;;  %v3518_v61 = vpop.f32.mrb[25].mxu1  ;;  %v5329_v60 = vld [vmem:[%s9067_s5 + $0x1e8] sm:$0xff] }
 0x9d1   : > { %v5331_v61 = vld [vmem:[%s9067_s5 + $0x1f8] sm:$0xff] }
 0x9d2   : > { %v6422_v63 = vpack.c.bf16 %v5331_v61, %v5329_v60  ;;  %v5372_v61 = vld [vmem:[%s9067_s5 + $0x300] sm:$0xff] }
 0x9d3   : > { %v3522_v45 = vld [vmem:[#allocation2] sm:$0xff] }
 0x9d7   : > { %v3546_v6 = vld [vmem:[#allocation2 + $0x1] sm:$0xff]  ;;  %v3547_v14 = vld [vmem:[#allocation2 + $0x9] sm:$0x3] }
 0x9d8   : > { %5306 = vmatmul.mubr.msk.f32.vlgmr.msra.gmra.mrb[26].mxu1 %vm1316_vm6, %v3546_v6  ;;  %v3523_v51 = vld [vmem:[#allocation2 + $0x8] sm:$0x3]  ;;  %v5338_v6 = vld [vmem:[%s9067_s5 + $0x210] sm:$0xff] }
 0x9d9   : > { %6389 = vmatpush1.bf16.msra.mxu1 %v6388_v2  ;;  %3652 = vmatprep.mubr.f32.mxu1 %v6816_v7  ;;  %v6424_v2 = vpack.c.bf16 %v5330_v1, %v5328_v0  ;;  %v6428_v13 = vpack.c.bf16 %v5340_v8, %v5338_v6  ;;  %v5377_v0 = vld [vmem:[%s9067_s5 + $0x328] sm:$0xff]  ;;  %v5379_v1 = vld [vmem:[%s9067_s5 + $0x338] sm:$0xff] }
 0x9da   : > { %6391 = vmatprep.subr.bf16.mxu1 %v6390_v3  ;;  %v5333_v3 = vld [vmem:[%s9067_s5 + $0x208] sm:$0xf]  ;;  %v5383_v8 = vld [vmem:[%s9067_s5 + $0x358] sm:$0xff] }
 0x9db   : > { %v5381_v6 = vld [vmem:[%s9067_s5 + $0x348] sm:$0xff] }
 0x9dc   : > { %5307 = vmatmul.mubr.msk.f32.gmra.mrb[28].mxu1 %vm1316_vm6, %v3547_v14  ;;  %v3982_v17 = vld [vmem:[#allocation2 + $0x4] sm:$0xff] }
 0x9dd   : > { %6393 = vmatpush1.bf16.msra.mxu1 %v6392_v10  ;;  %3735 = vmatprep.mubr.f32.mxu1 %v6816_v7  ;;  %v5345_v10 = vld [vmem:[%s9067_s5 + $0x248] sm:$0xff] }
 0x9de   : > { %6395 = vmatprep.subr.bf16.mxu1 %v6394_v11  ;;  %v5332_v11 = vld [vmem:[%s9067_s5 + $0x200] sm:$0xf]  ;;  %v6430_v14 = vpack.c.bf16 %v5345_v10, %v5343_v9  ;;  %v6460_v9 = vpack.c.bf16 %v5378_v5, %v5376_v4  ;;  %v6462_v10 = vpack.c.bf16 %v5383_v8, %v5381_v6  ;;  %v5407_v5 = vld [vmem:[%s9071_s9 + $0xa8] sm:$0xff]  ;;  %v5408_v8 = vld [vmem:[%s9071_s9 + $0xb0] sm:$0xff] }
 0x9df   : > { %v5406_v4 = vld [vmem:[%s9071_s9 + $0xa0] sm:$0xff] }
 0x9e0   : > { %v6533_v6 = vpack.c.bf16 %v5407_v5, %v5406_v4  ;;  %v4304_v4 = vld [vmem:[%s9071_s9 + $0x48] sm:$0xff]  ;;  %v5436_v5 = vld [vmem:[%s9071_s9 + $0x180] sm:$0xff] }
 0x9e1   : > { %6397 = vmatpush1.bf16.msra.mxu1 %v6396_v18  ;;  %v3748_v18 = vld [vmem:[#allocation2 + $0x2] sm:$0xff] }
 0x9e2   : > { %6399 = vmatprep.subr.bf16.mxu1 %v6398_v19  ;;  %v5347_v19 = vld [vmem:[%s9067_s5 + $0x258] sm:$0xff] }
 0x9e3   : > { %v6434_v24 = vpack.c.bf16 %v5349_v21, %v5347_v19  ;;  %v4099_v19 = vld [vmem:[%s9068_s6] sm:$0x3] }
 0x9e4   : > { %v4104_v21 = vrot.slane %v4099_v19, %v7137_v20  ;;  %v4200_v20 = vld [vmem:[%s9070_s8] sm:$0xff] }
 0x9e5   : > { %6401 = vmatpush1.bf16.msra.mxu1 %v6400_v26  ;;  %v5348_v26 = vld [vmem:[%s9067_s5 + $0x260] sm:$0xff] }
 0x9e6   : > { %6403 = vmatprep.subr.bf16.mxu1 %v6402_v27  ;;  %v3749_v27 = vld [vmem:[#allocation2 + $0xa] sm:$0x3] }
 0x9e9   : > { %6405 = vmatpush1.bf16.msra.mxu1 %v6404_v30  ;;  %v6436_v30 = vpack.c.bf16 %v5348_v26, %v5346_v25 }
 0x9ea   : > { %5308 = vmatprep.subr.msk.mxu1 %vm1129_vm1, %v3545_v31  ;;  %v6438_v31 = vpack.c.bf16 %v5353_v29, %v5351_v28 }
 0x9ed   : > { %5309 = vmatpush1.msk.msra.mxu1 %vm1129_vm1, %v3544_v38  ;;  %v5354_v38 = vld [vmem:[%s9067_s5 + $0x290] sm:$0xff] }
 0x9ee   : > { %5310 = vmatmul.mubr.msk.f32.vlgmr.msra.gmra.mrb[26].mxu1 %vm1316_vm6, %v3522_v45  ;;  %6407 = vmatprep.subr.bf16.mxu1 %v6406_v39  ;;  %v5356_v39 = vld [vmem:[%s9067_s5 + $0x2a0] sm:$0xff] }
 0x9ef   : > { %6409 = vmatpush1.bf16.msra.mxu1 %v6408_v40  ;;  %3741 = vmatprep.mubr.f32.mxu1 %v6816_v7  ;;  %v6444_v40 = vpack.c.bf16 %v5356_v39, %v5354_v38  ;;  %v5364_v45 = vld [vmem:[%s9067_s5 + $0x2c0] sm:$0xff] }
 0x9f0   : > { %6411 = vmatprep.subr.bf16.mxu1 %v6410_v41  ;;  %v5359_v41 = vld [vmem:[%s9067_s5 + $0x2b8] sm:$0xf]  ;;  %v6448_v50 = vpack.c.bf16 %v5366_v46, %v5364_v45  ;;  %v4119_v38 = vld [vmem:[%s9069_s7] sm:$0x1f]  ;;  %v6479_v45 = vpack.c.bf16 %v4205_v43, %v4204_v42  ;;  %v4206_v46 = vld [vmem:[%s9070_s8 + $0x30] sm:$0xff] }
 0x9f1   : > { %v5429_v42 = vld [vmem:[%s9071_s9 + $0x148] sm:$0xff] }
 0x9f2   : > { %5311 = vmatmul.mubr.msk.f32.gmra.mrb[28].mxu1 %vm1316_vm6, %v3523_v51 }
 0x9f3   : > { %6413 = vmatpush1.bf16.msra.mxu1 %v6412_v52  ;;  %3848 = vmatprep.mubr.f32.mxu1 %v6816_v7  ;;  %v5371_v52 = vld [vmem:[%s9067_s5 + $0x2f8] sm:$0xff] }
 0x9f4   : > { %6415 = vmatprep.subr.bf16.mxu1 %v6414_v48  ;;  %v5358_v48 = vld [vmem:[%s9067_s5 + $0x2b0] sm:$0xf]  ;;  %v6450_v51 = vpack.c.bf16 %v5371_v52, %v5369_v47  ;;  %v4207_v47 = vld [vmem:[%s9070_s8 + $0x38] sm:$0xff] }
 0x9f5   : > { %v6482_v52 = vpack.c.bf16 %v4207_v47, %v4206_v46  ;;  %v4297_v46 = vld [vmem:[%s9071_s9 + $0x10] sm:$0xff]  ;;  %v4298_v47 = vld [vmem:[%s9071_s9 + $0x18] sm:$0xff] }
 0x9f7   : > { %6417 = vmatpush1.bf16.msra.mxu1 %v6416_v55  ;;  %v3865_v55 = vld [vmem:[#allocation2 + $0x3] sm:$0xff] }
 0x9f8   : > { %6419 = vmatprep.subr.bf16.mxu1 %v6418_v56  ;;  %v5373_v56 = vld [vmem:[%s9067_s5 + $0x308] sm:$0xff] }
 0x9f9   : > { %v6454_v60 = vpack.c.bf16 %v5375_v57, %v5373_v56  ;;  %v4213_v56 = vld [vmem:[%s9070_s8 + $0x68] sm:$0xff] }
 0x9fb   : > { %6421 = vmatpush1.bf16.msra.mxu1 %v6420_v62  ;;  %v5374_v62 = vld [vmem:[%s9067_s5 + $0x310] sm:$0xff] }
 0x9fc   : > { %6423 = vmatprep.subr.bf16.mxu1 %v6422_v63  ;;  %v3866_v63 = vld [vmem:[#allocation2 + $0xb] sm:$0x3] }
 0x9ff   : > { %6425 = vmatpush1.bf16.msra.mxu1 %v6424_v2  ;;  %v6456_v2 = vpack.c.bf16 %v5374_v62, %v5372_v61  ;;  %v4216_v62 = vld [vmem:[%s9070_s8 + $0x80] sm:$0xff] }
 0xa00   : > { %5334 = vmatprep.subr.msk.mxu1 %vm1129_vm1, %v5333_v3  ;;  %v6458_v3 = vpack.c.bf16 %v5379_v1, %v5377_v0  ;;  %v4218_v1 = vld [vmem:[%s9070_s8 + $0x90] sm:$0xff] }
 0xa03   : > { %5335 = vmatpush1.msk.msra.mxu1 %vm1129_vm1, %v5332_v11  ;;  %v5380_v11 = vld [vmem:[%s9067_s5 + $0x340] sm:$0xff] }
 0xa04   : > { %5336 = vmatmul.mubr.msk.f32.vlgmr.msra.gmra.mrb[26].mxu1 %vm1316_vm6, %v3748_v18  ;;  %6427 = vmatprep.subr.bf16.mxu1 %v6426_v12  ;;  %v5382_v12 = vld [vmem:[%s9067_s5 + $0x350] sm:$0xff]  ;;  %v3983_v18 = vld [vmem:[#allocation2 + $0xc] sm:$0x3] }
 0xa05   : > { %6429 = vmatpush1.bf16.msra.mxu1 %v6428_v13  ;;  %3854 = vmatprep.mubr.f32.mxu1 %v6816_v7  ;;  %v6464_v13 = vpack.c.bf16 %v5382_v12, %v5380_v11  ;;  %v5410_v11 = vld [vmem:[%s9071_s9 + $0xc0] sm:$0xff]  ;;  %v5411_v12 = vld [vmem:[%s9071_s9 + $0xc8] sm:$0xff] }
 0xa06   : > { %6431 = vmatprep.subr.bf16.mxu1 %v6430_v14  ;;  %v5385_v14 = vld [vmem:[%s9067_s5 + $0x368] sm:$0xf] }
 0xa08   : > { %5337 = vmatmul.mubr.msk.f32.gmra.mrb[28].mxu1 %vm1316_vm6, %v3749_v27 }
 0xa09   : > { %6433 = vmatpush1.bf16.msra.mxu1 %v6432_v23  ;;  %3965 = vmatprep.mubr.f32.mxu1 %v6816_v7 }
 0xa0a   : > { %6435 = vmatprep.subr.bf16.mxu1 %v6434_v24  ;;  %v4108_v24 = vrot.slane %v4099_v19, %v7142_v22  ;;  %v4201_v22 = vld [vmem:[%s9070_s8 + $0x8] sm:$0xff] }
 0xa0b   : > { %v6473_v39 = vpack.c.bf16 %v4201_v22, %v4200_v20  ;;  %v5415_v20 = vld [vmem:[%s9071_s9 + $0xe8] sm:$0xff] }
 0xa0d   : > { %6437 = vmatpush1.bf16.msra.mxu1 %v6436_v30 }
 0xa0e   : > { %6439 = vmatprep.subr.bf16.mxu1 %v6438_v31 }
 0xa11   : > { %6441 = vmatpush1.bf16.msra.mxu1 %v6440_v36 }
 0xa12   : > { %6443 = vmatprep.subr.bf16.mxu1 %v6442_v37 }
 0xa15   : > { %6445 = vmatpush1.bf16.msra.mxu1 %v6444_v40  ;;  %v4202_v40 = vld [vmem:[%s9070_s8 + $0x10] sm:$0xff] }
 0xa16   : > { %5360 = vmatprep.subr.msk.mxu1 %vm1129_vm1, %v5359_v41  ;;  %v4203_v41 = vld [vmem:[%s9070_s8 + $0x18] sm:$0xff] }
 0xa17   : > { %v6476_v44 = vpack.c.bf16 %v4203_v41, %v4202_v40  ;;  %v4295_v40 = vld [vmem:[%s9071_s9] sm:$0xff]  ;;  %v4296_v41 = vld [vmem:[%s9071_s9 + $0x8] sm:$0xff] }
 0xa18   : > { %v6518_v43 = vpack.c.bf16 %v4296_v41, %v4295_v40  ;;  %v4728_v41 = vld [vmem:[%s9073_s11 + $0x40] sm:$0xff] }
 0xa19   : > { %5361 = vmatpush1.msk.msra.mxu1 %vm1129_vm1, %v5358_v48  ;;  %v4208_v48 = vld [vmem:[%s9070_s8 + $0x40] sm:$0xff] }
 0xa1a   : > { %5362 = vmatmul.mubr.msk.f32.vlgmr.msra.gmra.mrb[26].mxu1 %vm1316_vm6, %v3865_v55  ;;  %6447 = vmatprep.subr.bf16.mxu1 %v6446_v49  ;;  %v4209_v49 = vld [vmem:[%s9070_s8 + $0x48] sm:$0xff]  ;;  %v4212_v55 = vld [vmem:[%s9070_s8 + $0x60] sm:$0xff] }
 0xa1b   : > { %6449 = vmatpush1.bf16.msra.mxu1 %v6448_v50  ;;  %3971 = vmatprep.mubr.f32.mxu1 %v6816_v7  ;;  %v6485_v50 = vpack.c.bf16 %v4209_v49, %v4208_v48  ;;  %v6491_v57 = vpack.c.bf16 %v4213_v56, %v4212_v55  ;;  %v5431_v48 = vld [vmem:[%s9071_s9 + $0x158] sm:$0xff]  ;;  %v4300_v55 = vld [vmem:[%s9071_s9 + $0x28] sm:$0xff]  ;;  %v5432_v56 = vld [vmem:[%s9071_s9 + $0x160] sm:$0xff] }
 0xa1c   : > { %6451 = vmatprep.subr.bf16.mxu1 %v6450_v51  ;;  %v4210_v51 = vld [vmem:[%s9070_s8 + $0x50] sm:$0xff] }
 0xa1d   : > { %v6488_v54 = vpack.c.bf16 %v4211_v53, %v4210_v51  ;;  %v6521_v51 = vpack.c.bf16 %v4298_v47, %v4297_v46  ;;  %v4732_v47 = vld [vmem:[%s9073_s11 + $0x60] sm:$0xff] }
 0xa1e   : > { %5363 = vmatmul.mubr.msk.f32.gmra.mrb[28].mxu1 %vm1316_vm6, %v3866_v63  ;;  %v4217_v63 = vld [vmem:[%s9070_s8 + $0x88] sm:$0xff] }
 0xa1f   : > { %6453 = vmatpush1.bf16.msra.mxu1 %v6452_v59  ;;  %4082 = vmatprep.mubr.f32.mxu1 %v6816_v7  ;;  %v4214_v59 = vld [vmem:[%s9070_s8 + $0x70] sm:$0xff]  ;;  %v6497_v0 = vpack.c.bf16 %v4217_v63, %v4216_v62  ;;  %v4302_v62 = vld [vmem:[%s9071_s9 + $0x38] sm:$0xff] }
 0xa20   : > { %6455 = vmatprep.subr.bf16.mxu1 %v6454_v60  ;;  %v4215_v60 = vld [vmem:[%s9070_s8 + $0x78] sm:$0xff]  ;;  %v5434_v63 = vld [vmem:[%s9071_s9 + $0x170] sm:$0xff] }
 0xa21   : > { %v6494_v61 = vpack.c.bf16 %v4215_v60, %v4214_v59 }
 0xa23   : > { %6457 = vmatpush1.bf16.msra.mxu1 %v6456_v2  ;;  %v4219_v2 = vld [vmem:[%s9070_s8 + $0x98] sm:$0xff] }
 0xa24   : > { %6459 = vmatprep.subr.bf16.mxu1 %v6458_v3  ;;  %v6500_v3 = vpack.c.bf16 %v4219_v2, %v4218_v1 }
 0xa27   : > { %6461 = vmatpush1.bf16.msra.mxu1 %v6460_v9  ;;  %v5409_v9 = vld [vmem:[%s9071_s9 + $0xb8] sm:$0xff] }
 0xa28   : > { %6463 = vmatprep.subr.bf16.mxu1 %v6462_v10  ;;  %v6536_v10 = vpack.c.bf16 %v5409_v9, %v5408_v8 }
 0xa2b   : > { %6465 = vmatpush1.bf16.msra.mxu1 %v6464_v13  ;;  %v6539_v13 = vpack.c.bf16 %v5411_v12, %v5410_v11  ;;  %v5418_v11 = vld [vmem:[%s9071_s9 + $0xf8] sm:$0xff] }
 0xa2c   : > { %5386 = vmatprep.subr.msk.mxu1 %vm1129_vm1, %v5385_v14  ;;  %v5394_v14 = vld [vmem:[%s9071_s9 + $0x50] sm:$0xff] }
 0xa2f   : > { %5387 = vmatpush1.msk.msra.mxu1 %vm1129_vm1, %v5384_v15  ;;  %v5395_v15 = vld [vmem:[%s9071_s9 + $0x58] sm:$0xff] }
 0xa30   : > { %5388 = vmatmul.mubr.msk.f32.vlgmr.msra.gmra.mrb[26].mxu1 %vm1316_vm6, %v3982_v17  ;;  %6532 = vmatprep.subr.bf16.mxu1 %v6818_v58 }
 0xa31   : > { %4088 = vmatprep.mubr.f32.mxu1 %v6816_v7  ;;  %6534 = vmatpush3.bf16.msra.mxu1 %v6533_v6  ;;  %v5437_v6 = vld [vmem:[%s9071_s9 + $0x188] sm:$0xff] }
 0xa32   : > { %6535 = vmatprep.subr.bf16.mxu1 %v6818_v58  ;;  %v6575_v9 = vpack.c.bf16 %v5437_v6, %v5436_v5 }
 0xa34   : > { %5389 = vmatmul.mubr.msk.f32.gmra.mrb[28].mxu1 %vm1316_vm6, %v3983_v18  ;;  %v6503_v18 = vpack.c.bf16 %v5395_v15, %v5394_v14  ;;  %v5420_v14 = vld [vmem:[%s9071_s9 + $0x108] sm:$0xff] }
 0xa35   : > { %5852 = vmatprep.mubr.msk.f32.mxu1 %vm6819_vm11, %v6816_v7  ;;  %6537 = vmatpush3.bf16.msra.mxu1 %v6536_v10  ;;  %v5417_v10 = vld [vmem:[%s9071_s9 + $0xf0] sm:$0xff] }
 0xa36   : > { %6538 = vmatprep.subr.bf16.mxu1 %v6818_v58  ;;  %v6548_v12 = vpack.c.bf16 %v5418_v11, %v5417_v10 }
 0xa39   : > { %6540 = vmatpush3.bf16.msra.mxu1 %v6539_v13  ;;  %v5419_v13 = vld [vmem:[%s9071_s9 + $0x100] sm:$0xff] }
 0xa3a   : > { %6541 = vmatprep.subr.bf16.mxu1 %v6818_v58 }
 0xb03   : > { %v4084_v23 = vpop.f32.mrb[26].mxu1 }
 0xb04   : > { %v4086_v25 = vpop.f32.mrb[27].mxu1  ;;  %v4111_v26 = vadd.f32 %v4104_v21, %v4084_v23  ;;  %v5397_v23 = vld [vmem:[%s9071_s9 + $0x68] sm:$0xff] }
 0xb05   : > { %v4112_v27 = vadd.f32 %v4108_v24, %v4086_v25  ;;  %v5398_v25 = vld [vmem:[%s9071_s9 + $0x70] sm:$0xff] }
 0xb06   : > { %v4115_v32 = vmax.f32 %v4111_v26, 0.0  ;;  %v5399_v26 = vld [vmem:[%s9071_s9 + $0x78] sm:$0xff] }
 0xb07   : > { %v4090_v28 = vpop.f32.mrb[28].mxu1  ;;  %v4116_v34 = vmax.f32 %v4112_v27, 0.0  ;;  %v6509_v27 = vpack.c.bf16 %v5399_v26, %v5398_v25  ;;  %v5424_v25 = vld [vmem:[%s9071_s9 + $0x128] sm:$0xff] }
 0xb08   : > { %v4113_v29 = vadd.f32 %v4104_v21, %v4090_v28  ;;  %v4092_v30 = vpop.f32.mrb[29].mxu1  ;;  %v5396_v21 = vld [vmem:[%s9071_s9 + $0x60] sm:$0xff] }
 0xb09   : > { %v4114_v31 = vadd.f32 %v4108_v24, %v4092_v30  ;;  %v6506_v24 = vpack.c.bf16 %v5397_v23, %v5396_v21  ;;  %v5400_v28 = vld [vmem:[%s9071_s9 + $0x80] sm:$0xff]  ;;  %v5412_v30 = vld [vmem:[%s9071_s9 + $0xd0] sm:$0xff]  ;;  %v5422_v21 = vld [vmem:[%s9071_s9 + $0x118] sm:$0xff] }
 0xb0a   : > { %v4117_v33 = vmax.f32 %v4113_v29, 0.0  ;;  %v5401_v29 = vld [vmem:[%s9071_s9 + $0x88] sm:$0xff] }
 0xb0b   : > { %v4118_v35 = vmax.f32 %v4114_v31, 0.0  ;;  %v6512_v31 = vpack.c.bf16 %v5401_v29, %v5400_v28  ;;  %v5426_v28 = vld [vmem:[%s9071_s9 + $0x138] sm:$0xff] }
 0xb0c   : > { %v6469_v36 = vpack.c.bf16 %v4117_v33, %v4115_v32  ;;  %v5413_v32 = vld [vmem:[%s9071_s9 + $0xd8] sm:$0xff] }
 0xb0d   : > { %v6466_v37 = vpack.c.bf16 %v4118_v35, %v4116_v34  ;;  %v6542_v33 = vpack.c.bf16 %v5413_v32, %v5412_v30  ;;  %v5402_v34 = vld [vmem:[%s9071_s9 + $0x90] sm:$0xff]  ;;  %v5403_v35 = vld [vmem:[%s9071_s9 + $0x98] sm:$0xff]  ;;  %v4721_v32 = vld [vmem:[%s9073_s11 + $0x8] sm:$0xff] }
 0xb0f   : > { %6468 = vmatprep.subr.msk.bf16.mxu0 %vm7610_vm9, %v6466_v37  ;;  %v6515_v37 = vpack.c.bf16 %v5403_v35, %v5402_v34  ;;  %6543 = vmatpush3.bf16.msra.mxu1 %v6542_v33  ;;  %v4722_v34 = vld [vmem:[%s9073_s11 + $0x10] sm:$0xff]  ;;  %v4723_v35 = vld [vmem:[%s9073_s11 + $0x18] sm:$0xff] }
 0xb10   : > { %6471 = vmatpush1.bf16.msk.msra.mxu0 %vm7610_vm9, %v6469_v36  ;;  %v5414_v36 = vld [vmem:[%s9071_s9 + $0xe0] sm:$0xff]  ;;  %6544 = vmatprep.subr.bf16.mxu1 %v6818_v58 }
 0xb11   : > { %6472 = vmatprep.subr.bf16.mxu0 %v6818_v58  ;;  %v6545_v22 = vpack.c.bf16 %v5415_v20, %v5414_v36  ;;  %v4724_v36 = vld [vmem:[%s9073_s11 + $0x20] sm:$0xff]  ;;  %v4725_v20 = vld [vmem:[%s9073_s11 + $0x28] sm:$0xff] }
 0xb13   : > { %5392 = vmatmul.mubr.msk.f32.vlgmr.msra.gmra.mrb[28].mxu0 %vm1922_vm10, %v4119_v38  ;;  %6546 = vmatpush3.bf16.msra.mxu1 %v6545_v22  ;;  %v6584_v22 = vpack.c.bf16 %v4725_v20, %v4724_v36 }
 0xb14   : > { %6474 = vmatpush1.bf16.msra.mxu0 %v6473_v39  ;;  %6562 = vmatprep.subr.bf16.mxu1 %v6818_v58 }
 0xb15   : > { %6475 = vmatprep.subr.bf16.mxu0 %v6818_v58 }
 0xb18   : > { %6477 = vmatpush1.bf16.msra.mxu0 %v6476_v44  ;;  %v5428_v44 = vld [vmem:[%s9071_s9 + $0x140] sm:$0xff] }
 0xb19   : > { %6478 = vmatprep.subr.bf16.mxu0 %v6818_v58 }
 0xb1c   : > { %6480 = vmatpush1.bf16.msra.mxu0 %v6479_v45  ;;  %v6563_v45 = vpack.c.bf16 %v5429_v42, %v5428_v44  ;;  %v4729_v44 = vld [vmem:[%s9073_s11 + $0x48] sm:$0xff] }
 0xb1d   : > { %6481 = vmatprep.subr.bf16.mxu0 %v6818_v58  ;;  %v6590_v42 = vpack.c.bf16 %v4729_v44, %v4728_v41 }
 0xb20   : > { %6483 = vmatpush1.bf16.msra.mxu0 %v6482_v52  ;;  %v5430_v52 = vld [vmem:[%s9071_s9 + $0x150] sm:$0xff] }
 0xb21   : > { %6484 = vmatprep.subr.bf16.mxu0 %v6818_v58  ;;  %v6566_v53 = vpack.c.bf16 %v5431_v48, %v5430_v52  ;;  %v4733_v52 = vld [vmem:[%s9073_s11 + $0x68] sm:$0xff] }
 0xb22   : > { %v6596_v48 = vpack.c.bf16 %v4733_v52, %v4732_v47 }
 0xb24   : > { %6486 = vmatpush1.bf16.msra.mxu0 %v6485_v50 }
 0xb25   : > { %6487 = vmatprep.subr.bf16.mxu0 %v6818_v58 }
 0xb28   : > { %6489 = vmatpush1.bf16.msra.mxu0 %v6488_v54  ;;  %v4299_v54 = vld [vmem:[%s9071_s9 + $0x20] sm:$0xff] }
 0xb29   : > { %6490 = vmatprep.subr.bf16.mxu0 %v6818_v58  ;;  %v6524_v59 = vpack.c.bf16 %v4300_v55, %v4299_v54  ;;  %v4813_v55 = vld [vmem:[%s9075_s13 + $0x18] sm:$0xff] }
 0xb2c   : > { %6492 = vmatpush1.bf16.msra.mxu0 %v6491_v57  ;;  %v5433_v57 = vld [vmem:[%s9071_s9 + $0x168] sm:$0xff] }
 0xb2d   : > { %6493 = vmatprep.subr.bf16.mxu0 %v6818_v58  ;;  %v6569_v60 = vpack.c.bf16 %v5433_v57, %v5432_v56  ;;  %v4814_v57 = vld [vmem:[%s9075_s13 + $0x20] sm:$0xff] }
 0xb30   : > { %6495 = vmatpush1.bf16.msra.mxu0 %v6494_v61  ;;  %v4301_v61 = vld [vmem:[%s9071_s9 + $0x30] sm:$0xff] }
 0xb31   : > { %6496 = vmatprep.subr.bf16.mxu0 %v6818_v58  ;;  %v6527_v1 = vpack.c.bf16 %v4302_v62, %v4301_v61  ;;  %v4816_v61 = vld [vmem:[%s9075_s13 + $0x30] sm:$0xff]  ;;  %v4817_v62 = vld [vmem:[%s9075_s13 + $0x38] sm:$0xff] }
 0xb34   : > { %6498 = vmatpush1.bf16.msra.mxu0 %v6497_v0  ;;  %v5435_v0 = vld [vmem:[%s9071_s9 + $0x178] sm:$0xff] }
 0xb35   : > { %6499 = vmatprep.subr.bf16.mxu0 %v6818_v58  ;;  %v6572_v2 = vpack.c.bf16 %v5435_v0, %v5434_v63  ;;  %v6608_v63 = vpack.c.bf16 %v4817_v62, %v4816_v61 }
 0xb38   : > { %6501 = vmatpush1.bf16.msra.mxu0 %v6500_v3  ;;  %v4303_v3 = vld [vmem:[%s9071_s9 + $0x40] sm:$0xff] }
 0xb39   : > { %6502 = vmatprep.subr.bf16.mxu0 %v6818_v58  ;;  %v6530_v8 = vpack.c.bf16 %v4304_v4, %v4303_v3 }
 0xbe6   : > { %v4195_v17 = vpop.f32.mrb[28].mxu0 }
 0xbe7   : > { %v4197_v19 = vpop.f32.mrb[29].mxu0 }
 0xbe8   : > { %5393 = vmatprep.mubr.msk.f32.mxu0 %vm523_vm0, %v4197_v19  ;;  %v5421_v19 = vld [vmem:[%s9071_s9 + $0x110] sm:$0xff]  ;;  %vm4903_vm0 = vcmask 74752  }
 0xbe9   : > { %4288 = vmatmul.mubr.f32.vlgmr.msra.gmra.mrb[30].mxu0 %v4195_v17  ;;  %v6554_v23 = vpack.c.bf16 %v5422_v21, %v5421_v19  ;;  %v4819_v19 = vld [vmem:[%s9075_s13 + $0x48] sm:$0xff] }
 0xbea   : > { %6504 = vmatpush3.bf16.msra.mxu0 %v6503_v18  ;;  %5806 = vmatprep.mubr.msk.f32.mxu0 %vm6819_vm11, %v6816_v7  ;;  %v6551_v18 = vpack.c.bf16 %v5420_v14, %v5419_v13  ;;  %v4717_v14 = vld [vmem:[%s9072_s10] sm:$0x1] }
 0xbeb   : > { %6505 = vmatprep.subr.bf16.mxu0 %v6818_v58 }
 0xbee   : > { %6507 = vmatpush3.bf16.msra.mxu0 %v6506_v24  ;;  %v5423_v24 = vld [vmem:[%s9071_s9 + $0x120] sm:$0xff] }
 0xbef   : > { %6508 = vmatprep.subr.bf16.mxu0 %v6818_v58  ;;  %v6557_v26 = vpack.c.bf16 %v5424_v25, %v5423_v24  ;;  %v4735_v24 = vld [vmem:[%s9074_s12] sm:$0x1] }
 0xbf2   : > { %6510 = vmatpush3.bf16.msra.mxu0 %v6509_v27  ;;  %v5425_v27 = vld [vmem:[%s9071_s9 + $0x130] sm:$0xff] }
 0xbf3   : > { %6511 = vmatprep.subr.bf16.mxu0 %v6818_v58  ;;  %v6560_v29 = vpack.c.bf16 %v5426_v28, %v5425_v27 }
 0xbf6   : > { %6513 = vmatpush3.bf16.msra.mxu0 %v6512_v31  ;;  %v4720_v31 = vld [vmem:[%s9073_s11] sm:$0xff] }
 0xbf7   : > { %6514 = vmatprep.subr.bf16.mxu0 %v6818_v58  ;;  %v6578_v33 = vpack.c.bf16 %v4721_v32, %v4720_v31 }
 0xbfa   : > { %6516 = vmatpush3.bf16.msra.mxu0 %v6515_v37  ;;  %v6581_v37 = vpack.c.bf16 %v4723_v35, %v4722_v34 }
 0xbfb   : > { %6517 = vmatprep.subr.bf16.mxu0 %v6818_v58 }
 0xcbc   : > { %v4289_v38 = vpop.f32.mrb[30].mxu0 }
 0xcbd   : > { %4293 = vst.msk [vmem:[#allocation3] sm:$0x1f] %vm2097_vm12, %v4289_v38  ;;  %v4291_v39 = vpop.f32.mrb[31].mxu0  ;;  %v4726_v38 = vld [vmem:[%s9073_s11 + $0x30] sm:$0xff] }
 0xcbe   : > { %v4727_v39 = vld [vmem:[%s9073_s11 + $0x38] sm:$0xff] }
 0xcbf   : > { %v6587_v40 = vpack.c.bf16 %v4727_v39, %v4726_v38 }
 0xcc4   : > { %v4305_v49 = vld [vmem:[#allocation3 + $0x1] sm:$0x1]  ;;  %v4462_v50 = vld [vmem:[#allocation3 + $0x2] sm:$0x1]  ;;  %v4294_v15 = vld [vmem:[#allocation3] sm:$0x1] }
 0xcc5   : > { %5807 = vmatmul.mubr.msk.f32.vlgmr.msra.gmra.mrb[32].mxu0 %vm2122_vm13, %v4305_v49  ;;  %5853 = vmatmul.mubr.msk.f32.vlgmr.msra.gmra.mrb[30].mxu1 %vm2122_vm13, %v4462_v50  ;;  %v4632_v17 = vld [vmem:[#allocation3 + $0x4] sm:$0x1]  ;;  %v4547_v30 = vld [vmem:[#allocation3 + $0x3] sm:$0x1]  ;;  %v4810_v50 = vld [vmem:[%s9075_s13] sm:$0xff] }
 0xcc6   : > { %6519 = vmatpush3.bf16.msra.mxu0 %v6518_v43  ;;  %6564 = vmatpush3.bf16.msra.mxu1 %v6563_v45  ;;  %v4730_v43 = vld [vmem:[%s9073_s11 + $0x50] sm:$0xff]  ;;  %v4731_v45 = vld [vmem:[%s9073_s11 + $0x58] sm:$0xff] }
 0xcc7   : > { %6520 = vmatprep.subr.bf16.mxu0 %v6818_v58  ;;  %6565 = vmatprep.subr.bf16.mxu1 %v6818_v58  ;;  %v6593_v46 = vpack.c.bf16 %v4731_v45, %v4730_v43  ;;  %v4734_v49 = vld [vmem:[%s9073_s11 + $0x70] sm:$0xff] }
 0xcc8   : > { %5829 = vmatprep.mubr.msk.f32.mxu0 %vm6819_vm11, %v6816_v7  ;;  %5898 = vmatprep.mubr.msk.f32.mxu1 %vm6819_vm11, %v6816_v7 }
 0xcca   : > { %6522 = vmatpush3.bf16.msra.mxu0 %v6521_v51  ;;  %6567 = vmatpush3.bf16.msra.mxu1 %v6566_v53  ;;  %v4811_v51 = vld [vmem:[%s9075_s13 + $0x8] sm:$0xff]  ;;  %v4812_v53 = vld [vmem:[%s9075_s13 + $0x10] sm:$0xff] }
 0xccb   : > { %6523 = vmatprep.subr.bf16.mxu0 %v6818_v58  ;;  %6568 = vmatprep.subr.bf16.mxu1 %v6818_v58  ;;  %v6599_v54 = vpack.c.bf16 %v4811_v51, %v4810_v50  ;;  %v6602_v56 = vpack.c.bf16 %v4813_v55, %v4812_v53 }
 0xcce   : > { %6525 = vmatpush3.bf16.msra.mxu0 %v6524_v59  ;;  %6570 = vmatpush3.bf16.msra.mxu1 %v6569_v60  ;;  %v4815_v59 = vld [vmem:[%s9075_s13 + $0x28] sm:$0xff] }
 0xccf   : > { %6526 = vmatprep.subr.bf16.mxu0 %v6818_v58  ;;  %6571 = vmatprep.subr.bf16.mxu1 %v6818_v58  ;;  %v6605_v60 = vpack.c.bf16 %v4815_v59, %v4814_v57 }
 0xcd2   : > { %6528 = vmatpush3.bf16.msra.mxu0 %v6527_v1  ;;  %6573 = vmatpush3.bf16.msra.mxu1 %v6572_v2 }
 0xcd3   : > { %6529 = vmatprep.subr.bf16.mxu0 %v6818_v58  ;;  %6574 = vmatprep.subr.bf16.mxu1 %v6818_v58 }
 0xcd6   : > { %6531 = vmatpush3.bf16.msra.mxu0 %v6530_v8  ;;  %6576 = vmatpush3.bf16.msra.mxu1 %v6575_v9 }
 0xcd7   : > { %6547 = vmatprep.subr.bf16.mxu0 %v6818_v58  ;;  %6598 = vmatprep.subr.bf16.mxu1 %v6818_v58 }
 0xcd9   : > { %5830 = vmatmul.mubr.msk.f32.vlgmr.msra.gmra.mrb[34].mxu0 %vm2122_vm13, %v4294_v15  ;;  %5899 = vmatmul.mubr.msk.f32.vlgmr.msra.gmra.mrb[32].mxu1 %vm2122_vm13, %v4632_v17 }
 0xcda   : > { %6549 = vmatpush3.bf16.msra.mxu0 %v6548_v12  ;;  %5875 = vmatprep.mubr.msk.f32.mxu0 %vm6819_vm11, %v6816_v7 }
 0xcdb   : > { %6550 = vmatprep.subr.bf16.mxu0 %v6818_v58  ;;  %5956 = vmatprep.mubr.msk.f32.mxu1 %vm6819_vm11, %v6816_v7 }
 0xcdc   : > { %6600 = vmatpush3.bf16.msra.mxu1 %v6599_v54 }
 0xcdd   : > { %6601 = vmatprep.subr.bf16.mxu1 %v6818_v58 }
 0xcde   : > { %6552 = vmatpush3.bf16.msra.mxu0 %v6551_v18  ;;  %v4818_v18 = vld [vmem:[%s9075_s13 + $0x40] sm:$0xff] }
 0xcdf   : > { %6553 = vmatprep.subr.bf16.mxu0 %v6818_v58  ;;  %v6611_v21 = vpack.c.bf16 %v4819_v19, %v4818_v18 }
 0xce0   : > { %6603 = vmatpush3.bf16.msra.mxu1 %v6602_v56 }
 0xce1   : > { %6604 = vmatprep.subr.bf16.mxu1 %v6818_v58 }
 0xce2   : > { %6555 = vmatpush3.bf16.msra.mxu0 %v6554_v23  ;;  %v4820_v23 = vld [vmem:[%s9075_s13 + $0x50] sm:$0xf] }
 0xce3   : > { %6556 = vmatprep.subr.bf16.mxu0 %v6818_v58 }
 0xce4   : > { %6606 = vmatpush3.bf16.msra.mxu1 %v6605_v60 }
 0xce5   : > { %6607 = vmatprep.subr.bf16.mxu1 %v6818_v58 }
 0xce6   : > { %6558 = vmatpush3.bf16.msra.mxu0 %v6557_v26 }
 0xce7   : > { %6559 = vmatprep.subr.bf16.mxu0 %v6818_v58 }
 0xce8   : > { %6609 = vmatpush3.bf16.msra.mxu1 %v6608_v63 }
 0xce9   : > { %6610 = vmatprep.subr.bf16.mxu1 %v6818_v58 }
 0xcea   : > { %6561 = vmatpush3.bf16.msra.mxu0 %v6560_v29  ;;  %v2632_v29 = vld [vmem:[%s9076_s14] sm:$0x1] }
 0xceb   : > { %6577 = vmatprep.subr.bf16.mxu0 %v6818_v58 }
 0xcec   : > { %6612 = vmatpush3.bf16.msra.mxu1 %v6611_v21 }
 0xced   : > { %5876 = vmatmul.mubr.msk.f32.vlgmr.msra.gmra.mrb[36].mxu0 %vm2122_vm13, %v4547_v30  ;;  %5954 = vmatprep.subr.mxu1 %v6816_v7 }
 0xcee   : > { %5931 = vmatprep.mubr.msk.f32.mxu0 %vm6819_vm11, %v6816_v7  ;;  %6579 = vmatpush3.bf16.msra.mxu0 %v6578_v33  ;;  %v2706_v33 = vadd.f32 %v8268_v16, %v2632_v29 }
 0xcef   : > { %6580 = vmatprep.subr.bf16.mxu0 %v6818_v58 }
 0xcf0   : > { %5955 = vmatpush3.msk.msra.mxu1 %vm1129_vm1, %v4820_v23 }
 0xcf2   : > { %6582 = vmatpush3.bf16.msra.mxu0 %v6581_v37 }
 0xcf3   : > { %6583 = vmatprep.subr.bf16.mxu0 %v6818_v58 }
 0xcf6   : > { %6585 = vmatpush3.bf16.msra.mxu0 %v6584_v22 }
 0xcf7   : > { %6586 = vmatprep.subr.bf16.mxu0 %v6818_v58 }
 0xcfa   : > { %6588 = vmatpush3.bf16.msra.mxu0 %v6587_v40 }
 0xcfb   : > { %6589 = vmatprep.subr.bf16.mxu0 %v6818_v58 }
 0xcfe   : > { %6591 = vmatpush3.bf16.msra.mxu0 %v6590_v42 }
 0xcff   : > { %6592 = vmatprep.subr.bf16.mxu0 %v6818_v58 }
 0xd02   : > { %6594 = vmatpush3.bf16.msra.mxu0 %v6593_v46 }
 0xd03   : > { %6595 = vmatprep.subr.bf16.mxu0 %v6818_v58 }
 0xd06   : > { %6597 = vmatpush3.bf16.msra.mxu0 %v6596_v48 }
 0xd07   : > { %5929 = vmatprep.subr.mxu0 %v6816_v7  ;;  %v4821_v7 = vld [vmem:[%s9076_s14] sm:$0x1] }
 0xd0a   : > { %5930 = vmatpush3.msra.mxu0 %v4734_v49 }
 0xd98   : > { %v4385_v0 = vpop.f32.mrb[32].mxu0  ;;  %v4542_v1 = vpop.f32.mrb[30].mxu1 }
 0xd99   : > { %v5808_v2 = vpop.f32.mrb[33].mxu0  ;;  %v5854_v3 = vpop.f32.mrb[31].mxu1 }
 0xdac   : > { %v4458_v4 = vpop.f32.mrb[34].mxu0  ;;  %v4712_v5 = vpop.f32.mrb[32].mxu1 }
 0xdad   : > { %v4459_v6 = vadd.f32 %v4458_v4, %v4385_v0  ;;  %v5831_v8 = vpop.f32.mrb[35].mxu0  ;;  %v5900_v9 = vpop.f32.mrb[33].mxu1 }
 0xdaf   : > { %v4546_v10 = vadd.f32 %v4542_v1, %v4459_v6 }
 0xdc0   : > { %v4627_v11 = vpop.f32.mrb[36].mxu0 }
 0xdc1   : > { %v4631_v12 = vadd.f32 %v4627_v11, %v4546_v10  ;;  %v5877_v13 = vpop.f32.mrb[37].mxu0 }
 0xdc3   : > { %v4716_v15 = vadd.f32 %v4712_v5, %v4631_v12 }
 0xdc5   : > { %v4718_v17 = vadd.f32 %v4717_v14, %v4716_v15 }
 0xdc7   : > { %v4719_v58 = vmax.f32 %v4718_v17, 0.0 }
 0xdc9   : > { %5932 = vmatmul.mubr.msk.f32.vlgmr.msra.gmra.mrb[38].mxu0 %vm2546_vm14, %v4719_v58 }
 0xe9c   : > { %v4805_v25 = vpop.f32.mrb[38].mxu0 }
 0xe9d   : > { %v4806_v26 = vadd.f32 %v4805_v25, %v4735_v24  ;;  %v5933_v27 = vpop.f32.mrb[39].mxu0 }
 0xe9f   : > { %v4809_v28 = vmax.f32 %v4806_v26, 0.0 }
 0xea1   : > { %5957 = vmatmul.mubr.msk.f32.vlgmr.msra.gmra.mrb[34].mxu1 %vm1316_vm6, %v4809_v28 }
 0xf74   : > { %v4894_v30 = vpop.f32.mrb[34].mxu1 }
 0xf75   : > { %v4895_v31 = vadd.f32 %v4894_v30, %v4821_v7  ;;  %v5958_v32 = vpop.f32.mrb[35].mxu1 }
 0xf77   : > { %v4899_v34 = vrot.slane %v4895_v31, 7 }
 0xf79   : > { %v4902_v35 = vsel %vm4901_vm15, %v2706_v33, %v4899_v34 }
 0xf7a   : > { %4904 = vst.msk [vmem:[%s490_s30] sm:$0x3] %vm4903_vm0, %v4902_v35 }
 0xf7b   : > { %6765 = shalt.err (!%p6762_p3)
}
 0xf7c   : > { %s6766_s24 = scalar_lea.hbm %s9020_s20, 32  ;;  %s6770_s30 = scalar_lea.hbm %s9077_s15, 128 }
 0xf7d   : > { %p6767_p4 = scmp.ne.s32.totalorder %s9020_s20, %s6766_s24  ;;  %p6771_p9 = scmp.lt.u32.totalorder %s9020_s20, %s9077_s15 }
 0xf7e   : > { %p6772_p10 = scmp.lt.u32.totalorder %s6770_s30, %s6766_s24  ;;  %p6774_p12 = scmp.lt.u32.totalorder %s6766_s24, %s9020_s20 }
 0xf7f   : > { %p6768_p7 = pnand %p6767_p4, %p6939_p5 }
 0xf80   : > { %p6773_p11 = por %p6772_p10, %p6771_p9 }
 0xf81   : > { %p6769_p8 = pneg %p6768_p7 }
 0xf82   : > { %p6775_p13 = por %p6774_p12, %p6773_p11 }
 0xf84   : > { %p6776_p0 = pnand %p6775_p13, %p6769_p8 }
 0xf86   : > { %6779 = shalt.err (!%p6776_p0)
}
 0xf87   : > { %6709 = dma.vmem_to_hbm [thread:$0]  (%p6939_p5), %s9022_s17, 32, %s9020_s20, %s4906_s22  }
 0xf88 PF: > { %s9096_s21 = sld [smem:[#allocation9_spill]]  ;;  %s9097_s18 = sld [smem:[#allocation7_spill]] }
 0xf8e   : > { %p6715_p1 = scmp.ge.s32.totalorder %s9096_s21, 2  ;;  %s4931_s26 = sand.u32 1, %s9097_s18  }
 0xf8f   : > { %s4932_s27 = scalar_lea.sflag [#allocation5], %s4931_s26 }
 0xf90   : > { %p6712_p2 = pnand %p6715_p1, %p6943_p6 }
 0xf92   : > { %6797 = dma.done.wait (!%p6712_p2), %s4932_s27, 32  }
 0xf93   : > { %6799 = vsyncadd (!%p6712_p2), %s4932_s27, 4294967264  ;;  %s9099_s21 = sld [smem:[#allocation10_spill]]  ;;  %s9100_s24 = sld [smem:[#allocation8_spill]] }
 0xf94   : > { %s9101_s20 = sld [smem:[#allocation11_spill]]  ;;  %s9102_s18 = smov %s6806_s19 }
 0xf99   : > { %p25_p3 = scmp.ge.s32.totalorder %s9099_s21, 6   ;;  %s9103_s19 = smov %s9100_s24 }
 0xf9b   :  { %27 = sbr.rel (!%p25_p3) target bundleno = 3 (0x3), region = 128 }
 0xfa2   :  { %4937 = vsyncpa [#allocation5], 1 }
 0xfa3   :  { %4939 = vsyncpa [#allocation5 + $0x1], 1 }

</bundles_post_ra>
